<compile_context>
chip_gen: v7x
topology: tpu7x:2x2x1
jax: 0.10.0
libtpu: 0.0.40
codegen_flags: <defaults>
</compile_context>

<pallas_src>
import numpy as np
import jax
import jax.numpy as jnp
from jax.experimental import pallas as pl
from jax.experimental.pallas import tpu as pltpu

# ----------------- encoder / network config (from __init__) -----------------
N_LEVELS = 8
N_FEATS = 2
LOG2_HASHMAP = 19
TABLE_SIZE = 1 << LOG2_HASHMAP
BASE_RES = 16
PER_LEVEL_SCALE = float(np.exp2(np.log2(2048 * 1 / 16) / (16 - 1)))

N_CORNERS = 8                                   # 2^3 voxel corners
ENC_DIM = N_LEVELS * N_FEATS                    # 16
CF_DIM = N_LEVELS * N_CORNERS * N_FEATS         # 128  (== one lane width)
HIDDEN = 32
OUT_DIM = 3
COLOR_PAD = 16                                  # color padded to 16 lanes
PACK_OUT = ENC_DIM + COLOR_PAD                  # 32-wide per-point record
PACK_LANES = 128                                # lane-dense output row width
POINTS_PER_ROW = PACK_LANES // PACK_OUT         # 4 points per 128-lane row

# Tile-size policy (review): 2048 amortizes the ~0.35 us per-grid-step
# overhead on all generations; small batches drop the tile so the grid keeps
# >= 2 (ideally >= 8) steps and v7x can use both TensorCores.
TILE_N_MAX = 2048
TILE_N_MIN = 256

_PRIMES = np.array([1, 2654435761, 805459861], dtype=np.uint32)

# per-level grid scales / resolutions (tcnn convention)
_LEVELS = np.arange(N_LEVELS)
_SCALES = np.exp2(_LEVELS * np.log2(PER_LEVEL_SCALE)) * BASE_RES - 1.0
_RES = (np.ceil(_SCALES) + 1).astype(np.int64)
_USE_DIRECT = (_RES ** 3) <= TABLE_SIZE          # direct indexing for small levels

# corner offsets in {0,1}^3 ; corner c, dim d -> (c >> d) & 1
_OFFSETS = np.array([[(c >> d) & 1 for d in range(3)] for c in range(N_CORNERS)],
                    dtype=np.int32)

# constant 0/1 corner-reduction matrix R (128, 16):  enc = (cf * we) @ R
#   cf / we laid out along lanes as  idx = l*16 + c*2 + f ;  enc as  2*l + f
_R_NP = np.zeros((CF_DIM, ENC_DIM), dtype=np.float32)
for _l in range(N_LEVELS):
    for _c in range(N_CORNERS):
        for _f in range(N_FEATS):
            _R_NP[_l * 16 + _c * 2 + _f, 2 * _l + _f] = 1.0

# row map implementing R @ W1 exactly by row replication:
#   packed row k = l*16 + c*2 + f  ->  W1 row 2*l + f
_W1_ROW_MAP = np.array([(k // 16) * 2 + (k % 2) for k in range(CF_DIM)],
                       dtype=np.int32)

# ----- packed constant array layout: one (CONST_ROWS, 128) f32 input --------
ROW_RW = 0          # rows [0, 128)   : [R | R @ W1] in cols 0:48
ROW_W2 = 128        # rows [128, 160) : W2 in cols 0:32
ROW_W3 = 160        # rows [160, 192) : W3 in cols 0:3 (zero-padded to 16)
ROW_B1 = 192        # row 192         : b1 in cols 0:32
ROW_B2 = 193        # row 193         : b2 in cols 0:32
ROW_B3 = 194        # row 194         : b3 in cols 0:3 (zero-padded to 16)
CONST_ROWS = 200    # padded to a multiple of 8 sublanes
CONST_LANES = 128


# ------------------------------- Pallas kernel -------------------------------
def _ngp_kernel(cf_ref, we_ref, c_ref, out_ref):
    # static slices of the single packed constant block
    rw = c_ref[ROW_RW:ROW_RW + CF_DIM, 0:ENC_DIM + HIDDEN]         # (128, 48)
    w2 = c_ref[ROW_W2:ROW_W2 + HIDDEN, 0:HIDDEN]                   # (32, 32)
    w3 = c_ref[ROW_W3:ROW_W3 + HIDDEN, 0:COLOR_PAD]                # (32, 16)
    b1 = c_ref[ROW_B1:ROW_B1 + 1, 0:HIDDEN]                        # (1, 32)
    b2 = c_ref[ROW_B2:ROW_B2 + 1, 0:HIDDEN]                        # (1, 32)
    b3 = c_ref[ROW_B3:ROW_B3 + 1, 0:COLOR_PAD]                     # (1, 16)

    q = out_ref.shape[0]                     # TILE_N // 4 rows per output block

    # Process the tile in 4 sublane quarters; quarter j produces the 32-lane
    # per-point records for points [j*q, (j+1)*q) of this tile and writes them
    # to lanes [32j, 32j+32) of the lane-dense (q, 128) output block.
    for j in range(POINTS_PER_ROW):
        lo = j * q
        # bf16 HBM streams -> f32 compute (v5e has no bf16 VALU; keep f32 math)
        cf = cf_ref[lo:lo + q, :].astype(jnp.float32)              # (q, 128)
        we = we_ref[lo:lo + q, :].astype(jnp.float32)              # (q, 128)
        prod = cf * we                                             # (q, 128)

        # trilinear corner-reduction fused with the first MLP layer:
        #   y[:, 0:16]  = prod @ R        (the encoding)
        #   y[:, 16:48] = prod @ (R @ W1) (pre-activation of layer 1)
        y = jnp.dot(prod, rw, preferred_element_type=jnp.float32)  # (q, 48)
        enc = y[:, 0:ENC_DIM]
        h = jnp.maximum(y[:, ENC_DIM:ENC_DIM + HIDDEN] + b1, 0.0)
        h = jnp.maximum(jnp.dot(h, w2, preferred_element_type=jnp.float32) + b2,
                        0.0)
        color = jnp.dot(h, w3, preferred_element_type=jnp.float32) + b3  # (q,16)

        out_ref[:, j * PACK_OUT:(j + 1) * PACK_OUT] = (
            jnp.concatenate([enc, color], axis=-1))                # (q, 32)


def _ngp_pallas(cf, we, consts, tile_n):
    n = cf.shape[0]
    assert n % tile_n == 0                   # wrapper pads to a multiple of tile_n
    grid = (n // tile_n,)
    q = tile_n // POINTS_PER_ROW
    return pl.pallas_call(
        _ngp_kernel,
        out_shape=jax.ShapeDtypeStruct((n // POINTS_PER_ROW, PACK_LANES),
                                       jnp.float32),
        grid=grid,
        in_specs=[
            pl.BlockSpec((tile_n, CF_DIM), lambda i: (i, 0)),      # bf16 feats
            pl.BlockSpec((tile_n, CF_DIM), lambda i: (i, 0)),      # bf16 weights
            pl.BlockSpec((CONST_ROWS, CONST_LANES), lambda i: (0, 0)),  # constants
        ],
        out_specs=pl.BlockSpec((q, PACK_LANES), lambda i: (i, 0)),
        compiler_params=pltpu.CompilerParams(
            dimension_semantics=("parallel",)),   # lets v7x use both TCs
    )(cf, we, consts)


def _choose_tile_n(n):
    """Trace-time tile pick: biggest tile whose grid still has >= 8 steps
    (so v7x can shard across both TensorCores); fall back to >= 2 steps, then
    to the minimum tile for tiny batches."""
    def steps(t):
        return -(-n // t)
    for t in (TILE_N_MAX, 1024, 512, TILE_N_MIN):
        if steps(t) >= 8:
            return t
    for t in (TILE_N_MAX, 1024, 512, TILE_N_MIN):
        if steps(t) >= 2:
            return t
    return TILE_N_MIN


# --------------------------- JAX glue: hash encoding --------------------------
def _hash_prep(x):
    """x: (N, 3) in ~[0, 1).  Returns corner indices (N, L, 8) int32 and
    trilinear weights (N, L, 8) f32."""
    scales = jnp.asarray(_SCALES, jnp.float32)                 # (L,)
    pos = x[:, None, :] * scales[None, :, None] + 0.5          # (N, L, 3)
    pos_floor = jnp.floor(pos)
    frac = pos - pos_floor                                     # (N, L, 3)
    pos_grid = pos_floor.astype(jnp.int32)

    offsets = jnp.asarray(_OFFSETS)                            # (8, 3)
    corner = pos_grid[:, :, None, :] + offsets[None, None, :, :]   # (N, L, 8, 3)
    corner_u = corner.astype(jnp.uint32)

    primes = jnp.asarray(_PRIMES)
    hashed = (corner_u[..., 0] * primes[0]
              ^ corner_u[..., 1] * primes[1]
              ^ corner_u[..., 2] * primes[2]) & jnp.uint32(TABLE_SIZE - 1)

    res_u = jnp.asarray(_RES, jnp.uint32)                      # (L,)
    direct = (corner_u[..., 0]
              + corner_u[..., 1] * res_u[None, :, None]
              + corner_u[..., 2] * (res_u * res_u)[None, :, None])
    direct = direct & jnp.uint32(TABLE_SIZE - 1)

    use_direct = jnp.asarray(_USE_DIRECT)[None, :, None]
    idx = jnp.where(use_direct, direct, hashed).astype(jnp.int32)   # (N, L, 8)

    w = jnp.prod(jnp.where(offsets[None, None, :, :] == 1,
                           frac[:, :, None, :],
                           1.0 - frac[:, :, None, :]), axis=-1)     # (N, L, 8)
    return idx, w


def _gather_corners(tables, idx):
    # tables: (L, T, F); idx: (N, L, 8)  ->  (N, L, 8, F)
    lvl = jnp.arange(N_LEVELS)[None, :, None]
    return tables[lvl, idx]


def _encode_inputs(points, tables):
    """Hash-grid glue (plain JAX): points -> bf16 corner features (N, 128) and
    bf16 pre-expanded trilinear corner weights (N, 128), both lane-dense."""
    x = points / np.pi
    idx, w = _hash_prep(x)
    feats = _gather_corners(tables, idx)                 # (N, L, 8, F)
    n = points.shape[0]
    cf = feats.reshape(n, CF_DIM).astype(jnp.bfloat16)   # idx = l*16 + c*2 + f
    we = jnp.broadcast_to(w[..., None], (n, N_LEVELS, N_CORNERS, N_FEATS))
    we = we.reshape(n, CF_DIM).astype(jnp.bfloat16)      # same lane layout as cf
    return cf, we


def _pack_constants(w1, b1, w2, b2, w3, b3):
    """Pack [R | R@W1], W2, W3(padded), b1, b2, b3(padded) into one
    (CONST_ROWS, 128) f32 array consumed by a single BlockSpec."""
    r = jnp.asarray(_R_NP)                               # (128, 16)
    rw1 = w1[jnp.asarray(_W1_ROW_MAP)]                   # (128, 32) == R @ W1 exactly
    rw = jnp.concatenate([r, rw1], axis=1)               # (128, 48)
    p = jnp.zeros((CONST_ROWS, CONST_LANES), jnp.float32)
    p = p.at[ROW_RW:ROW_RW + CF_DIM, 0:ENC_DIM + HIDDEN].set(rw)
    p = p.at[ROW_W2:ROW_W2 + HIDDEN, 0:HIDDEN].set(w2)
    p = p.at[ROW_W3:ROW_W3 + HIDDEN, 0:OUT_DIM].set(w3)
    p = p.at[ROW_B1, 0:HIDDEN].set(b1)
    p = p.at[ROW_B2, 0:HIDDEN].set(b2)
    p = p.at[ROW_B3, 0:OUT_DIM].set(b3)
    return p


@jax.jit
def ngp_forward(points, tables, w1, b1, w2, b2, w3, b3):
    """Pallas-backed forward: points (N, 3) -> (enc (N, 16), color (N, 3))."""
    cf, we = _encode_inputs(points, tables)
    consts = _pack_constants(w1, b1, w2, b2, w3, b3)

    n = points.shape[0]
    tile_n = _choose_tile_n(n)                           # static at trace time
    n_pad = -(-n // tile_n) * tile_n                     # pad rows to the tile
    if n_pad != n:
        cf = jnp.pad(cf, ((0, n_pad - n), (0, 0)))
        we = jnp.pad(we, ((0, n_pad - n), (0, 0)))

    out = _ngp_pallas(cf, we, consts, tile_n)            # (n_pad//4, 128)

    # Un-pack the lane-dense slab: output row r of tile i holds points
    # i*tile_n + j*(tile_n//4) + r in lanes [32j, 32j+32).  XLA fuses this
    # transpose into the enc/color slicing below.
    num_tiles = n_pad // tile_n
    q = tile_n // POINTS_PER_ROW
    per_pt = (out.reshape(num_tiles, q, POINTS_PER_ROW, PACK_OUT)
                 .transpose(0, 2, 1, 3)
                 .reshape(n_pad, PACK_OUT))
    enc = per_pt[:n, 0:ENC_DIM]
    color = per_pt[:n, ENC_DIM:ENC_DIM + OUT_DIM]
    return enc, color


# ------------------------------ pure-JAX reference ----------------------------
def ngp_reference(cf_bf16, we_bf16, w1, b1, w2, b2, w3, b3):
    """Reference on the same bf16-truncated encoder outputs, full-f32 math."""
    n = cf_bf16.shape[0]
    hp = jax.lax.Precision.HIGHEST
    prod = cf_bf16.astype(jnp.float32) * we_bf16.astype(jnp.float32)
    enc = prod.reshape(n, N_LEVELS, N_CORNERS, N_FEATS).sum(axis=2)
    enc = enc.reshape(n, ENC_DIM)
    h = jnp.maximum(jnp.dot(enc, w1, precision=hp) + b1, 0.0)
    h = jnp.maximum(jnp.dot(h, w2, precision=hp) + b2, 0.0)
    color = jnp.dot(h, w3, precision=hp) + b3
    return enc, color


# ------------------------------------ main ------------------------------------
if __name__ == "__main__":
    key = jax.random.PRNGKey(0)
    k_pts, k_tab, k_w1, k_w2, k_w3 = jax.random.split(key, 5)

    # deliberately not a multiple of the tile size to exercise the padding
    # path; the tile chooser yields tile_n=512 -> a 2-step grid.
    N = 1000
    points = jax.random.uniform(k_pts, (N, 3), jnp.float32,
                                minval=0.0, maxval=float(np.pi))

    # hash-grid tables: tcnn default init ~ U(-1e-4, 1e-4)
    tables = jax.random.uniform(k_tab, (N_LEVELS, TABLE_SIZE, N_FEATS),
                                jnp.float32, minval=-1e-4, maxval=1e-4)

    # MLP params stored (C_in, C_out).  The module zero-initialises the last
    # layer (zero_init=True), which would make the color test trivially pass;
    # use a nonzero w3 here so the full MLP path is actually validated
    # (pass zeros to reproduce the module's init exactly).
    w1 = jax.random.normal(k_w1, (ENC_DIM, HIDDEN), jnp.float32) * np.sqrt(2.0 / ENC_DIM)
    b1 = jnp.zeros((HIDDEN,), jnp.float32)
    w2 = jax.random.normal(k_w2, (HIDDEN, HIDDEN), jnp.float32) * np.sqrt(2.0 / HIDDEN)
    b2 = jnp.zeros((HIDDEN,), jnp.float32)
    w3 = jax.random.normal(k_w3, (HIDDEN, OUT_DIM), jnp.float32) * np.sqrt(1.0 / HIDDEN)
    b3 = jnp.zeros((OUT_DIM,), jnp.float32)

    enc, color = ngp_forward(points, tables, w1, b1, w2, b2, w3, b3)
    jax.block_until_ready((enc, color))

    cf16, we16 = _encode_inputs(points, tables)
    enc_ref, color_ref = ngp_reference(cf16, we16, w1, b1, w2, b2, w3, b3)
    np.testing.assert_allclose(np.asarray(enc), np.asarray(enc_ref),
                               rtol=1e-3, atol=1e-8)
    np.testing.assert_allclose(np.asarray(color), np.asarray(color_ref),
                               rtol=1e-3, atol=1e-8)

    print("KERNEL_OK")
</pallas_src>

<mosaic_0001>
module attributes {stable_mosaic.version = 11 : i64} {
  func.func @_ngp_kernel(%arg0: i32, %arg1: memref<512x128xbf16, #tpu.memory_space<vmem>>, %arg2: memref<512x128xbf16, #tpu.memory_space<vmem>>, %arg3: memref<200x128xf32, #tpu.memory_space<vmem>>, %arg4: memref<128x128xf32, #tpu.memory_space<vmem>>) attributes {dimension_semantics = [#tpu.dimension_semantics<parallel>], iteration_bounds = array<i64: 2>, scalar_prefetch = 0 : i64, scratch_operands = 0 : i64, tpu.core_type = #tpu.core_type<tc>, window_params = [{transform_indices = @transform_0, window_bounds = array<i64: 512, 128>}, {transform_indices = @transform_1, window_bounds = array<i64: 512, 128>}, {pipeline_mode = #tpu.pipeline_mode<synchronous>, transform_indices = @transform_2, window_bounds = array<i64: 200, 128>}, {transform_indices = @transform_3, window_bounds = array<i64: 128, 128>}]} {
    %c0 = arith.constant 0 : index
    %c0_0 = arith.constant 0 : index
    %0 = vector.load %arg3[%c0, %c0_0] : memref<200x128xf32, #tpu.memory_space<vmem>>, vector<128x48xf32>
    %c128 = arith.constant 128 : index
    %c0_1 = arith.constant 0 : index
    %1 = vector.load %arg3[%c128, %c0_1] : memref<200x128xf32, #tpu.memory_space<vmem>>, vector<32x32xf32>
    %c160 = arith.constant 160 : index
    %c0_2 = arith.constant 0 : index
    %2 = vector.load %arg3[%c160, %c0_2] : memref<200x128xf32, #tpu.memory_space<vmem>>, vector<32x16xf32>
    %c192 = arith.constant 192 : index
    %c0_3 = arith.constant 0 : index
    %3 = vector.load %arg3[%c192, %c0_3] : memref<200x128xf32, #tpu.memory_space<vmem>>, vector<1x32xf32>
    %c193 = arith.constant 193 : index
    %c0_4 = arith.constant 0 : index
    %4 = vector.load %arg3[%c193, %c0_4] : memref<200x128xf32, #tpu.memory_space<vmem>>, vector<1x32xf32>
    %c194 = arith.constant 194 : index
    %c0_5 = arith.constant 0 : index
    %5 = vector.load %arg3[%c194, %c0_5] : memref<200x128xf32, #tpu.memory_space<vmem>>, vector<1x16xf32>
    %c0_6 = arith.constant 0 : index
    %c0_7 = arith.constant 0 : index
    %6 = vector.load %arg1[%c0_6, %c0_7] : memref<512x128xbf16, #tpu.memory_space<vmem>>, vector<128x128xbf16>
    %7 = arith.extf %6 : vector<128x128xbf16> to vector<128x128xf32>
    %c0_8 = arith.constant 0 : index
    %c0_9 = arith.constant 0 : index
    %8 = vector.load %arg2[%c0_8, %c0_9] : memref<512x128xbf16, #tpu.memory_space<vmem>>, vector<128x128xbf16>
    %9 = arith.extf %8 : vector<128x128xbf16> to vector<128x128xf32>
    %10 = arith.mulf %7, %9 : vector<128x128xf32>
    %cst = arith.constant dense<0.000000e+00> : vector<128x48xf32>
    %11 = tpu.matmul %10, %0, %cst {dimension_numbers = #tpu.dot_dimension_numbers<[1], [0], [0], [1], [0, 0, 1, 1], [], []>} : vector<128x128xf32>, vector<128x48xf32>, vector<128x48xf32> -> vector<128x48xf32>
    %12 = vector.extract_strided_slice %11 {offsets = [0, 0], sizes = [128, 16], strides = [1, 1]} : vector<128x48xf32> to vector<128x16xf32>
    %13 = vector.extract_strided_slice %11 {offsets = [0, 16], sizes = [128, 32], strides = [1, 1]} : vector<128x48xf32> to vector<128x32xf32>
    %14 = vector.broadcast %3 : vector<1x32xf32> to vector<128x32xf32>
    %15 = arith.addf %13, %14 : vector<128x32xf32>
    %cst_10 = arith.constant 0.000000e+00 : f32
    %16 = vector.broadcast %cst_10 : f32 to vector<128x32xf32>
    %17 = arith.maximumf %15, %16 : vector<128x32xf32>
    %cst_11 = arith.constant dense<0.000000e+00> : vector<128x32xf32>
    %18 = tpu.matmul %17, %1, %cst_11 {dimension_numbers = #tpu.dot_dimension_numbers<[1], [0], [0], [1], [0, 0, 1, 1], [], []>} : vector<128x32xf32>, vector<32x32xf32>, vector<128x32xf32> -> vector<128x32xf32>
    %19 = vector.broadcast %4 : vector<1x32xf32> to vector<128x32xf32>
    %20 = arith.addf %18, %19 : vector<128x32xf32>
    %cst_12 = arith.constant 0.000000e+00 : f32
    %21 = vector.broadcast %cst_12 : f32 to vector<128x32xf32>
    %22 = arith.maximumf %20, %21 : vector<128x32xf32>
    %cst_13 = arith.constant dense<0.000000e+00> : vector<128x16xf32>
    %23 = tpu.matmul %22, %2, %cst_13 {dimension_numbers = #tpu.dot_dimension_numbers<[1], [0], [0], [1], [0, 0, 1, 1], [], []>} : vector<128x32xf32>, vector<32x16xf32>, vector<128x16xf32> -> vector<128x16xf32>
    %24 = vector.broadcast %5 : vector<1x16xf32> to vector<128x16xf32>
    %25 = arith.addf %23, %24 : vector<128x16xf32>
    %26 = tpu.concatenate %12, %25 in 1 : vector<128x16xf32>, vector<128x16xf32> -> vector<128x32xf32>
    %c0_14 = arith.constant 0 : index
    %c0_15 = arith.constant 0 : index
    %27 = vector.load %arg4[%c0_14, %c0_15] : memref<128x128xf32, #tpu.memory_space<vmem>>, vector<128x32xf32>
    tpu.vector_store %arg4[%c0_14, %c0_15], %26 {strides = array<i32>} : memref<128x128xf32, #tpu.memory_space<vmem>>, vector<128x32xf32>,
    %c128_16 = arith.constant 128 : index
    %c0_17 = arith.constant 0 : index
    %28 = vector.load %arg1[%c128_16, %c0_17] : memref<512x128xbf16, #tpu.memory_space<vmem>>, vector<128x128xbf16>
    %29 = arith.extf %28 : vector<128x128xbf16> to vector<128x128xf32>
    %c128_18 = arith.constant 128 : index
    %c0_19 = arith.constant 0 : index
    %30 = vector.load %arg2[%c128_18, %c0_19] : memref<512x128xbf16, #tpu.memory_space<vmem>>, vector<128x128xbf16>
    %31 = arith.extf %30 : vector<128x128xbf16> to vector<128x128xf32>
    %32 = arith.mulf %29, %31 : vector<128x128xf32>
    %cst_20 = arith.constant dense<0.000000e+00> : vector<128x48xf32>
    %33 = tpu.matmul %32, %0, %cst_20 {dimension_numbers = #tpu.dot_dimension_numbers<[1], [0], [0], [1], [0, 0, 1, 1], [], []>} : vector<128x128xf32>, vector<128x48xf32>, vector<128x48xf32> -> vector<128x48xf32>
    %34 = vector.extract_strided_slice %33 {offsets = [0, 0], sizes = [128, 16], strides = [1, 1]} : vector<128x48xf32> to vector<128x16xf32>
    %35 = vector.extract_strided_slice %33 {offsets = [0, 16], sizes = [128, 32], strides = [1, 1]} : vector<128x48xf32> to vector<128x32xf32>
    %36 = vector.broadcast %3 : vector<1x32xf32> to vector<128x32xf32>
    %37 = arith.addf %35, %36 : vector<128x32xf32>
    %cst_21 = arith.constant 0.000000e+00 : f32
    %38 = vector.broadcast %cst_21 : f32 to vector<128x32xf32>
    %39 = arith.maximumf %37, %38 : vector<128x32xf32>
    %cst_22 = arith.constant dense<0.000000e+00> : vector<128x32xf32>
    %40 = tpu.matmul %39, %1, %cst_22 {dimension_numbers = #tpu.dot_dimension_numbers<[1], [0], [0], [1], [0, 0, 1, 1], [], []>} : vector<128x32xf32>, vector<32x32xf32>, vector<128x32xf32> -> vector<128x32xf32>
    %41 = vector.broadcast %4 : vector<1x32xf32> to vector<128x32xf32>
    %42 = arith.addf %40, %41 : vector<128x32xf32>
    %cst_23 = arith.constant 0.000000e+00 : f32
    %43 = vector.broadcast %cst_23 : f32 to vector<128x32xf32>
    %44 = arith.maximumf %42, %43 : vector<128x32xf32>
    %cst_24 = arith.constant dense<0.000000e+00> : vector<128x16xf32>
    %45 = tpu.matmul %44, %2, %cst_24 {dimension_numbers = #tpu.dot_dimension_numbers<[1], [0], [0], [1], [0, 0, 1, 1], [], []>} : vector<128x32xf32>, vector<32x16xf32>, vector<128x16xf32> -> vector<128x16xf32>
    %46 = vector.broadcast %5 : vector<1x16xf32> to vector<128x16xf32>
    %47 = arith.addf %45, %46 : vector<128x16xf32>
    %48 = tpu.concatenate %34, %47 in 1 : vector<128x16xf32>, vector<128x16xf32> -> vector<128x32xf32>
    %c0_25 = arith.constant 0 : index
    %c32 = arith.constant 32 : index
    %49 = vector.load %arg4[%c0_25, %c32] : memref<128x128xf32, #tpu.memory_space<vmem>>, vector<128x32xf32>
    tpu.vector_store %arg4[%c0_25, %c32], %48 {strides = array<i32>} : memref<128x128xf32, #tpu.memory_space<vmem>>, vector<128x32xf32>,
    %c256 = arith.constant 256 : index
    %c0_26 = arith.constant 0 : index
    %50 = vector.load %arg1[%c256, %c0_26] : memref<512x128xbf16, #tpu.memory_space<vmem>>, vector<128x128xbf16>
    %51 = arith.extf %50 : vector<128x128xbf16> to vector<128x128xf32>
    %c256_27 = arith.constant 256 : index
    %c0_28 = arith.constant 0 : index
    %52 = vector.load %arg2[%c256_27, %c0_28] : memref<512x128xbf16, #tpu.memory_space<vmem>>, vector<128x128xbf16>
    %53 = arith.extf %52 : vector<128x128xbf16> to vector<128x128xf32>
    %54 = arith.mulf %51, %53 : vector<128x128xf32>
    %cst_29 = arith.constant dense<0.000000e+00> : vector<128x48xf32>
    %55 = tpu.matmul %54, %0, %cst_29 {dimension_numbers = #tpu.dot_dimension_numbers<[1], [0], [0], [1], [0, 0, 1, 1], [], []>} : vector<128x128xf32>, vector<128x48xf32>, vector<128x48xf32> -> vector<128x48xf32>
    %56 = vector.extract_strided_slice %55 {offsets = [0, 0], sizes = [128, 16], strides = [1, 1]} : vector<128x48xf32> to vector<128x16xf32>
    %57 = vector.extract_strided_slice %55 {offsets = [0, 16], sizes = [128, 32], strides = [1, 1]} : vector<128x48xf32> to vector<128x32xf32>
    %58 = vector.broadcast %3 : vector<1x32xf32> to vector<128x32xf32>
    %59 = arith.addf %57, %58 : vector<128x32xf32>
    %cst_30 = arith.constant 0.000000e+00 : f32
    %60 = vector.broadcast %cst_30 : f32 to vector<128x32xf32>
    %61 = arith.maximumf %59, %60 : vector<128x32xf32>
    %cst_31 = arith.constant dense<0.000000e+00> : vector<128x32xf32>
    %62 = tpu.matmul %61, %1, %cst_31 {dimension_numbers = #tpu.dot_dimension_numbers<[1], [0], [0], [1], [0, 0, 1, 1], [], []>} : vector<128x32xf32>, vector<32x32xf32>, vector<128x32xf32> -> vector<128x32xf32>
    %63 = vector.broadcast %4 : vector<1x32xf32> to vector<128x32xf32>
    %64 = arith.addf %62, %63 : vector<128x32xf32>
    %cst_32 = arith.constant 0.000000e+00 : f32
    %65 = vector.broadcast %cst_32 : f32 to vector<128x32xf32>
    %66 = arith.maximumf %64, %65 : vector<128x32xf32>
    %cst_33 = arith.constant dense<0.000000e+00> : vector<128x16xf32>
    %67 = tpu.matmul %66, %2, %cst_33 {dimension_numbers = #tpu.dot_dimension_numbers<[1], [0], [0], [1], [0, 0, 1, 1], [], []>} : vector<128x32xf32>, vector<32x16xf32>, vector<128x16xf32> -> vector<128x16xf32>
    %68 = vector.broadcast %5 : vector<1x16xf32> to vector<128x16xf32>
    %69 = arith.addf %67, %68 : vector<128x16xf32>
    %70 = tpu.concatenate %56, %69 in 1 : vector<128x16xf32>, vector<128x16xf32> -> vector<128x32xf32>
    %c0_34 = arith.constant 0 : index
    %c64 = arith.constant 64 : index
    %71 = vector.load %arg4[%c0_34, %c64] : memref<128x128xf32, #tpu.memory_space<vmem>>, vector<128x32xf32>
    tpu.vector_store %arg4[%c0_34, %c64], %70 {strides = array<i32>} : memref<128x128xf32, #tpu.memory_space<vmem>>, vector<128x32xf32>,
    %c384 = arith.constant 384 : index
    %c0_35 = arith.constant 0 : index
    %72 = vector.load %arg1[%c384, %c0_35] : memref<512x128xbf16, #tpu.memory_space<vmem>>, vector<128x128xbf16>
    %73 = arith.extf %72 : vector<128x128xbf16> to vector<128x128xf32>
    %c384_36 = arith.constant 384 : index
    %c0_37 = arith.constant 0 : index
    %74 = vector.load %arg2[%c384_36, %c0_37] : memref<512x128xbf16, #tpu.memory_space<vmem>>, vector<128x128xbf16>
    %75 = arith.extf %74 : vector<128x128xbf16> to vector<128x128xf32>
    %76 = arith.mulf %73, %75 : vector<128x128xf32>
    %cst_38 = arith.constant dense<0.000000e+00> : vector<128x48xf32>
    %77 = tpu.matmul %76, %0, %cst_38 {dimension_numbers = #tpu.dot_dimension_numbers<[1], [0], [0], [1], [0, 0, 1, 1], [], []>} : vector<128x128xf32>, vector<128x48xf32>, vector<128x48xf32> -> vector<128x48xf32>
    %78 = vector.extract_strided_slice %77 {offsets = [0, 0], sizes = [128, 16], strides = [1, 1]} : vector<128x48xf32> to vector<128x16xf32>
    %79 = vector.extract_strided_slice %77 {offsets = [0, 16], sizes = [128, 32], strides = [1, 1]} : vector<128x48xf32> to vector<128x32xf32>
    %80 = vector.broadcast %3 : vector<1x32xf32> to vector<128x32xf32>
    %81 = arith.addf %79, %80 : vector<128x32xf32>
    %cst_39 = arith.constant 0.000000e+00 : f32
    %82 = vector.broadcast %cst_39 : f32 to vector<128x32xf32>
    %83 = arith.maximumf %81, %82 : vector<128x32xf32>
    %cst_40 = arith.constant dense<0.000000e+00> : vector<128x32xf32>
    %84 = tpu.matmul %83, %1, %cst_40 {dimension_numbers = #tpu.dot_dimension_numbers<[1], [0], [0], [1], [0, 0, 1, 1], [], []>} : vector<128x32xf32>, vector<32x32xf32>, vector<128x32xf32> -> vector<128x32xf32>
    %85 = vector.broadcast %4 : vector<1x32xf32> to vector<128x32xf32>
    %86 = arith.addf %84, %85 : vector<128x32xf32>
    %cst_41 = arith.constant 0.000000e+00 : f32
    %87 = vector.broadcast %cst_41 : f32 to vector<128x32xf32>
    %88 = arith.maximumf %86, %87 : vector<128x32xf32>
    %cst_42 = arith.constant dense<0.000000e+00> : vector<128x16xf32>
    %89 = tpu.matmul %88, %2, %cst_42 {dimension_numbers = #tpu.dot_dimension_numbers<[1], [0], [0], [1], [0, 0, 1, 1], [], []>} : vector<128x32xf32>, vector<32x16xf32>, vector<128x16xf32> -> vector<128x16xf32>
    %90 = vector.broadcast %5 : vector<1x16xf32> to vector<128x16xf32>
    %91 = arith.addf %89, %90 : vector<128x16xf32>
    %92 = tpu.concatenate %78, %91 in 1 : vector<128x16xf32>, vector<128x16xf32> -> vector<128x32xf32>
    %c0_43 = arith.constant 0 : index
    %c96 = arith.constant 96 : index
    %93 = vector.load %arg4[%c0_43, %c96] : memref<128x128xf32, #tpu.memory_space<vmem>>, vector<128x32xf32>
    tpu.vector_store %arg4[%c0_43, %c96], %92 {strides = array<i32>} : memref<128x128xf32, #tpu.memory_space<vmem>>, vector<128x32xf32>,
    return
  }
  func.func @transform_0(%arg0: i32) -> (i32, i32) {
    %c0_i32 = arith.constant 0 : i32
    %c0_i32_0 = arith.constant 0 : i32
    return %arg0, %c0_i32 : i32, i32
  }
  func.func @transform_1(%arg0: i32) -> (i32, i32) {
    %c0_i32 = arith.constant 0 : i32
    %c0_i32_0 = arith.constant 0 : i32
    return %arg0, %c0_i32 : i32, i32
  }
  func.func @transform_2(%arg0: i32) -> (i32, i32) {
    %c0_i32 = arith.constant 0 : i32
    %c0_i32_0 = arith.constant 0 : i32
    %c0_i32_1 = arith.constant 0 : i32
    return %c0_i32, %c0_i32_0 : i32, i32
  }
  func.func @transform_3(%arg0: i32) -> (i32, i32) {
    %c0_i32 = arith.constant 0 : i32
    %c0_i32_0 = arith.constant 0 : i32
    return %arg0, %c0_i32 : i32, i32
  }
}

</mosaic_0001>

<bundles_post_ra>
// kernel: ngp_forward.1
= control target key start
LH: loop header
LB: loop body
LE: loop exit
PB: predicated region body
PF: predicated region fallthrough
CT: control target
= control target key end

     0   :  { %8 = vsyncpa [#allocation3], 0  ;;  %s7027_s0 = inlined_call_operand.hbm [shape: bf16[1024,128], index: 0, kind: input, shape index: {}]   ;;  %s7028_s1 = inlined_call_operand.hbm [shape: bf16[1024,128], index: 1, kind: input, shape index: {}]   ;;  %s7029_s2 = inlined_call_operand.hbm [shape: f32[200,128], index: 2, kind: input, shape index: {}]   ;;  %s7030_s3 = inlined_call_operand.hbm [shape: f32[256,128], index: 3, kind: output, shape index: {}]  }
   0x1   :  { %10 = vsyncpa [#allocation3 + $0x1], 0 }
   0x2   :  { %11 = vsyncpa [#allocation6], 0 }
   0x3   :  { %13 = vsyncpa [#allocation6 + $0x1], 0 }
   0x4   :  { %14 = vsyncpa [#allocation4], 0 }
   0x5   :  { %16 = vsyncpa [#allocation4 + $0x1], 0  ;;  %s5474_s12 = smov 0   ;;  %s5476_s13 = smov 0  }
   0x6   :  { %s5478_s14 = smov 0   ;;  %s5480_s15 = smov 0  }
   0x7 LB: > { %s5495_s16 = sadd.s32 4294967295, %s5437_s15   ;;  %s3753_s17 = sadd.s32 4294967294, %s5437_s15   ;;  %s5437_s15 = sphi %s5480_s15, %s7179_s15   ;;  %s5433_s14 = sphi %s5478_s14, %s7178_s14   ;;  %s5429_s13 = sphi %s5476_s13, %s7177_s13   ;;  %s5425_s12 = sphi %s5474_s12, %s7176_s12  }
   0x8   : > { %p42_p0 = scmp.ne.s32.totalorder %s5429_s13, %s5425_s12  ;;  %p7031_p1 = scmp.eq.s32.totalorder %s5495_s16, 0 }
   0x9   : > { %p119_p3 = scmp.eq.s32.totalorder %s3753_s17, 1  ;;  %p3754_p5 = scmp.ge.s32.totalorder %s5437_s15, 1 }
   0xa   : > { %p5504_p4 = por %p7031_p1, %p42_p0  ;;  %p126_p7 = scmp.lt.s32.totalorder %s5437_s15, 3 }
   0xb   : > { %p5509_p6 = por %p119_p3, %p42_p0  ;;  %s5439_s21 = smov [#allocation7]  }
   0xc   : > { %s7077_s18 = scalar_select %p5504_p4, 1, 0 }
   0xd   : > { %s7078_s19 = scalar_select %p5509_p6, 1, 0 }
   0xe   : > { %p5514_p8 = pnand %p3754_p5, %p126_p7  ;;  %s138_s22 = sshll.u32 %s5439_s21, 4  ;;  %s5518_s22 = int_to_ptr.vmem [resolvable:$true] %s138_s22 }
   0xf   : > { %s5530_s24 = sadd.s32 1, %s5437_s15   ;;  %s29_s25 = sadd.s32 1, %s5433_s14 }
  0x10   : > { %s7079_s20 = scalar_select %p5514_p8, 1, 0 }
  0x11   : > { %p5211_p9 = pneg %p5514_p8  ;;  %s26_s26 = ssub.s32 %s5437_s15, %s5530_s24 }
  0x12   : > { %s5275_s29 = scalar_lea.hbm %s7029_s2, 3200 }
  0x13   : > { %p5525_p11 = pnand %p5211_p9, %p7031_p1  ;;  %p5276_p12 = scmp.ne.s32.totalorder %s7029_s2, %s5275_s29 }
  0x14   : > { %p5282_p5 = scmp.lt.u32.totalorder %s5275_s29, %s7029_s2 }
  0x15   : > { %p5277_p13 = pneg %p5525_p11 }
  0x17   : > { %p5278_p0 = pnand %p5277_p13, %p5276_p12 }
  0x19   : > { %p5279_p3 = pneg %p5278_p0 }
  0x1b   : > { %p5284_p7 = pnand %p5282_p5, %p5279_p3 }
  0x1d   : > { %5287 = shalt.err (!%p5284_p7)
}
  0x1e   : > { %s5288_s7 = scalar_lea.vmem %s5518_s22, 3200  ;;  %p5296_p2 = scmp.lt.s32.totalorder %s5518_s22, %s5518_s22 }
  0x1f   : > { %p5289_p9 = scmp.ne.s32.totalorder %s5518_s22, %s5288_s7  ;;  %p5297_p6 = scmp.lt.s32.totalorder %s5288_s7, %s5288_s7 }
  0x21   : > { %p5291_p10 = pnand %p5289_p9, %p5277_p13  ;;  %p5298_p4 = por %p5297_p6, %p5296_p2 }
  0x23   : > { %p5292_p1 = pneg %p5291_p10 }
  0x25   : > { %p5299_p8 = pnand %p5298_p4, %p5292_p1 }
  0x27   : > { %5302 = shalt.err (!%p5299_p8)
}
  0x28   : > { %s5440_s8 = smov 128   ;;  %s5441_s9 = smov 8  }
  0x29   : > { %5214 = dma.hbm_to_vmem [thread:$0]  (!%p5525_p11), %s7029_s2, 3200, %s5518_s22, [#allocation6], %s5440_s8, %s5440_s8, %s5441_s9  }
  0x2a   : > { %p27_p1 = scmp.eq.s32.totalorder %s26_s26, 0  ;;  %p36_p2 = scmp.ne.s32.totalorder %s5433_s14, %s5429_s13 }
  0x2b   : > { %p37_p4 = scmp.eq.s32.totalorder %s5437_s15, 0  ;;  %p5227_p6 = scmp.lt.s32.totalorder %s5437_s15, 2 }
  0x2c   : > { %s5561_s17 = scalar_select %p27_p1, %s5433_s14, %s29_s25  }
  0x2d   : > { %p38_p8 = por %p37_p4, %p36_p2  ;;  %p7081_p10 = scmp.eq.s32.totalorder %s5495_s16, 1 }
  0x2e   : > { %s152_s27 = sand.u32 1, %s5433_s14   ;;  %s3904_s28 = sshll.u32 %s5437_s15, 12 }
  0x2f   : > { %p5565_p12 = por %p7081_p10, %p36_p2  ;;  %s5571_s29 = sshll.u32 %s152_s27, 8 }
  0x30   : > { %s5578_s22 = scalar_lea.hbm %s7027_s0, %s3904_s28  ;;  %s156_s25 = scalar_lea.vmem [#allocation2], %s5571_s29 }
  0x31   : > { %s163_s26 = sshll.u32 %s156_s25, 4  ;;  %p5581_p11 = pnand %p5227_p6, %p38_p8  ;;  %s5585_s26 = int_to_ptr.vmem [resolvable:$true] %s163_s26 }
  0x32   : > { %s5587_s5 = scalar_lea.sflag [#allocation3], %s152_s27  ;;  %s5303_s6 = scalar_lea.hbm %s5578_s22, 4096 }
  0x33   : > { %p5304_p13 = scmp.ne.s32.totalorder %s5578_s22, %s5303_s6  ;;  %p5305_p0 = pneg %p5581_p11 }
  0x34   : > { %s5308_s9 = scalar_lea.hbm %s7027_s0, 8192  ;;  %p5309_p7 = scmp.lt.u32.totalorder %s5578_s22, %s7027_s0 }
  0x35   : > { %p5306_p3 = pnand %p5305_p0, %p5304_p13  ;;  %p5310_p9 = scmp.lt.u32.totalorder %s5308_s9, %s5303_s6 }
  0x36   : > { %p5312_p2 = scmp.lt.u32.totalorder %s5303_s6, %s5578_s22 }
  0x37   : > { %p5307_p5 = pneg %p5306_p3  ;;  %p5311_p1 = por %p5310_p9, %p5309_p7 }
  0x39   : > { %p5313_p4 = por %p5312_p2, %p5311_p1 }
  0x3b   : > { %p5314_p6 = pnand %p5313_p4, %p5307_p5 }
  0x3d   : > { %5317 = shalt.err (!%p5314_p6)
}
  0x3e   : > { %s5318_s27 = scalar_lea.vmem %s5585_s26, 4096  ;;  %s5442_s23 = smov [#allocation2]  }
  0x3f   : > { %p5319_p8 = scmp.ne.s32.totalorder %s5585_s26, %s5318_s27  ;;  %s5323_s30 = sshll.u32 %s5442_s23, 4  ;;  %s5324_s30 = int_to_ptr.vmem [resolvable:$false] %s5323_s30 }
  0x40   : > { %s5325_s25 = scalar_lea.vmem %s5324_s30, 8192  ;;  %p5326_p3 = scmp.lt.s32.totalorder %s5585_s26, %s5324_s30 }
  0x41   : > { %p5321_p10 = pnand %p5319_p8, %p5305_p0  ;;  %p5327_p7 = scmp.lt.s32.totalorder %s5325_s25, %s5318_s27 }
  0x43   : > { %p5322_p13 = pneg %p5321_p10  ;;  %p5328_p9 = por %p5327_p7, %p5326_p3 }
  0x45   : > { %p5329_p1 = pnand %p5328_p9, %p5322_p13 }
  0x47   : > { %5332 = shalt.err (!%p5329_p1)
}
  0x48   : > { %s5443_s6 = smov 64   ;;  %s5444_s7 = smov 4  }
  0x49   : > { %5218 = dma.hbm_to_vmem [thread:$0]  (!%p5581_p11), %s5578_s22, 4096, %s5585_s26, %s5587_s5, %s5443_s6, %s5443_s6, %s5444_s7  }
  0x4a   : > { %s5623_s10 = scalar_lea.hbm %s7028_s1, %s3904_s28  ;;  %s177_s11 = scalar_lea.vmem [#allocation5], %s5571_s29 }
  0x4b   : > { %s184_s27 = sshll.u32 %s177_s11, 4  ;;  %s173_s23 = sand.u32 1, %s5437_s15   ;;  %s5627_s27 = int_to_ptr.vmem [resolvable:$true] %s184_s27 }
  0x4c   : > { %s5629_s30 = scalar_lea.sflag [#allocation6], %s173_s23  ;;  %s5333_s25 = scalar_lea.hbm %s5623_s10, 4096 }
  0x4d   : > { %p5334_p5 = scmp.ne.s32.totalorder %s5623_s10, %s5333_s25  ;;  %s5338_s26 = scalar_lea.hbm %s7028_s1, 8192 }
  0x4e   : > { %p5339_p6 = scmp.lt.u32.totalorder %s5623_s10, %s7028_s1  ;;  %p5340_p8 = scmp.lt.u32.totalorder %s5338_s26, %s5333_s25 }
  0x4f   : > { %p5336_p2 = pnand %p5334_p5, %p5305_p0  ;;  %p5342_p13 = scmp.lt.u32.totalorder %s5333_s25, %s5623_s10 }
  0x50   : > { %p5341_p10 = por %p5340_p8, %p5339_p6 }
  0x51   : > { %p5337_p4 = pneg %p5336_p2 }
  0x52   : > { %p5343_p3 = por %p5342_p13, %p5341_p10 }
  0x54   : > { %p5344_p7 = pnand %p5343_p3, %p5337_p4 }
  0x56   : > { %5347 = shalt.err (!%p5344_p7)
}
  0x57   : > { %s5348_s29 = scalar_lea.vmem %s5627_s27, 4096  ;;  %s5445_s9 = smov [#allocation5]  }
  0x58   : > { %p5349_p9 = scmp.ne.s32.totalorder %s5627_s27, %s5348_s29  ;;  %s5353_s11 = sshll.u32 %s5445_s9, 4  ;;  %s5354_s11 = int_to_ptr.vmem [resolvable:$false] %s5353_s11 }
  0x59   : > { %s5355_s23 = scalar_lea.vmem %s5354_s11, 8192  ;;  %p5356_p2 = scmp.lt.s32.totalorder %s5627_s27, %s5354_s11 }
  0x5a   : > { %p5351_p1 = pnand %p5349_p9, %p5305_p0  ;;  %p5357_p6 = scmp.lt.s32.totalorder %s5355_s23, %s5348_s29 }
  0x5c   : > { %p5352_p5 = pneg %p5351_p1  ;;  %p5358_p8 = por %p5357_p6, %p5356_p2 }
  0x5e   : > { %p5359_p10 = pnand %p5358_p8, %p5352_p5 }
  0x60   : > { %5362 = shalt.err (!%p5359_p10)
}
  0x61   : > { %5221 = dma.hbm_to_vmem [thread:$0]  (!%p5581_p11), %s5623_s10, 4096, %s5627_s27, %s5629_s30, %s5443_s6, %s5443_s6, %s5444_s7  }
  0x62   : > { %p7084_p0 = scmp.ne.s32.totalorder %s7079_s20, 0 }
  0x64   : > { %196 = sbr.rel (%p7084_p0) target bundleno = 2485 (0x9b5), region = 32 }
  0x6b   : > { %s5661_s25 = sand.u32 1, %s5429_s13   ;;  %p7085_p4 = scmp.ne.s32.totalorder %s7077_s18, 0 }
  0x6c   : > { %s3764_s22 = sshll.u32 %s5661_s25, 8  ;;  %s199_s28 = scalar_lea.sflag [#allocation3], %s5661_s25 }
  0x6d   : > { %s5665_s26 = scalar_lea.vmem [#allocation2], %s3764_s22 }
  0x6e   : > { %5408 = dma.done.wait (%p7085_p4), %s199_s28, 4096  }
  0x6f   : > { %5410 = vsyncadd (%p7085_p4), %s199_s28, 4294963200  ;;  %s207_s4 = sand.u32 1, %s5495_s16   ;;  %s5672_s6 = scalar_lea.vmem [#allocation5], %s3764_s22 }
  0x70   : > { %s208_s20 = scalar_lea.sflag [#allocation6], %s207_s4 }
  0x71   : > { %5412 = dma.done.wait (%p7085_p4), %s208_s20, 4096  }
  0x72   : > { %5414 = vsyncadd (%p7085_p4), %s208_s20, 4294963200  ;;  %p7086_p11 = scmp.eq.s32.totalorder %s5495_s16, 0 }
  0x74   : > { %5416 = dma.done.wait (%p7086_p11), [#allocation6], 3200   ;;  %p7087_p13 = pmov %p7086_p11 }
  0x75   : > { %v246_v0 = vld [vmem:[#allocation7] sm:$0xff]  ;;  %v247_v1 = vld [vmem:[#allocation7 + $0x8] sm:$0xff]  ;;  %v248_v2 = vld [vmem:[#allocation7 + $0x10] sm:$0xff]  ;;  %s5446_s18 = smov 16   ;;  %s5447_s7 = smov 112   ;;  %vm590_vm0 = vcmask 261120  }
  0x76   : > { %5418 = vsyncadd (%p7087_p13), [#allocation6], 4294964096  ;;  %v5682_v3 = vpack.c.bf16 %v247_v1, %v246_v0  ;;  %v249_v4 = vld [vmem:[#allocation7 + $0x18] sm:$0xff]  ;;  %v250_v6 = vld [vmem:[#allocation7 + $0x20] sm:$0xff]  ;;  %s3767_s10 = sshll.u32 %s5661_s25, 7  ;;  %vm1045_vm1 = vcmask 130048  }
  0x77   : > { %v5684_v5 = vpack.c.bf16 %v249_v4, %v248_v2  ;;  %v251_v7 = vld [vmem:[#allocation7 + $0x28] sm:$0xff]  ;;  %v3908_v9 = vld [vmem:[%s5665_s26] sm:$0xff]   ;;  %v252_v11 = vld [vmem:[#allocation7 + $0x30] sm:$0xff]  ;;  %s6534_s27 = scalar_lea.vmem [#allocation8], %s3767_s10  ;;  %s5448_s30 = smov 32   ;;  %vm1913_vm2 = vcmask 523520  }
  0x78   : > { %4994 = vmatprep.subr.bf16.mxu0 %v5682_v3  ;;  %v5689_v8 = vpack.c.bf16 %v251_v7, %v250_v6  ;;  %v3940_v10 = vld [vmem:[%s5672_s6] sm:$0xff]   ;;  %v253_v12 = vld [vmem:[#allocation7 + $0x38] sm:$0xff]  ;;  %v3909_v13 = vunpack.c.l.bf16 %v3908_v9  ;;  %v255_v18 = vld [vmem:[#allocation7 + $0x48] sm:$0xff]  ;;  %v3910_v32 = vunpack.c.h.bf16 %v3908_v9  ;;  %s5449_s5 = smov 64   ;;  %vm2765_vm3 = vcmask 785920   ;;  %s5450_s8 = smov 96  }
  0x79   : > { %4996 = vmatpush3.bf16.msra.mxu0 %v5682_v3  ;;  %v3941_v14 = vunpack.c.l.bf16 %v3940_v10  ;;  %v5695_v16 = vpack.c.bf16 %v253_v12, %v252_v11  ;;  %v254_v17 = vld [vmem:[#allocation7 + $0x40] sm:$0xff]  ;;  %v256_v20 = vld [vmem:[#allocation7 + $0x50] sm:$0xff]  ;;  %v257_v21 = vld [vmem:[#allocation7 + $0x58] sm:$0xff]  ;;  %v3942_v33 = vunpack.c.h.bf16 %v3940_v10  ;;  %vm3617_vm4 = vcmask 1048320   ;;  %s3906_s29 = sshll.u32 %s5495_s16, 11  ;;  %s3648_s9 = sshll.u32 %s6534_s27, 4  ;;  %s6979_s9 = int_to_ptr.vmem [resolvable:$true] %s3648_s9 }
  0x7a   : > { %4998 = vmatprep.subr.bf16.mxu0 %v5684_v5  ;;  %v5699_v19 = vpack.c.bf16 %v255_v18, %v254_v17  ;;  %v3768_v22 = vld [vmem:[#allocation7 + $0xc0] ss:$0 sm:$0xff]  ;;  %v5704_v23 = vpack.c.bf16 %v257_v21, %v256_v20  ;;  %v259_v25 = vld [vmem:[#allocation7 + $0x68] sm:$0xff]  ;;  %v260_v27 = vld [vmem:[#allocation7 + $0x70] sm:$0xff]  ;;  %s6977_s22 = scalar_lea.hbm %s7030_s3, %s3906_s29  ;;  %s3635_s16 = scalar_lea.sflag [#allocation4], %s5661_s25 }
  0x7b   : > { %v337_v15 = vmul.f32 %v3941_v14, %v3909_v13  ;;  %503 = vrot.lane.b32.xlu0 %v3768_v22, %s5446_s18  ;;  %v258_v24 = vld [vmem:[#allocation7 + $0x60] sm:$0xff]  ;;  %v261_v28 = vld [vmem:[#allocation7 + $0x78] sm:$0xff]  ;;  %v4163_v30 = vld [vmem:[%s5665_s26 + $0x8] sm:$0xff]   ;;  %v338_v38 = vmul.f32 %v3942_v33, %v3910_v32  ;;  %s5363_s28 = scalar_lea.vmem %s6979_s9, 2048 }
  0x7c   : > { %v5708_v26 = vpack.c.bf16 %v259_v25, %v258_v24  ;;  %v5712_v29 = vpack.c.bf16 %v261_v28, %v260_v27  ;;  %v4170_v31 = vld [vmem:[%s5672_s6 + $0x8] sm:$0xff]   ;;  %v3913_v34 = vunpack.c.l.bf16 %v4163_v30  ;;  %v4164_v36 = vld [vmem:[%s5665_s26 + $0x10] sm:$0xff]   ;;  %v3914_v39 = vunpack.c.h.bf16 %v4163_v30  ;;  %v4165_v44 = vld [vmem:[%s5665_s26 + $0x18] sm:$0xff]   ;;  %p5364_p3 = scmp.ne.s32.totalorder %s6979_s9, %s5363_s28 }
  0x7d   : > { %5000 = vmatpush3.bf16.msra.mxu0 %v5684_v5  ;;  %4545 = vmatprep.mubr.f32.mxu0 %v337_v15  ;;  %v3945_v35 = vunpack.c.l.bf16 %v4170_v31  ;;  %v4171_v37 = vld [vmem:[%s5672_s6 + $0x10] sm:$0xff]   ;;  %v3946_v40 = vunpack.c.h.bf16 %v4170_v31  ;;  %v3917_v42 = vunpack.c.l.bf16 %v4164_v36  ;;  %v4172_v45 = vld [vmem:[%s5672_s6 + $0x18] sm:$0xff]   ;;  %v3918_v47 = vunpack.c.h.bf16 %v4164_v36  ;;  %v4166_v52 = vld [vmem:[%s5665_s26 + $0x20] sm:$0xff]  }
  0x7e   : > { %5002 = vmatprep.subr.bf16.mxu0 %v5689_v8  ;;  %v3949_v43 = vunpack.c.l.bf16 %v4171_v37  ;;  %v3950_v48 = vunpack.c.h.bf16 %v4171_v37  ;;  %v3921_v50 = vunpack.c.l.bf16 %v4165_v44  ;;  %v3953_v51 = vunpack.c.l.bf16 %v4172_v45  ;;  %v4173_v53 = vld [vmem:[%s5672_s6 + $0x20] sm:$0xff]   ;;  %v4167_v60 = vld [vmem:[%s5665_s26 + $0x28] sm:$0xff]   ;;  %v4168_v6 = vld [vmem:[%s5665_s26 + $0x30] sm:$0xff]   ;;  %p5365_p7 = pnand %p5364_p3, %p5565_p12 }
  0x7f   : > { %v339_v41 = vmul.f32 %v3945_v35, %v3913_v34  ;;  %v340_v46 = vmul.f32 %v3946_v40, %v3914_v39  ;;  %v3922_v55 = vunpack.c.h.bf16 %v4165_v44  ;;  %v3954_v56 = vunpack.c.h.bf16 %v4172_v45  ;;  %v4174_v61 = vld [vmem:[%s5672_s6 + $0x28] sm:$0xff]   ;;  %v4175_v7 = vld [vmem:[%s5672_s6 + $0x30] sm:$0xff]   ;;  %v4169_v15 = vld [vmem:[%s5665_s26 + $0x38] sm:$0xff]  }
  0x80   : > { %v341_v49 = vmul.f32 %v3949_v43, %v3917_v42  ;;  %v342_v54 = vmul.f32 %v3950_v48, %v3918_v47  ;;  %v343_v57 = vmul.f32 %v3953_v51, %v3921_v50  ;;  %v3925_v58 = vunpack.c.l.bf16 %v4166_v52  ;;  %v4176_v17 = vld [vmem:[%s5672_s6 + $0x38] sm:$0xff]   ;;  %v4177_v27 = vld [vmem:[%s5665_s26 + $0x40] sm:$0xff]   ;;  %v4178_v36 = vld [vmem:[%s5665_s26 + $0x48] sm:$0xff]   ;;  %p5366_p9 = pneg %p5365_p7 }
  0x81   : > { %5004 = vmatpush3.bf16.msra.mxu0 %v5689_v8  ;;  %v3957_v59 = vunpack.c.l.bf16 %v4173_v53  ;;  %v344_v62 = vmul.f32 %v3954_v56, %v3922_v55  ;;  %v3926_v63 = vunpack.c.h.bf16 %v4166_v52  ;;  %v3958_v0 = vunpack.c.h.bf16 %v4173_v53  ;;  %v4185_v28 = vld [vmem:[%s5672_s6 + $0x40] sm:$0xff]   ;;  %v4186_v37 = vld [vmem:[%s5672_s6 + $0x48] sm:$0xff]   ;;  %v4179_v44 = vld [vmem:[%s5665_s26 + $0x50] sm:$0xff]  }
  0x82   : > { %5006 = vmatprep.subr.bf16.mxu0 %v5695_v16  ;;  %v3929_v2 = vunpack.c.l.bf16 %v4167_v60  ;;  %v3961_v4 = vunpack.c.l.bf16 %v4174_v61  ;;  %v3930_v10 = vunpack.c.h.bf16 %v4167_v60  ;;  %v3962_v11 = vunpack.c.h.bf16 %v4174_v61  ;;  %v4187_v45 = vld [vmem:[%s5672_s6 + $0x50] sm:$0xff]   ;;  %v4180_v52 = vld [vmem:[%s5665_s26 + $0x58] sm:$0xff]   ;;  %v4181_v60 = vld [vmem:[%s5665_s26 + $0x60] sm:$0xff]  }
  0x83   : > { %v345_v1 = vmul.f32 %v3957_v59, %v3925_v58  ;;  %v346_v9 = vmul.f32 %v3958_v0, %v3926_v63  ;;  %v3933_v13 = vunpack.c.l.bf16 %v4168_v6  ;;  %v3965_v14 = vunpack.c.l.bf16 %v4175_v7  ;;  %v4188_v53 = vld [vmem:[%s5672_s6 + $0x58] sm:$0xff]   ;;  %v4189_v61 = vld [vmem:[%s5672_s6 + $0x60] sm:$0xff]  }
  0x84   : > { %v347_v12 = vmul.f32 %v3961_v4, %v3929_v2  ;;  %v348_v18 = vmul.f32 %v3962_v11, %v3930_v10  ;;  %v3934_v20 = vunpack.c.h.bf16 %v4168_v6  ;;  %v3966_v21 = vunpack.c.h.bf16 %v4175_v7 }
  0x85   : > { %5008 = vmatpush3.bf16.msra.mxu0 %v5695_v16  ;;  %v349_v22 = vmul.f32 %v3965_v14, %v3933_v13  ;;  %v3937_v24 = vunpack.c.l.bf16 %v4169_v15  ;;  %v3969_v25 = vunpack.c.l.bf16 %v4176_v17  ;;  %v3938_v31 = vunpack.c.h.bf16 %v4169_v15  ;;  %v263_v13 = vld [vmem:[#allocation7 + $0x88] sm:$0xff]  ;;  %v264_v14 = vld [vmem:[#allocation7 + $0x90] sm:$0xff] }
  0x86   : > { %5010 = vmatprep.subr.bf16.mxu0 %v5699_v19  ;;  %v350_v30 = vmul.f32 %v3966_v21, %v3934_v20  ;;  %v3970_v32 = vunpack.c.h.bf16 %v4176_v17  ;;  %v3973_v34 = vunpack.c.l.bf16 %v4177_v27  ;;  %v4005_v35 = vunpack.c.l.bf16 %v4185_v28  ;;  %v265_v17 = vld [vmem:[#allocation7 + $0x98] sm:$0xff] }
  0x87   : > { %v351_v33 = vmul.f32 %v3969_v25, %v3937_v24  ;;  %v3974_v39 = vunpack.c.h.bf16 %v4177_v27  ;;  %v4006_v40 = vunpack.c.h.bf16 %v4185_v28  ;;  %v3977_v42 = vunpack.c.l.bf16 %v4178_v36 }
  0x88   : > { %v4009_v43 = vunpack.c.l.bf16 %v4186_v37  ;;  %v3978_v47 = vunpack.c.h.bf16 %v4178_v36  ;;  %v4010_v48 = vunpack.c.h.bf16 %v4186_v37  ;;  %v3981_v50 = vunpack.c.l.bf16 %v4179_v44 }
  0x89   : > { %5012 = vmatpush3.bf16.msra.mxu0 %v5699_v19  ;;  %v4013_v51 = vunpack.c.l.bf16 %v4187_v45  ;;  %v3982_v55 = vunpack.c.h.bf16 %v4179_v44  ;;  %v4014_v56 = vunpack.c.h.bf16 %v4187_v45  ;;  %v3985_v58 = vunpack.c.l.bf16 %v4180_v52 }
  0x8a   : > { %5014 = vmatprep.subr.bf16.mxu0 %v5704_v23  ;;  %v4017_v59 = vunpack.c.l.bf16 %v4188_v53  ;;  %v3986_v63 = vunpack.c.h.bf16 %v4180_v52  ;;  %v4018_v0 = vunpack.c.h.bf16 %v4188_v53  ;;  %v3989_v2 = vunpack.c.l.bf16 %v4181_v60 }
  0x8b   : > { %v4021_v4 = vunpack.c.l.bf16 %v4189_v61  ;;  %v3990_v7 = vunpack.c.h.bf16 %v4181_v60 }
  0x8c   : > { %v1149_v6 = vmul.f32 %v4018_v0, %v3986_v63 }
  0x8d   : > { %5016 = vmatpush3.bf16.msra.mxu0 %v5704_v23  ;;  %v1150_v10 = vmul.f32 %v4021_v4, %v3989_v2 }
  0x8e   : > { %5018 = vmatprep.subr.bf16.mxu0 %v5708_v26 }
  0x91   : > { %5020 = vmatpush3.bf16.msra.mxu0 %v5708_v26 }
  0x92   : > { %5022 = vmatprep.subr.bf16.mxu0 %v5712_v29 }
  0x95   : > { %5024 = vmatpush3.bf16.msra.mxu0 %v5712_v29 }
  0x96   : > { %5042 = vmatprep.subr.bf16.mxu0 %v5682_v3 }
  0x98   : > { %4546 = vmatmul.mubr.f32.vlgmr.msra.gmra.mrb[0].mxu0 %v338_v38  ;;  %v352_v38 = vmul.f32 %v3970_v32, %v3938_v31 }
  0x99   : > { %5044 = vmatpush3.bf16.msra.mxu0 %v5682_v3  ;;  %4548 = vmatprep.mubr.f32.mxu0 %v339_v41  ;;  %v1142_v41 = vmul.f32 %v4005_v35, %v3973_v34 }
  0x9a   : > { %5046 = vmatprep.subr.bf16.mxu0 %v5684_v5 }
  0x9c   : > { %4549 = vmatmul.mubr.f32.gmra.mrb[2].mxu0 %v340_v46  ;;  %v1143_v46 = vmul.f32 %v4006_v40, %v3974_v39 }
  0x9d   : > { %5048 = vmatpush3.bf16.msra.mxu0 %v5684_v5  ;;  %4551 = vmatprep.mubr.f32.mxu0 %v341_v49  ;;  %v1144_v49 = vmul.f32 %v4009_v43, %v3977_v42 }
  0x9e   : > { %5050 = vmatprep.subr.bf16.mxu0 %v5689_v8 }
  0xa0   : > { %4552 = vmatmul.mubr.f32.gmra.mrb[4].mxu0 %v342_v54  ;;  %v1145_v54 = vmul.f32 %v4010_v48, %v3978_v47 }
  0xa1   : > { %5052 = vmatpush3.bf16.msra.mxu0 %v5689_v8  ;;  %4554 = vmatprep.mubr.f32.mxu0 %v343_v57  ;;  %v1146_v57 = vmul.f32 %v4013_v51, %v3981_v50 }
  0xa2   : > { %5054 = vmatprep.subr.bf16.mxu0 %v5695_v16 }
  0xa4   : > { %4555 = vmatmul.mubr.f32.gmra.mrb[6].mxu0 %v344_v62  ;;  %v1147_v62 = vmul.f32 %v4014_v56, %v3982_v55 }
  0xa5   : > { %5056 = vmatpush3.bf16.msra.mxu0 %v5695_v16  ;;  %4557 = vmatprep.mubr.f32.mxu0 %v345_v1  ;;  %v1148_v1 = vmul.f32 %v4017_v59, %v3985_v58 }
  0xa6   : > { %5058 = vmatprep.subr.bf16.mxu0 %v5699_v19 }
  0xa8   : > { %4558 = vmatmul.mubr.f32.gmra.mrb[8].mxu0 %v346_v9  ;;  %v4022_v9 = vunpack.c.h.bf16 %v4189_v61 }
  0xa9   : > { %5060 = vmatpush3.bf16.msra.mxu0 %v5699_v19  ;;  %4560 = vmatprep.mubr.f32.mxu0 %v347_v12  ;;  %v262_v12 = vld [vmem:[#allocation7 + $0x80] sm:$0xff] }
  0xaa   : > { %5062 = vmatprep.subr.bf16.mxu0 %v5704_v23  ;;  %v1151_v11 = vmul.f32 %v4022_v9, %v3990_v7  ;;  %v5757_v15 = vpack.c.bf16 %v263_v13, %v262_v12 }
  0xac   : > { %4561 = vmatmul.mubr.f32.gmra.mrb[10].mxu0 %v348_v18  ;;  %v5759_v18 = vpack.c.bf16 %v265_v17, %v264_v14  ;;  %5026 = vmatprep.subr.bf16.mxu1 %v5757_v15 }
  0xad   : > { %5064 = vmatpush3.bf16.msra.mxu0 %v5704_v23  ;;  %4563 = vmatprep.mubr.f32.mxu0 %v349_v22 }
  0xae   : > { %5066 = vmatprep.subr.bf16.mxu0 %v5708_v26  ;;  %5028 = vmatpush3.bf16.msra.mxu1 %v5757_v15 }
  0xaf   : > { %5030 = vmatprep.subr.bf16.mxu1 %v5759_v18 }
  0xb0   : > { %4564 = vmatmul.mubr.f32.gmra.mrb[12].mxu0 %v350_v30 }
  0xb1   : > { %5068 = vmatpush3.bf16.msra.mxu0 %v5708_v26  ;;  %4566 = vmatprep.mubr.f32.mxu0 %v351_v33 }
  0xb2   : > { %5070 = vmatprep.subr.bf16.mxu0 %v5712_v29  ;;  %5032 = vmatpush3.bf16.msra.mxu1 %v5759_v18 }
  0xb4   : > { %4567 = vmatmul.mubr.f32.gmra.mrb[14].mxu0 %v352_v38 }
  0xb5   : > { %5072 = vmatpush3.bf16.msra.mxu0 %v5712_v29  ;;  %4665 = vmatprep.mubr.f32.mxu0 %v1142_v41 }
  0xb8   : > { %4666 = vmatmul.mubr.f32.vlgmr.msra.gmra.mrb[16].mxu0 %v1143_v46 }
  0xb9   : > { %4668 = vmatprep.mubr.f32.mxu0 %v1144_v49 }
  0xbc   : > { %4669 = vmatmul.mubr.f32.gmra.mrb[18].mxu0 %v1145_v54 }
  0xbd   : > { %4671 = vmatprep.mubr.f32.mxu0 %v1146_v57 }
  0xc0   : > { %4672 = vmatmul.mubr.f32.gmra.mrb[20].mxu0 %v1147_v62 }
  0xc1   : > { %4674 = vmatprep.mubr.f32.mxu0 %v1148_v1 }
  0xc4   : > { %4675 = vmatmul.mubr.f32.gmra.mrb[22].mxu0 %v1149_v6 }
  0xc5   : > { %4677 = vmatprep.mubr.f32.mxu0 %v1150_v10 }
  0xc8   : > { %4678 = vmatmul.mubr.f32.gmra.mrb[24].mxu0 %v1151_v11 }
  0xed   : > { %v5765_v20 = vpop.permute.xlu0 %503 }
 0x16b   : > { %v5767_v21 = vpop.f32.mrb[0].mxu0 }
 0x16c   : > { %v507_v22 = vadd.f32 %v5767_v21, %v5765_v20  ;;  %v5771_v24 = vpop.f32.mrb[1].mxu0 }
 0x16d   : > { %v506_v25 = vadd.f32 %v5765_v20, %v5771_v24 }
 0x16e   : > { %v523_v27 = vmax.f32 %v507_v22, 0.0 }
 0x16f   : > { %v522_v28 = vmax.f32 %v506_v25, 0.0  ;;  %v5775_v30 = vpop.f32.mrb[2].mxu0 }
 0x170   : > { %v509_v31 = vadd.f32 %v5775_v30, %v5765_v20  ;;  %560 = vrot.lane.b32.xlu1 %v523_v27, %s5447_s7  ;;  %v5780_v32 = vpop.f32.mrb[3].mxu0 }
 0x171   : > { %v508_v33 = vadd.f32 %v5765_v20, %v5780_v32  ;;  %558 = vrot.lane.b32.xlu0 %v522_v28, %s5447_s7 }
 0x172   : > { %v525_v34 = vmax.f32 %v509_v31, 0.0 }
 0x173   : > { %v524_v35 = vmax.f32 %v508_v33, 0.0  ;;  %v5785_v36 = vpop.f32.mrb[4].mxu0 }
 0x174   : > { %v511_v37 = vadd.f32 %v5785_v36, %v5765_v20  ;;  %v5789_v38 = vpop.f32.mrb[5].mxu0 }
 0x175   : > { %v510_v39 = vadd.f32 %v5765_v20, %v5789_v38  ;;  %564 = vrot.lane.b32.xlu0 %v525_v34, %s5447_s7  ;;  %562 = vrot.lane.b32.xlu1 %v524_v35, %s5447_s7 }
 0x176   : > { %v527_v40 = vmax.f32 %v511_v37, 0.0  ;;  %v266_v37 = vld [vmem:[#allocation7 + $0xa0] sm:$0xff] }
 0x177   : > { %v526_v41 = vmax.f32 %v510_v39, 0.0  ;;  %v5795_v42 = vpop.f32.mrb[6].mxu0  ;;  %v267_v39 = vld [vmem:[#allocation7 + $0xa8] sm:$0xff] }
 0x178   : > { %v513_v43 = vadd.f32 %v5795_v42, %v5765_v20  ;;  %v5799_v44 = vpop.f32.mrb[7].mxu0 }
 0x179   : > { %v512_v45 = vadd.f32 %v5765_v20, %v5799_v44  ;;  %568 = vrot.lane.b32.xlu0 %v527_v40, %s5447_s7  ;;  %566 = vrot.lane.b32.xlu1 %v526_v41, %s5447_s7  ;;  %v268_v40 = vld [vmem:[#allocation7 + $0xb0] sm:$0xff] }
 0x17a   : > { %v529_v46 = vmax.f32 %v513_v43, 0.0 }
 0x17b   : > { %v528_v47 = vmax.f32 %v512_v45, 0.0  ;;  %v5805_v48 = vpop.f32.mrb[8].mxu0  ;;  %v5871_v45 = vpack.c.bf16 %v267_v39, %v266_v37 }
 0x17c   : > { %v515_v49 = vadd.f32 %v5805_v48, %v5765_v20  ;;  %v5809_v50 = vpop.f32.mrb[9].mxu0 }
 0x17d   : > { %7088 = vst [vmem:[#allocation13_spill] sm:$0xff] %v5809_v50  ;;  %v514_v51 = vadd.f32 %v5765_v20, %v5809_v50  ;;  %572 = vrot.lane.b32.xlu0 %v529_v46, %s5447_s7  ;;  %570 = vrot.lane.b32.xlu1 %v528_v47, %s5447_s7  ;;  %v269_v46 = vld [vmem:[#allocation7 + $0xb8] sm:$0xff] }
 0x17e   : > { %v531_v52 = vmax.f32 %v515_v49, 0.0  ;;  %5034 = vmatprep.subr.bf16.mxu1 %v5871_v45  ;;  %5082 = vmatprep.subr.bf16.mxu0 %v5871_v45 }
 0x17f   : > { %v530_v53 = vmax.f32 %v514_v51, 0.0  ;;  %v5815_v54 = vpop.f32.mrb[10].mxu0  ;;  %v5878_v51 = vpack.c.bf16 %v269_v46, %v268_v40  ;;  %5084 = vmatpush3.bf16.msra.mxu0 %v5871_v45 }
 0x180   : > { %7089 = vst [vmem:[#allocation14_spill] sm:$0xff] %v5815_v54  ;;  %v517_v55 = vadd.f32 %v5815_v54, %v5765_v20  ;;  %v5819_v56 = vpop.f32.mrb[11].mxu0 }
 0x181   : > { %7090 = vst [vmem:[#allocation15_spill] sm:$0xff] %v5819_v56  ;;  %v516_v57 = vadd.f32 %v5765_v20, %v5819_v56  ;;  %576 = vrot.lane.b32.xlu0 %v531_v52, %s5447_s7  ;;  %574 = vrot.lane.b32.xlu1 %v530_v53, %s5447_s7 }
 0x182   : > { %v533_v58 = vmax.f32 %v517_v55, 0.0  ;;  %5086 = vmatprep.subr.bf16.mxu0 %v5878_v51 }
 0x183   : > { %v532_v59 = vmax.f32 %v516_v57, 0.0  ;;  %v5825_v60 = vpop.f32.mrb[12].mxu0  ;;  %5088 = vmatpush3.bf16.msra.mxu0 %v5878_v51 }
 0x184   : > { %7091 = vst [vmem:[#allocation16_spill] sm:$0xff] %v5825_v60  ;;  %v519_v61 = vadd.f32 %v5825_v60, %v5765_v20  ;;  %v5829_v62 = vpop.f32.mrb[13].mxu0  ;;  %5122 = vmatprep.subr.bf16.mxu0 %v5757_v15 }
 0x185   : > { %7092 = vst [vmem:[#allocation17_spill] sm:$0xff] %v5829_v62  ;;  %v518_v63 = vadd.f32 %v5765_v20, %v5829_v62  ;;  %580 = vrot.lane.b32.xlu0 %v533_v58, %s5447_s7  ;;  %578 = vrot.lane.b32.xlu1 %v532_v59, %s5447_s7 }
 0x186   : > { %v535_v0 = vmax.f32 %v519_v61, 0.0 }
 0x187   : > { %v534_v1 = vmax.f32 %v518_v63, 0.0  ;;  %v5835_v2 = vpop.f32.mrb[14].mxu0 }
 0x188   : > { %7093 = vst [vmem:[#allocation18_spill] sm:$0xff] %v5835_v2  ;;  %v521_v4 = vadd.f32 %v5835_v2, %v5765_v20  ;;  %v5839_v6 = vpop.f32.mrb[15].mxu0 }
 0x189   : > { %7094 = vst [vmem:[#allocation19_spill] sm:$0xff] %v5839_v6  ;;  %v520_v7 = vadd.f32 %v5765_v20, %v5839_v6  ;;  %584 = vrot.lane.b32.xlu0 %v535_v0, %s5447_s7  ;;  %582 = vrot.lane.b32.xlu1 %v534_v1, %s5447_s7 }
 0x18a   : > { %v537_v9 = vmax.f32 %v521_v4, 0.0 }
 0x18b   : > { %v536_v10 = vmax.f32 %v520_v7, 0.0  ;;  %v5845_v11 = vpop.f32.mrb[16].mxu0 }
 0x18c   : > { %7095 = vst [vmem:[#allocation20_spill] sm:$0xff] %v5845_v11  ;;  %v1304_v12 = vadd.f32 %v5845_v11, %v5765_v20  ;;  %v5849_v13 = vpop.f32.mrb[17].mxu0 }
 0x18d   : > { %7096 = vst [vmem:[#allocation21_spill] sm:$0xff] %v5849_v13  ;;  %v1303_v14 = vadd.f32 %v5849_v13, %v5765_v20  ;;  %588 = vrot.lane.b32.xlu0 %v537_v9, %s5447_s7  ;;  %586 = vrot.lane.b32.xlu1 %v536_v10, %s5447_s7 }
 0x18e   : > { %v1320_v17 = vmax.f32 %v1304_v12, 0.0 }
 0x18f   : > { %v1319_v22 = vmax.f32 %v1303_v14, 0.0  ;;  %v5855_v25 = vpop.f32.mrb[18].mxu0 }
 0x190   : > { %7097 = vst [vmem:[#allocation22_spill] sm:$0xff] %v5855_v25  ;;  %v1306_v27 = vadd.f32 %v5855_v25, %v5765_v20  ;;  %v5859_v28 = vpop.f32.mrb[19].mxu0  ;;  %v4203_v25 = vld [vmem:[%s5672_s6 + $0x90] sm:$0xff]  }
 0x191   : > { %7098 = vst [vmem:[#allocation23_spill] sm:$0xff] %v5859_v28  ;;  %v1305_v31 = vadd.f32 %v5859_v28, %v5765_v20  ;;  %1353 = vrot.lane.b32.xlu0 %v1320_v17, %s5447_s7  ;;  %1351 = vrot.lane.b32.xlu1 %v1319_v22, %s5447_s7  ;;  %v4078_v60 = vunpack.c.h.bf16 %v4203_v25 }
 0x192   : > { %v1322_v33 = vmax.f32 %v1306_v27, 0.0 }
 0x193   : > { %v1321_v34 = vmax.f32 %v1305_v31, 0.0  ;;  %v5865_v35 = vpop.f32.mrb[20].mxu0 }
 0x194   : > { %7099 = vst [vmem:[#allocation24_spill] sm:$0xff] %v5865_v35  ;;  %v1308_v41 = vadd.f32 %v5865_v35, %v5765_v20  ;;  %v5869_v43 = vpop.f32.mrb[21].mxu0 }
 0x195   : > { %7100 = vst [vmem:[#allocation25_spill] sm:$0xff] %v5869_v43  ;;  %v1307_v47 = vadd.f32 %v5869_v43, %v5765_v20  ;;  %1357 = vrot.lane.b32.xlu0 %v1322_v33, %s5447_s7  ;;  %1355 = vrot.lane.b32.xlu1 %v1321_v34, %s5447_s7 }
 0x196   : > { %v1324_v49 = vmax.f32 %v1308_v41, 0.0 }
 0x197   : > { %v1323_v52 = vmax.f32 %v1307_v47, 0.0  ;;  %v5881_v53 = vpop.f32.mrb[22].mxu0 }
 0x198   : > { %7101 = vst [vmem:[#allocation26_spill] sm:$0xff] %v5881_v53  ;;  %v1310_v55 = vadd.f32 %v5881_v53, %v5765_v20  ;;  %v5886_v57 = vpop.f32.mrb[23].mxu0 }
 0x199   : > { %7102 = vst [vmem:[#allocation27_spill] sm:$0xff] %v5886_v57  ;;  %v1309_v58 = vadd.f32 %v5886_v57, %v5765_v20  ;;  %1361 = vrot.lane.b32.xlu0 %v1324_v49, %s5447_s7  ;;  %1359 = vrot.lane.b32.xlu1 %v1323_v52, %s5447_s7  ;;  %v5927_v52 = vld [vmem:[#allocation7 + $0xc1] ss:$0 sm:$0xff] }
 0x19a   : > { %v1326_v59 = vmax.f32 %v1310_v55, 0.0 }
 0x19b   : > { %v1325_v61 = vmax.f32 %v1309_v58, 0.0  ;;  %v5893_v63 = vpop.f32.mrb[24].mxu0 }
 0x19c   : > { %7103 = vst [vmem:[#allocation28_spill] sm:$0xff] %v5893_v63  ;;  %v1312_v0 = vadd.f32 %v5893_v63, %v5765_v20  ;;  %v5898_v1 = vpop.f32.mrb[25].mxu0 }
 0x19d   : > { %7104 = vst [vmem:[#allocation29_spill] sm:$0xff] %v5898_v1  ;;  %v1311_v4 = vadd.f32 %v5898_v1, %v5765_v20  ;;  %1365 = vrot.lane.b32.xlu0 %v1326_v59, %s5447_s7  ;;  %1363 = vrot.lane.b32.xlu1 %v1325_v61, %s5447_s7 }
 0x19e   : > { %v1328_v7 = vmax.f32 %v1312_v0, 0.0 }
 0x19f   : > { %v1327_v9 = vmax.f32 %v1311_v4, 0.0 }
 0x1a1   : > { %1369 = vrot.lane.b32.xlu0 %v1328_v7, %s5447_s7  ;;  %1367 = vrot.lane.b32.xlu1 %v1327_v9, %s5447_s7 }
 0x1e2   : > { %v561_v10 = vpop.permute.xlu1 %560 }
 0x1e3   : > { %v559_v12 = vpop.permute.xlu0 %558 }
 0x1e4   : > { %4577 = vmatprep.mubr.msk.f32.mxu1 %vm590_vm0, %v559_v12 }
 0x1e5   : > { %4578 = vmatmul.mubr.msk.f32.vlgmr.msra.gmra.mrb[0].mxu1 %vm590_vm0, %v561_v10 }
 0x1e6   : > { %5036 = vmatpush3.bf16.msra.mxu1 %v5871_v45 }
 0x1e7   : > { %v565_v14 = vpop.permute.xlu0 %564  ;;  %v563_v17 = vpop.permute.xlu1 %562  ;;  %5038 = vmatprep.subr.bf16.mxu1 %v5878_v51 }
 0x1e8   : > { %4580 = vmatprep.mubr.msk.f32.mxu1 %vm590_vm0, %v563_v17 }
 0x1e9   : > { %4581 = vmatmul.mubr.msk.f32.gmra.mrb[2].mxu1 %vm590_vm0, %v565_v14 }
 0x1ea   : > { %5040 = vmatpush3.bf16.msra.mxu1 %v5878_v51 }
 0x1eb   : > { %v569_v22 = vpop.permute.xlu0 %568  ;;  %v567_v27 = vpop.permute.xlu1 %566  ;;  %5185 = vmatprep.subr.bf16.mxu1 %v5682_v3 }
 0x1ec   : > { %4583 = vmatprep.mubr.msk.f32.mxu1 %vm590_vm0, %v567_v27 }
 0x1ed   : > { %4584 = vmatmul.mubr.msk.f32.gmra.mrb[4].mxu1 %vm590_vm0, %v569_v22 }
 0x1ef   : > { %v573_v31 = vpop.permute.xlu0 %572  ;;  %v571_v33 = vpop.permute.xlu1 %570 }
 0x1f0   : > { %4586 = vmatprep.mubr.msk.f32.mxu1 %vm590_vm0, %v571_v33 }
 0x1f1   : > { %4587 = vmatmul.mubr.msk.f32.gmra.mrb[6].mxu1 %vm590_vm0, %v573_v31 }
 0x1f3   : > { %v577_v34 = vpop.permute.xlu0 %576  ;;  %v575_v37 = vpop.permute.xlu1 %574 }
 0x1f4   : > { %4589 = vmatprep.mubr.msk.f32.mxu1 %vm590_vm0, %v575_v37 }
 0x1f5   : > { %4590 = vmatmul.mubr.msk.f32.gmra.mrb[8].mxu1 %vm590_vm0, %v577_v34 }
 0x1f7   : > { %v581_v39 = vpop.permute.xlu0 %580  ;;  %v579_v40 = vpop.permute.xlu1 %578 }
 0x1f8   : > { %4592 = vmatprep.mubr.msk.f32.mxu1 %vm590_vm0, %v579_v40 }
 0x1f9   : > { %4593 = vmatmul.mubr.msk.f32.gmra.mrb[10].mxu1 %vm590_vm0, %v581_v39 }
 0x1fb   : > { %v585_v41 = vpop.permute.xlu0 %584  ;;  %v583_v46 = vpop.permute.xlu1 %582 }
 0x1fc   : > { %4595 = vmatprep.mubr.msk.f32.mxu1 %vm590_vm0, %v583_v46 }
 0x1fd   : > { %4596 = vmatmul.mubr.msk.f32.gmra.mrb[12].mxu1 %vm590_vm0, %v585_v41 }
 0x1ff   : > { %v589_v47 = vpop.permute.xlu0 %588  ;;  %v587_v49 = vpop.permute.xlu1 %586 }
 0x200   : > { %4598 = vmatprep.mubr.msk.f32.mxu1 %vm590_vm0, %v587_v49 }
 0x201   : > { %4599 = vmatmul.mubr.msk.f32.gmra.mrb[14].mxu1 %vm590_vm0, %v589_v47 }
 0x2b8   : > { %v4579_v55 = vpop.f32.mrb[0].mxu1 }
 0x2b9   : > { %v695_v58 = vadd.f32 %v4579_v55, %v5927_v52  ;;  %v689_v59 = vpop.f32.mrb[1].mxu1 }
 0x2ba   : > { %v690_v61 = vadd.f32 %v5927_v52, %v689_v59 }
 0x2bb   : > { %v769_v7 = vmax.f32 %v695_v58, 0.0 }
 0x2bc   : > { %v768_v0 = vmax.f32 %v690_v61, 0.0  ;;  %v4582_v4 = vpop.f32.mrb[2].mxu1 }
 0x2bd   : > { %v705_v9 = vadd.f32 %v4582_v4, %v5927_v52  ;;  %v699_v10 = vpop.f32.mrb[3].mxu1 }
 0x2be   : > { %v700_v12 = vadd.f32 %v5927_v52, %v699_v10  ;;  %4609 = vmatprep.mubr.msk.f32.mxu1 %vm590_vm0, %v768_v0 }
 0x2bf   : > { %4610 = vmatmul.mubr.msk.f32.vlgmr.msra.gmra.mrb[16].mxu1 %vm590_vm0, %v769_v7  ;;  %v771_v22 = vmax.f32 %v705_v9, 0.0 }
 0x2c0   : > { %v770_v14 = vmax.f32 %v700_v12, 0.0  ;;  %5193 = vmatpush3.bf16.msra.mxu1 %v5682_v3  ;;  %v4585_v17 = vpop.f32.mrb[4].mxu1 }
 0x2c1   : > { %v715_v27 = vadd.f32 %v4585_v17, %v5927_v52  ;;  %v709_v31 = vpop.f32.mrb[5].mxu1  ;;  %5186 = vmatprep.subr.bf16.mxu1 %v5684_v5 }
 0x2c2   : > { %v710_v33 = vadd.f32 %v5927_v52, %v709_v31  ;;  %4612 = vmatprep.mubr.msk.f32.mxu1 %vm590_vm0, %v770_v14 }
 0x2c3   : > { %4613 = vmatmul.mubr.msk.f32.gmra.mrb[18].mxu1 %vm590_vm0, %v771_v22  ;;  %v773_v39 = vmax.f32 %v715_v27, 0.0 }
 0x2c4   : > { %v772_v34 = vmax.f32 %v710_v33, 0.0  ;;  %5194 = vmatpush3.bf16.msra.mxu1 %v5684_v5  ;;  %v4588_v37 = vpop.f32.mrb[6].mxu1  ;;  %v4182_v33 = vld [vmem:[%s5665_s26 + $0x68] sm:$0xff]  }
 0x2c5   : > { %v725_v40 = vadd.f32 %v4588_v37, %v5927_v52  ;;  %v719_v41 = vpop.f32.mrb[7].mxu1  ;;  %5187 = vmatprep.subr.bf16.mxu1 %v5689_v8 }
 0x2c6   : > { %v720_v46 = vadd.f32 %v5927_v52, %v719_v41  ;;  %4615 = vmatprep.mubr.msk.f32.mxu1 %vm590_vm0, %v772_v34  ;;  %v4190_v34 = vld [vmem:[%s5672_s6 + $0x68] sm:$0xff]   ;;  %v3993_v41 = vunpack.c.l.bf16 %v4182_v33 }
 0x2c7   : > { %4616 = vmatmul.mubr.msk.f32.gmra.mrb[20].mxu1 %vm590_vm0, %v773_v39  ;;  %v775_v55 = vmax.f32 %v725_v40, 0.0 }
 0x2c8   : > { %v774_v47 = vmax.f32 %v720_v46, 0.0  ;;  %5195 = vmatpush3.bf16.msra.mxu1 %v5689_v8  ;;  %v4591_v49 = vpop.f32.mrb[8].mxu1  ;;  %v4025_v46 = vunpack.c.l.bf16 %v4190_v34 }
 0x2c9   : > { %v735_v58 = vadd.f32 %v4591_v49, %v5927_v52  ;;  %v729_v59 = vpop.f32.mrb[9].mxu1  ;;  %5188 = vmatprep.subr.bf16.mxu1 %v5695_v16 }
 0x2ca   : > { %v730_v61 = vadd.f32 %v5927_v52, %v729_v59  ;;  %4618 = vmatprep.mubr.msk.f32.mxu1 %vm590_vm0, %v774_v47  ;;  %v4191_v59 = vld [vmem:[%s5672_s6 + $0x70] sm:$0xff]  }
 0x2cb   : > { %4619 = vmatmul.mubr.msk.f32.gmra.mrb[22].mxu1 %vm590_vm0, %v775_v55  ;;  %v777_v7 = vmax.f32 %v735_v58, 0.0  ;;  %v4183_v58 = vld [vmem:[%s5665_s26 + $0x70] sm:$0xff]  }
 0x2cc   : > { %v776_v0 = vmax.f32 %v730_v61, 0.0  ;;  %5196 = vmatpush3.bf16.msra.mxu1 %v5695_v16  ;;  %v4594_v4 = vpop.f32.mrb[10].mxu1 }
 0x2cd   : > { %v745_v9 = vadd.f32 %v4594_v4, %v5927_v52  ;;  %v739_v10 = vpop.f32.mrb[11].mxu1  ;;  %5189 = vmatprep.subr.bf16.mxu1 %v5699_v19  ;;  %v4026_v4 = vunpack.c.h.bf16 %v4190_v34 }
 0x2ce   : > { %v740_v12 = vadd.f32 %v5927_v52, %v739_v10  ;;  %4621 = vmatprep.mubr.msk.f32.mxu1 %vm590_vm0, %v776_v0  ;;  %v3994_v0 = vunpack.c.h.bf16 %v4182_v33  ;;  %v3997_v10 = vunpack.c.l.bf16 %v4183_v58 }
 0x2cf   : > { %4622 = vmatmul.mubr.msk.f32.gmra.mrb[24].mxu1 %vm590_vm0, %v777_v7  ;;  %v779_v22 = vmax.f32 %v745_v9, 0.0  ;;  %v1152_v9 = vmul.f32 %v4025_v46, %v3993_v41 }
 0x2d0   : > { %v778_v14 = vmax.f32 %v740_v12, 0.0  ;;  %5197 = vmatpush3.bf16.msra.mxu1 %v5699_v19  ;;  %v4597_v17 = vpop.f32.mrb[12].mxu1  ;;  %v4029_v12 = vunpack.c.l.bf16 %v4191_v59 }
 0x2d1   : > { %v755_v27 = vadd.f32 %v4597_v17, %v5927_v52  ;;  %v749_v31 = vpop.f32.mrb[13].mxu1  ;;  %5190 = vmatprep.subr.bf16.mxu1 %v5704_v23  ;;  %v4184_v17 = vld [vmem:[%s5665_s26 + $0x78] sm:$0xff]  }
 0x2d2   : > { %v750_v37 = vadd.f32 %v5927_v52, %v749_v31  ;;  %4624 = vmatprep.mubr.msk.f32.mxu1 %vm590_vm0, %v778_v14  ;;  %v3998_v31 = vunpack.c.h.bf16 %v4183_v58  ;;  %v1154_v33 = vmul.f32 %v4029_v12, %v3997_v10  ;;  %v4001_v34 = vunpack.c.l.bf16 %v4184_v17 }
 0x2d3   : > { %4625 = vmatmul.mubr.msk.f32.gmra.mrb[26].mxu1 %vm590_vm0, %v779_v22  ;;  %v781_v47 = vmax.f32 %v755_v27, 0.0  ;;  %v4192_v22 = vld [vmem:[%s5672_s6 + $0x78] sm:$0xff]   ;;  %v1153_v27 = vmul.f32 %v4026_v4, %v3994_v0  ;;  %v4002_v46 = vunpack.c.h.bf16 %v4184_v17 }
 0x2d4   : > { %v780_v39 = vmax.f32 %v750_v37, 0.0  ;;  %5198 = vmatpush3.bf16.msra.mxu1 %v5704_v23  ;;  %v4600_v40 = vpop.f32.mrb[14].mxu1  ;;  %v4030_v37 = vunpack.c.h.bf16 %v4191_v59 }
 0x2d5   : > { %v765_v49 = vadd.f32 %v4600_v40, %v5927_v52  ;;  %v759_v55 = vpop.f32.mrb[15].mxu1  ;;  %5191 = vmatprep.subr.bf16.mxu1 %v5708_v26  ;;  %v1352_v40 = vpop.permute.xlu1 %1351 }
 0x2d6   : > { %v760_v61 = vadd.f32 %v5927_v52, %v759_v55  ;;  %4627 = vmatprep.mubr.msk.f32.mxu1 %vm590_vm0, %v780_v39  ;;  %v4033_v39 = vunpack.c.l.bf16 %v4192_v22  ;;  %v1155_v41 = vmul.f32 %v4030_v37, %v3998_v31  ;;  %v1354_v55 = vpop.permute.xlu0 %1353 }
 0x2d7   : > { %4628 = vmatmul.mubr.msk.f32.gmra.mrb[28].mxu1 %vm590_vm0, %v781_v47  ;;  %v783_v14 = vmax.f32 %v765_v49, 0.0  ;;  %v4034_v47 = vunpack.c.h.bf16 %v4192_v22 }
 0x2d8   : > { %v782_v7 = vmax.f32 %v760_v61, 0.0  ;;  %5199 = vmatpush3.bf16.msra.mxu1 %v5708_v26  ;;  %v1156_v49 = vmul.f32 %v4033_v39, %v4001_v34 }
 0x2d9   : > { %5192 = vmatprep.subr.bf16.mxu1 %v5712_v29  ;;  %v1157_v58 = vmul.f32 %v4034_v47, %v4002_v46  ;;  %v1356_v59 = vpop.permute.xlu1 %1355 }
 0x2da   : > { %4630 = vmatprep.mubr.msk.f32.mxu1 %vm590_vm0, %v782_v7  ;;  %v1358_v61 = vpop.permute.xlu0 %1357 }
 0x2db   : > { %4631 = vmatmul.mubr.msk.f32.gmra.mrb[30].mxu1 %vm590_vm0, %v783_v14 }
 0x2dc   : > { %5200 = vmatpush3.bf16.msra.mxu1 %v5712_v29  ;;  %4680 = vmatprep.mubr.f32.mxu1 %v1152_v9 }
 0x2dd   : > { %5074 = vmatprep.subr.bf16.mxu1 %v5757_v15  ;;  %v1360_v0 = vpop.permute.xlu1 %1359 }
 0x2de   : > { %v1362_v4 = vpop.permute.xlu0 %1361 }
 0x2df   : > { %4681 = vmatmul.mubr.f32.vlgmr.msra.gmra.mrb[32].mxu1 %v1153_v27 }
 0x2e0   : > { %4683 = vmatprep.mubr.f32.mxu1 %v1154_v33  ;;  %5076 = vmatpush3.bf16.msra.mxu1 %v5757_v15 }
 0x2e1   : > { %5078 = vmatprep.subr.bf16.mxu1 %v5759_v18  ;;  %v1364_v7 = vpop.permute.xlu1 %1363 }
 0x2e2   : > { %v1366_v9 = vpop.permute.xlu0 %1365 }
 0x2e3   : > { %4684 = vmatmul.mubr.f32.gmra.mrb[34].mxu1 %v1155_v41 }
 0x2e4   : > { %4686 = vmatprep.mubr.f32.mxu1 %v1156_v49  ;;  %5080 = vmatpush3.bf16.msra.mxu1 %v5759_v18 }
 0x2e5   : > { %5090 = vmatprep.subr.bf16.mxu1 %v5682_v3  ;;  %v1368_v10 = vpop.permute.xlu1 %1367 }
 0x2e6   : > { %v1370_v12 = vpop.permute.xlu0 %1369 }
 0x2e7   : > { %4687 = vmatmul.mubr.f32.gmra.mrb[36].mxu1 %v1157_v58 }
 0x2e8   : > { %4697 = vmatprep.mubr.msk.f32.mxu1 %vm590_vm0, %v1352_v40 }
 0x2eb   : > { %4698 = vmatmul.mubr.msk.f32.vlgmr.msra.gmra.mrb[38].mxu1 %vm590_vm0, %v1354_v55 }
 0x2ec   : > { %4700 = vmatprep.mubr.msk.f32.mxu1 %vm590_vm0, %v1356_v59  ;;  %5092 = vmatpush3.bf16.msra.mxu1 %v5682_v3 }
 0x2ed   : > { %5094 = vmatprep.subr.bf16.mxu1 %v5684_v5 }
 0x2ef   : > { %4701 = vmatmul.mubr.msk.f32.gmra.mrb[40].mxu1 %vm590_vm0, %v1358_v61 }
 0x2f0   : > { %4703 = vmatprep.mubr.msk.f32.mxu1 %vm590_vm0, %v1360_v0  ;;  %5096 = vmatpush3.bf16.msra.mxu1 %v5684_v5 }
 0x2f1   : > { %5098 = vmatprep.subr.bf16.mxu1 %v5689_v8 }
 0x2f3   : > { %4704 = vmatmul.mubr.msk.f32.gmra.mrb[42].mxu1 %vm590_vm0, %v1362_v4 }
 0x2f4   : > { %4706 = vmatprep.mubr.msk.f32.mxu1 %vm590_vm0, %v1364_v7  ;;  %5100 = vmatpush3.bf16.msra.mxu1 %v5689_v8 }
 0x2f5   : > { %5102 = vmatprep.subr.bf16.mxu1 %v5695_v16 }
 0x2f7   : > { %4707 = vmatmul.mubr.msk.f32.gmra.mrb[44].mxu1 %vm590_vm0, %v1366_v9 }
 0x2f8   : > { %4709 = vmatprep.mubr.msk.f32.mxu1 %vm590_vm0, %v1368_v10  ;;  %5104 = vmatpush3.bf16.msra.mxu1 %v5695_v16 }
 0x2f9   : > { %5106 = vmatprep.subr.bf16.mxu1 %v5699_v19 }
 0x2fb   : > { %4710 = vmatmul.mubr.msk.f32.gmra.mrb[46].mxu1 %vm590_vm0, %v1370_v12 }
 0x2fc   : > { %5108 = vmatpush3.bf16.msra.mxu1 %v5699_v19 }
 0x2fd   : > { %5110 = vmatprep.subr.bf16.mxu1 %v5704_v23 }
 0x300   : > { %5112 = vmatpush3.bf16.msra.mxu1 %v5704_v23 }
 0x301   : > { %5114 = vmatprep.subr.bf16.mxu1 %v5708_v26 }
 0x304   : > { %5116 = vmatpush3.bf16.msra.mxu1 %v5708_v26 }
 0x305   : > { %5118 = vmatprep.subr.bf16.mxu1 %v5712_v29 }
 0x308   : > { %5120 = vmatpush3.bf16.msra.mxu1 %v5712_v29 }
 0x309   : > { %5130 = vmatprep.subr.bf16.mxu1 %v5871_v45 }
 0x392   : > { %v6013_v14 = vpop.f32.mrb[16].mxu1 }
 0x393   : > { %v6015_v17 = vpop.f32.mrb[17].mxu1 }
 0x396   : > { %v6017_v22 = vpop.f32.mrb[18].mxu1 }
 0x397   : > { %v6019_v27 = vpop.f32.mrb[19].mxu1 }
 0x39a   : > { %v6021_v31 = vpop.f32.mrb[20].mxu1 }
 0x39b   : > { %v6023_v37 = vpop.f32.mrb[21].mxu1 }
 0x39e   : > { %v6025_v33 = vpop.f32.mrb[22].mxu1 }
 0x39f   : > { %v6027_v34 = vpop.f32.mrb[23].mxu1 }
 0x3a2   : > { %v6029_v39 = vpop.f32.mrb[24].mxu1 }
 0x3a3   : > { %v6031_v40 = vpop.f32.mrb[25].mxu1 }
 0x3a6   : > { %v6033_v41 = vpop.f32.mrb[26].mxu1 }
 0x3a7   : > { %v6035_v46 = vpop.f32.mrb[27].mxu1 }
 0x3aa   : > { %v6037_v47 = vpop.f32.mrb[28].mxu1 }
 0x3ab   : > { %v6039_v49 = vpop.f32.mrb[29].mxu1 }
 0x3ae   : > { %v6041_v55 = vpop.f32.mrb[30].mxu1 }
 0x3af   : > { %v6043_v58 = vpop.f32.mrb[31].mxu1 }
 0x3b2   : > { %v6045_v59 = vpop.f32.mrb[32].mxu1 }
 0x3b3   : > { %7105 = vst [vmem:[#allocation30_spill] sm:$0xff] %v6045_v59  ;;  %v1314_v61 = vadd.f32 %v6045_v59, %v5765_v20  ;;  %v6049_v0 = vpop.f32.mrb[33].mxu1 }
 0x3b4   : > { %7106 = vst [vmem:[#allocation31_spill] sm:$0xff] %v6049_v0  ;;  %v1313_v4 = vadd.f32 %v6049_v0, %v5765_v20 }
 0x3b5   : > { %v1330_v7 = vmax.f32 %v1314_v61, 0.0 }
 0x3b6   : > { %v1329_v9 = vmax.f32 %v1313_v4, 0.0  ;;  %v6053_v10 = vpop.f32.mrb[34].mxu1 }
 0x3b7   : > { %7107 = vst [vmem:[#allocation32_spill] sm:$0xff] %v6053_v10  ;;  %v1316_v12 = vadd.f32 %v6053_v10, %v5765_v20  ;;  %1373 = vrot.lane.b32.xlu0 %v1330_v7, %s5447_s7  ;;  %v6058_v1 = vpop.f32.mrb[35].mxu1 }
 0x3b8   : > { %7108 = vst [vmem:[#allocation33_spill] sm:$0xff] %v6058_v1  ;;  %v1315_v63 = vadd.f32 %v6058_v1, %v5765_v20  ;;  %1371 = vrot.lane.b32.xlu1 %v1329_v9, %s5447_s7 }
 0x3b9   : > { %v1332_v59 = vmax.f32 %v1316_v12, 0.0 }
 0x3ba   : > { %v1331_v57 = vmax.f32 %v1315_v63, 0.0  ;;  %v6063_v53 = vpop.f32.mrb[36].mxu1 }
 0x3bb   : > { %7109 = vst [vmem:[#allocation34_spill] sm:$0xff] %v6063_v53  ;;  %v1318_v61 = vadd.f32 %v6063_v53, %v5765_v20  ;;  %1377 = vrot.lane.b32.xlu0 %v1332_v59, %s5447_s7  ;;  %v6068_v4 = vpop.f32.mrb[37].mxu1 }
 0x3bc   : > { %7110 = vst [vmem:[#allocation35_spill] sm:$0xff] %v6068_v4  ;;  %v1317_v7 = vadd.f32 %v6068_v4, %v5765_v20  ;;  %1375 = vrot.lane.b32.xlu1 %v1331_v57, %s5447_s7 }
 0x3bd   : > { %v1334_v10 = vmax.f32 %v1318_v61, 0.0 }
 0x3be   : > { %v1333_v1 = vmax.f32 %v1317_v7, 0.0  ;;  %v4699_v0 = vpop.f32.mrb[38].mxu1 }
 0x3bf   : > { %v1487_v9 = vadd.f32 %v4699_v0, %v5927_v52  ;;  %1381 = vrot.lane.b32.xlu0 %v1334_v10, %s5447_s7  ;;  %v1481_v63 = vpop.f32.mrb[39].mxu1 }
 0x3c0   : > { %v1482_v12 = vadd.f32 %v5927_v52, %v1481_v63  ;;  %1379 = vrot.lane.b32.xlu1 %v1333_v1, %s5447_s7 }
 0x3c1   : > { %v1561_v43 = vmax.f32 %v1487_v9, 0.0 }
 0x3c2   : > { %v1560_v59 = vmax.f32 %v1482_v12, 0.0  ;;  %v4702_v53 = vpop.f32.mrb[40].mxu1 }
 0x3c3   : > { %v1497_v35 = vadd.f32 %v4702_v53, %v5927_v52  ;;  %v1491_v4 = vpop.f32.mrb[41].mxu1 }
 0x3c4   : > { %v1492_v57 = vadd.f32 %v5927_v52, %v1491_v4  ;;  %4729 = vmatprep.mubr.msk.f32.mxu0 %vm590_vm0, %v1560_v59 }
 0x3c5   : > { %4730 = vmatmul.mubr.msk.f32.vlgmr.msra.gmra.mrb[26].mxu0 %vm590_vm0, %v1561_v43  ;;  %v1563_v10 = vmax.f32 %v1497_v35, 0.0 }
 0x3c6   : > { %v1562_v0 = vmax.f32 %v1492_v57, 0.0  ;;  %v4705_v61 = vpop.f32.mrb[42].mxu1  ;;  %5124 = vmatpush3.bf16.msra.mxu0 %v5757_v15 }
 0x3c7   : > { %v1507_v7 = vadd.f32 %v4705_v61, %v5927_v52  ;;  %v1501_v1 = vpop.f32.mrb[43].mxu1  ;;  %5126 = vmatprep.subr.bf16.mxu0 %v5759_v18 }
 0x3c8   : > { %v1502_v9 = vadd.f32 %v5927_v52, %v1501_v1  ;;  %4732 = vmatprep.mubr.msk.f32.mxu0 %vm590_vm0, %v1562_v0 }
 0x3c9   : > { %4733 = vmatmul.mubr.msk.f32.gmra.mrb[28].mxu0 %vm590_vm0, %v1563_v10  ;;  %v1565_v43 = vmax.f32 %v1507_v7, 0.0 }
 0x3ca   : > { %v1564_v53 = vmax.f32 %v1502_v9, 0.0  ;;  %v4708_v4 = vpop.f32.mrb[44].mxu1  ;;  %5128 = vmatpush3.bf16.msra.mxu0 %v5759_v18 }
 0x3cb   : > { %v1517_v63 = vadd.f32 %v4708_v4, %v5927_v52  ;;  %v1511_v12 = vpop.f32.mrb[45].mxu1  ;;  %5138 = vmatprep.subr.bf16.mxu0 %v5682_v3 }
 0x3cc   : > { %v1512_v35 = vadd.f32 %v5927_v52, %v1511_v12  ;;  %4735 = vmatprep.mubr.msk.f32.mxu0 %vm590_vm0, %v1564_v53 }
 0x3cd   : > { %4736 = vmatmul.mubr.msk.f32.gmra.mrb[30].mxu0 %vm590_vm0, %v1565_v43  ;;  %v1567_v0 = vmax.f32 %v1517_v63, 0.0  ;;  %v4193_v43 = vld [vmem:[%s5665_s26 + $0x80] sm:$0xff]  }
 0x3ce   : > { %v1566_v59 = vmax.f32 %v1512_v35, 0.0  ;;  %v4711_v57 = vpop.f32.mrb[46].mxu1  ;;  %v4201_v63 = vld [vmem:[%s5672_s6 + $0x80] sm:$0xff]   ;;  %v4037_v35 = vunpack.c.l.bf16 %v4193_v43 }
 0x3cf   : > { %v1527_v61 = vadd.f32 %v4711_v57, %v5927_v52  ;;  %v1521_v10 = vpop.f32.mrb[47].mxu1 }
 0x3d0   : > { %v1522_v7 = vadd.f32 %v5927_v52, %v1521_v10  ;;  %4738 = vmatprep.mubr.msk.f32.mxu0 %vm590_vm0, %v1566_v59  ;;  %v4069_v59 = vunpack.c.l.bf16 %v4201_v63  ;;  %v4038_v10 = vunpack.c.h.bf16 %v4193_v43 }
 0x3d1   : > { %4739 = vmatmul.mubr.msk.f32.gmra.mrb[32].mxu0 %vm590_vm0, %v1567_v0  ;;  %v1569_v9 = vmax.f32 %v1527_v61, 0.0  ;;  %v4194_v0 = vld [vmem:[%s5665_s26 + $0x88] sm:$0xff]  }
 0x3d2   : > { %v1568_v1 = vmax.f32 %v1522_v7, 0.0  ;;  %v4202_v61 = vld [vmem:[%s5672_s6 + $0x88] sm:$0xff]   ;;  %v4070_v7 = vunpack.c.h.bf16 %v4201_v63  ;;  %v4042_v6 = vunpack.c.h.bf16 %v4194_v0 }
 0x3d4   : > { %4741 = vmatprep.mubr.msk.f32.mxu0 %vm590_vm0, %v1568_v1  ;;  %v1994_v1 = vmul.f32 %v4069_v59, %v4037_v35  ;;  %v1995_v11 = vmul.f32 %v4070_v7, %v4038_v10  ;;  %v4196_v35 = vld [vmem:[%s5665_s26 + $0x98] sm:$0xff]  }
 0x3d5   : > { %4742 = vmatmul.mubr.msk.f32.gmra.mrb[34].mxu0 %vm590_vm0, %v1569_v9  ;;  %v4041_v9 = vunpack.c.l.bf16 %v4194_v0  ;;  %v4204_v59 = vld [vmem:[%s5672_s6 + $0x98] sm:$0xff]   ;;  %v4197_v0 = vld [vmem:[%s5665_s26 + $0xa0] sm:$0xff]   ;;  %v4050_v7 = vunpack.c.h.bf16 %v4196_v35 }
 0x429   : > { %v1374_v53 = vpop.permute.xlu0 %1373 }
 0x42a   : > { %v1372_v4 = vpop.permute.xlu1 %1371 }
 0x42b   : > { %4712 = vmatprep.mubr.msk.f32.mxu1 %vm590_vm0, %v1372_v4  ;;  %v4073_v4 = vunpack.c.l.bf16 %v4202_v61 }
 0x42c   : > { %4713 = vmatmul.mubr.msk.f32.gmra.mrb[48].mxu1 %vm590_vm0, %v1374_v53  ;;  %v4195_v53 = vld [vmem:[%s5665_s26 + $0x90] sm:$0xff]  }
 0x42d   : > { %v1378_v12 = vpop.permute.xlu0 %1377  ;;  %v1996_v43 = vmul.f32 %v4073_v4, %v4041_v9  ;;  %v4045_v63 = vunpack.c.l.bf16 %v4195_v53  ;;  %v4046_v62 = vunpack.c.h.bf16 %v4195_v53  ;;  %v4198_v9 = vld [vmem:[%s5665_s26 + $0xa8] sm:$0xff]  }
 0x42e   : > { %v1376_v57 = vpop.permute.xlu1 %1375  ;;  %v4206_v4 = vld [vmem:[%s5672_s6 + $0xa8] sm:$0xff]  }
 0x42f   : > { %4715 = vmatprep.mubr.msk.f32.mxu1 %vm590_vm0, %v1376_v57  ;;  %v4074_v57 = vunpack.c.h.bf16 %v4202_v61  ;;  %v4205_v61 = vld [vmem:[%s5672_s6 + $0xa0] sm:$0xff]   ;;  %v1999_v10 = vmul.f32 %v4078_v60, %v4046_v62  ;;  %v4089_v62 = vunpack.c.l.bf16 %v4206_v4 }
 0x430   : > { %4716 = vmatmul.mubr.msk.f32.gmra.mrb[50].mxu1 %vm590_vm0, %v1378_v12  ;;  %v4077_v12 = vunpack.c.l.bf16 %v4203_v25  ;;  %v4085_v25 = vunpack.c.l.bf16 %v4205_v61 }
 0x431   : > { %v1382_v13 = vpop.permute.xlu0 %1381  ;;  %v1997_v2 = vmul.f32 %v4074_v57, %v4042_v6  ;;  %v4054_v57 = vunpack.c.h.bf16 %v4197_v0 }
 0x432   : > { %v1380_v28 = vpop.permute.xlu1 %1379  ;;  %v1998_v56 = vmul.f32 %v4077_v12, %v4045_v63  ;;  %v4207_v63 = vld [vmem:[%s5672_s6 + $0xb0] sm:$0xff]  }
 0x433   : > { %4718 = vmatprep.mubr.msk.f32.mxu1 %vm590_vm0, %v1380_v28  ;;  %v4049_v28 = vunpack.c.l.bf16 %v4196_v35  ;;  %v4058_v35 = vunpack.c.h.bf16 %v4198_v9  ;;  %v4093_v54 = vunpack.c.l.bf16 %v4207_v63 }
 0x434   : > { %4719 = vmatmul.mubr.msk.f32.gmra.mrb[52].mxu1 %vm590_vm0, %v1382_v13  ;;  %v4081_v13 = vunpack.c.l.bf16 %v4204_v59 }
 0x435   : > { %4785 = vmatprep.mubr.f32.mxu1 %v1994_v1  ;;  %v4082_v1 = vunpack.c.h.bf16 %v4204_v59  ;;  %v4090_v59 = vunpack.c.h.bf16 %v4206_v4 }
 0x436   : > { %v2000_v6 = vmul.f32 %v4081_v13, %v4049_v28 }
 0x437   : > { %v2001_v53 = vmul.f32 %v4082_v1, %v4050_v7  ;;  %v4208_v7 = vld [vmem:[%s5672_s6 + $0xb8] sm:$0xff]   ;;  %v4094_v1 = vunpack.c.h.bf16 %v4207_v63 }
 0x438   : > { %4786 = vmatmul.mubr.f32.vlgmr.msra.gmra.mrb[54].mxu1 %v1995_v11  ;;  %v4053_v11 = vunpack.c.l.bf16 %v4197_v0  ;;  %v2005_v0 = vmul.f32 %v4090_v59, %v4058_v35 }
 0x439   : > { %4788 = vmatprep.mubr.f32.mxu1 %v1996_v43  ;;  %5132 = vmatpush3.bf16.msra.mxu1 %v5871_v45  ;;  %v4199_v43 = vld [vmem:[%s5665_s26 + $0xb0] sm:$0xff]  }
 0x43a   : > { %5134 = vmatprep.subr.bf16.mxu1 %v5878_v51  ;;  %v2002_v60 = vmul.f32 %v4085_v25, %v4053_v11  ;;  %v4061_v13 = vunpack.c.l.bf16 %v4199_v43  ;;  %v4097_v25 = vunpack.c.l.bf16 %v4208_v7 }
 0x43c   : > { %4789 = vmatmul.mubr.f32.gmra.mrb[56].mxu1 %v1997_v2  ;;  %v4086_v2 = vunpack.c.h.bf16 %v4205_v61  ;;  %v4062_v61 = vunpack.c.h.bf16 %v4199_v43 }
 0x43d   : > { %4791 = vmatprep.mubr.f32.mxu1 %v1998_v56  ;;  %5136 = vmatpush3.bf16.msra.mxu1 %v5878_v51  ;;  %v4057_v56 = vunpack.c.l.bf16 %v4198_v9 }
 0x43e   : > { %5170 = vmatprep.subr.bf16.mxu1 %v5757_v15  ;;  %v2003_v12 = vmul.f32 %v4086_v2, %v4054_v57  ;;  %v2007_v50 = vmul.f32 %v4094_v1, %v4062_v61  ;;  %v4098_v57 = vunpack.c.h.bf16 %v4208_v7 }
 0x43f   : > { %v2004_v28 = vmul.f32 %v4089_v62, %v4057_v56 }
 0x440   : > { %4792 = vmatmul.mubr.f32.gmra.mrb[58].mxu1 %v1999_v10  ;;  %v4200_v10 = vld [vmem:[%s5665_s26 + $0xb8] sm:$0xff]  }
 0x441   : > { %4794 = vmatprep.mubr.f32.mxu1 %v2000_v6  ;;  %v2006_v6 = vmul.f32 %v4093_v54, %v4061_v13  ;;  %v4065_v11 = vunpack.c.l.bf16 %v4200_v10 }
 0x443   : > { %v2008_v9 = vmul.f32 %v4097_v25, %v4065_v11 }
 0x444   : > { %4795 = vmatmul.mubr.f32.gmra.mrb[60].mxu1 %v2001_v53  ;;  %v4066_v53 = vunpack.c.h.bf16 %v4200_v10 }
 0x445   : > { %4797 = vmatprep.mubr.f32.mxu1 %v2002_v60 }
 0x446   : > { %v2009_v4 = vmul.f32 %v4098_v57, %v4066_v53 }
 0x448   : > { %4798 = vmatmul.mubr.f32.gmra.mrb[62].mxu1 %v2003_v12 }
 0x449   : > { %4800 = vmatprep.mubr.f32.mxu1 %v2004_v28 }
 0x44c   : > { %4801 = vmatmul.mubr.f32.gmra.mrb[64].mxu1 %v2005_v0 }
 0x44d   : > { %4803 = vmatprep.mubr.f32.mxu1 %v2006_v6 }
 0x450   : > { %4804 = vmatmul.mubr.f32.gmra.mrb[66].mxu1 %v2007_v50 }
 0x451   : > { %4806 = vmatprep.mubr.f32.mxu1 %v2008_v9 }
 0x454   : > { %4807 = vmatmul.mubr.f32.gmra.mrb[68].mxu1 %v2009_v4 }
 0x498   : > { %v6125_v2 = vpop.f32.mrb[26].mxu0 }
 0x499   : > { %v6127_v60 = vpop.f32.mrb[27].mxu0 }
 0x49c   : > { %v6129_v56 = vpop.f32.mrb[28].mxu0 }
 0x49d   : > { %v6131_v62 = vpop.f32.mrb[29].mxu0 }
 0x4a0   : > { %v6133_v54 = vpop.f32.mrb[30].mxu0 }
 0x4a1   : > { %v6135_v43 = vpop.f32.mrb[31].mxu0 }
 0x4a4   : > { %v6137_v63 = vpop.f32.mrb[32].mxu0 }
 0x4a5   : > { %v6139_v12 = vpop.f32.mrb[33].mxu0 }
 0x4a8   : > { %v6141_v50 = vpop.f32.mrb[34].mxu0 }
 0x4a9   : > { %v6143_v35 = vpop.f32.mrb[35].mxu0 }
 0x4ff   : > { %v4714_v59 = vpop.f32.mrb[48].mxu1 }
 0x500   : > { %v1537_v28 = vadd.f32 %v4714_v59, %v5927_v52  ;;  %v1531_v13 = vpop.f32.mrb[49].mxu1 }
 0x501   : > { %v1532_v10 = vadd.f32 %v5927_v52, %v1531_v13 }
 0x502   : > { %v1571_v61 = vmax.f32 %v1537_v28, 0.0 }
 0x503   : > { %v1570_v7 = vmax.f32 %v1532_v10, 0.0  ;;  %v4717_v0 = vpop.f32.mrb[50].mxu1 }
 0x504   : > { %v1547_v1 = vadd.f32 %v4717_v0, %v5927_v52  ;;  %v1541_v6 = vpop.f32.mrb[51].mxu1 }
 0x505   : > { %v1542_v11 = vadd.f32 %v5927_v52, %v1541_v6  ;;  %4744 = vmatprep.mubr.msk.f32.mxu0 %vm590_vm0, %v1570_v7 }
 0x506   : > { %4745 = vmatmul.mubr.msk.f32.gmra.mrb[36].mxu0 %vm590_vm0, %v1571_v61  ;;  %v1573_v57 = vmax.f32 %v1547_v1, 0.0 }
 0x507   : > { %v1572_v25 = vmax.f32 %v1542_v11, 0.0  ;;  %v4720_v53 = vpop.f32.mrb[52].mxu1 }
 0x508   : > { %v1557_v9 = vadd.f32 %v4720_v53, %v5927_v52  ;;  %v1551_v4 = vpop.f32.mrb[53].mxu1 }
 0x509   : > { %v1552_v59 = vadd.f32 %v5927_v52, %v1551_v4  ;;  %4747 = vmatprep.mubr.msk.f32.mxu0 %vm590_vm0, %v1572_v25 }
 0x50a   : > { %4748 = vmatmul.mubr.msk.f32.gmra.mrb[38].mxu0 %vm590_vm0, %v1573_v57  ;;  %v1575_v10 = vmax.f32 %v1557_v9, 0.0 }
 0x50b   : > { %v1574_v28 = vmax.f32 %v1552_v59, 0.0  ;;  %v6155_v13 = vpop.f32.mrb[54].mxu1 }
 0x50c   : > { %v2156_v7 = vadd.f32 %v6155_v13, %v5765_v20  ;;  %v6159_v0 = vpop.f32.mrb[55].mxu1 }
 0x50d   : > { %7111 = vst [vmem:[#allocation36_spill] sm:$0xff] %v6159_v0  ;;  %v2155_v61 = vadd.f32 %v6159_v0, %v5765_v20  ;;  %4750 = vmatprep.mubr.msk.f32.mxu0 %vm590_vm0, %v1574_v28 }
 0x50e   : > { %v2172_v1 = vmax.f32 %v2156_v7, 0.0  ;;  %4751 = vmatmul.mubr.msk.f32.gmra.mrb[40].mxu0 %vm590_vm0, %v1575_v10 }
 0x50f   : > { %v2171_v52 = vmax.f32 %v2155_v61, 0.0  ;;  %v6165_v6 = vpop.f32.mrb[56].mxu1 }
 0x510   : > { %7112 = vst [vmem:[#allocation37_spill] sm:$0xff] %v6165_v6  ;;  %v2158_v11 = vadd.f32 %v6165_v6, %v5765_v20  ;;  %2205 = vrot.lane.b32.xlu0 %v2172_v1, %s5447_s7  ;;  %v6170_v25 = vpop.f32.mrb[57].mxu1 }
 0x511   : > { %7113 = vst [vmem:[#allocation38_spill] sm:$0xff] %v6170_v25  ;;  %v2157_v53 = vadd.f32 %v6170_v25, %v5765_v20  ;;  %2203 = vrot.lane.b32.xlu1 %v2171_v52, %s5447_s7 }
 0x512   : > { %v2174_v57 = vmax.f32 %v2158_v11, 0.0 }
 0x513   : > { %v2173_v9 = vmax.f32 %v2157_v53, 0.0  ;;  %v6175_v4 = vpop.f32.mrb[58].mxu1 }
 0x514   : > { %7114 = vst [vmem:[#allocation39_spill] sm:$0xff] %v6175_v4  ;;  %v2160_v59 = vadd.f32 %v6175_v4, %v5765_v20  ;;  %2209 = vrot.lane.b32.xlu0 %v2174_v57, %s5447_s7  ;;  %v6180_v28 = vpop.f32.mrb[59].mxu1 }
 0x515   : > { %7115 = vst [vmem:[#allocation40_spill] sm:$0xff] %v6180_v28  ;;  %v2159_v10 = vadd.f32 %v6180_v28, %v5765_v20  ;;  %2207 = vrot.lane.b32.xlu1 %v2173_v9, %s5447_s7 }
 0x516   : > { %v2176_v7 = vmax.f32 %v2160_v59, 0.0 }
 0x517   : > { %v2175_v61 = vmax.f32 %v2159_v10, 0.0  ;;  %v6185_v1 = vpop.f32.mrb[60].mxu1 }
 0x518   : > { %7116 = vst [vmem:[#allocation41_spill] sm:$0xff] %v6185_v1  ;;  %v2162_v52 = vadd.f32 %v6185_v1, %v5765_v20  ;;  %2213 = vrot.lane.b32.xlu0 %v2176_v7, %s5447_s7  ;;  %v6190_v11 = vpop.f32.mrb[61].mxu1 }
 0x519   : > { %7117 = vst [vmem:[#allocation42_spill] sm:$0xff] %v6190_v11  ;;  %v2161_v53 = vadd.f32 %v6190_v11, %v5765_v20  ;;  %2211 = vrot.lane.b32.xlu1 %v2175_v61, %s5447_s7 }
 0x51a   : > { %v2178_v57 = vmax.f32 %v2162_v52, 0.0 }
 0x51b   : > { %v2177_v28 = vmax.f32 %v2161_v53, 0.0  ;;  %v6195_v4 = vpop.f32.mrb[62].mxu1 }
 0x51c   : > { %7118 = vst [vmem:[#allocation43_spill] sm:$0xff] %v6195_v4  ;;  %v2164_v9 = vadd.f32 %v6195_v4, %v5765_v20  ;;  %2217 = vrot.lane.b32.xlu0 %v2178_v57, %s5447_s7  ;;  %v6200_v59 = vpop.f32.mrb[63].mxu1 }
 0x51d   : > { %7119 = vst [vmem:[#allocation44_spill] sm:$0xff] %v6200_v59  ;;  %v2163_v10 = vadd.f32 %v6200_v59, %v5765_v20  ;;  %2215 = vrot.lane.b32.xlu1 %v2177_v28, %s5447_s7 }
 0x51e   : > { %v2180_v7 = vmax.f32 %v2164_v9, 0.0 }
 0x51f   : > { %v2179_v11 = vmax.f32 %v2163_v10, 0.0  ;;  %v6205_v1 = vpop.f32.mrb[64].mxu1 }
 0x520   : > { %7120 = vst [vmem:[#allocation45_spill] sm:$0xff] %v6205_v1  ;;  %v2166_v61 = vadd.f32 %v6205_v1, %v5765_v20  ;;  %2221 = vrot.lane.b32.xlu0 %v2180_v7, %s5447_s7  ;;  %v6210_v52 = vpop.f32.mrb[65].mxu1 }
 0x521   : > { %7121 = vst [vmem:[#allocation46_spill] sm:$0xff] %v6210_v52  ;;  %v2165_v53 = vadd.f32 %v6210_v52, %v5765_v20  ;;  %2219 = vrot.lane.b32.xlu1 %v2179_v11, %s5447_s7 }
 0x522   : > { %v2182_v57 = vmax.f32 %v2166_v61, 0.0 }
 0x523   : > { %v2181_v59 = vmax.f32 %v2165_v53, 0.0  ;;  %v6215_v4 = vpop.f32.mrb[66].mxu1 }
 0x524   : > { %7122 = vst [vmem:[#allocation47_spill] sm:$0xff] %v6215_v4  ;;  %v2168_v28 = vadd.f32 %v6215_v4, %v5765_v20  ;;  %2225 = vrot.lane.b32.xlu0 %v2182_v57, %s5447_s7  ;;  %v6220_v9 = vpop.f32.mrb[67].mxu1  ;;  %v4220_v4 = vld [vmem:[%s5672_s6 + $0xd8] sm:$0xff]  }
 0x525   : > { %7123 = vst [vmem:[#allocation48_spill] sm:$0xff] %v6220_v9  ;;  %v2167_v10 = vadd.f32 %v6220_v9, %v5765_v20  ;;  %2223 = vrot.lane.b32.xlu1 %v2181_v59, %s5447_s7 }
 0x526   : > { %v2184_v7 = vmax.f32 %v2168_v28, 0.0 }
 0x527   : > { %v2183_v52 = vmax.f32 %v2167_v10, 0.0  ;;  %v6225_v1 = vpop.f32.mrb[68].mxu1 }
 0x528   : > { %7124 = vst [vmem:[#allocation49_spill] sm:$0xff] %v6225_v1  ;;  %v2170_v11 = vadd.f32 %v6225_v1, %v5765_v20  ;;  %2229 = vrot.lane.b32.xlu0 %v2184_v7, %s5447_s7  ;;  %v6230_v61 = vpop.f32.mrb[69].mxu1 }
 0x529   : > { %7125 = vst [vmem:[#allocation50_spill] sm:$0xff] %v6230_v61  ;;  %v2169_v53 = vadd.f32 %v6230_v61, %v5765_v20  ;;  %2227 = vrot.lane.b32.xlu1 %v2183_v52, %s5447_s7  ;;  %v4219_v61 = vld [vmem:[%s5672_s6 + $0xd0] sm:$0xff]  }
 0x52a   : > { %v2186_v57 = vmax.f32 %v2170_v11, 0.0  ;;  %v4142_v6 = vunpack.c.h.bf16 %v4219_v61 }
 0x52b   : > { %v2185_v9 = vmax.f32 %v2169_v53, 0.0 }
 0x52c   : > { %2233 = vrot.lane.b32.xlu0 %v2186_v57, %s5447_s7 }
 0x52d   : > { %2231 = vrot.lane.b32.xlu1 %v2185_v9, %s5447_s7 }
 0x582   : > { %v2206_v59 = vpop.permute.xlu0 %2205 }
 0x583   : > { %v2204_v28 = vpop.permute.xlu1 %2203 }
 0x584   : > { %4817 = vmatprep.mubr.msk.f32.mxu0 %vm590_vm0, %v2204_v28  ;;  %v4217_v28 = vld [vmem:[%s5672_s6 + $0xc0] sm:$0xff]  }
 0x585   : > { %4818 = vmatmul.mubr.msk.f32.vlgmr.msra.gmra.mrb[42].mxu0 %vm590_vm0, %v2206_v59  ;;  %v4209_v59 = vld [vmem:[%s5665_s26 + $0xc0] sm:$0xff]  }
 0x586   : > { %5140 = vmatpush3.bf16.msra.mxu0 %v5682_v3  ;;  %v2210_v10 = vpop.permute.xlu0 %2209 }
 0x587   : > { %v2208_v7 = vpop.permute.xlu1 %2207  ;;  %5142 = vmatprep.subr.bf16.mxu0 %v5684_v5 }
 0x588   : > { %4820 = vmatprep.mubr.msk.f32.mxu0 %vm590_vm0, %v2208_v7  ;;  %v4133_v7 = vunpack.c.l.bf16 %v4217_v28 }
 0x589   : > { %4821 = vmatmul.mubr.msk.f32.gmra.mrb[44].mxu0 %vm590_vm0, %v2210_v10  ;;  %v4101_v10 = vunpack.c.l.bf16 %v4209_v59 }
 0x58a   : > { %5144 = vmatpush3.bf16.msra.mxu0 %v5684_v5  ;;  %v2214_v52 = vpop.permute.xlu0 %2213 }
 0x58b   : > { %v2212_v9 = vpop.permute.xlu1 %2211  ;;  %5146 = vmatprep.subr.bf16.mxu0 %v5689_v8 }
 0x58c   : > { %4823 = vmatprep.mubr.msk.f32.mxu0 %vm590_vm0, %v2212_v9  ;;  %v4218_v9 = vld [vmem:[%s5672_s6 + $0xc8] sm:$0xff]  }
 0x58d   : > { %4824 = vmatmul.mubr.msk.f32.gmra.mrb[46].mxu0 %vm590_vm0, %v2214_v52 }
 0x58e   : > { %5148 = vmatpush3.bf16.msra.mxu0 %v5689_v8  ;;  %v2218_v3 = vpop.permute.xlu0 %2217 }
 0x58f   : > { %v2216_v11 = vpop.permute.xlu1 %2215  ;;  %5150 = vmatprep.subr.bf16.mxu0 %v5695_v16 }
 0x590   : > { %4826 = vmatprep.mubr.msk.f32.mxu0 %vm590_vm0, %v2216_v11  ;;  %v4134_v11 = vunpack.c.h.bf16 %v4217_v28  ;;  %v4138_v28 = vunpack.c.h.bf16 %v4218_v9 }
 0x591   : > { %4827 = vmatmul.mubr.msk.f32.gmra.mrb[48].mxu0 %vm590_vm0, %v2218_v3  ;;  %v4102_v3 = vunpack.c.h.bf16 %v4209_v59 }
 0x592   : > { %5152 = vmatpush3.bf16.msra.mxu0 %v5695_v16  ;;  %v2222_v5 = vpop.permute.xlu0 %2221 }
 0x593   : > { %v2220_v53 = vpop.permute.xlu1 %2219  ;;  %5154 = vmatprep.subr.bf16.mxu0 %v5699_v19 }
 0x594   : > { %4829 = vmatprep.mubr.msk.f32.mxu0 %vm590_vm0, %v2220_v53  ;;  %v4137_v53 = vunpack.c.l.bf16 %v4218_v9  ;;  %v4213_v9 = vld [vmem:[%s5665_s26 + $0xe0] sm:$0xff]  }
 0x595   : > { %4830 = vmatmul.mubr.msk.f32.gmra.mrb[50].mxu0 %vm590_vm0, %v2222_v5  ;;  %v2846_v5 = vmul.f32 %v4133_v7, %v4101_v10  ;;  %v4141_v7 = vunpack.c.l.bf16 %v4219_v61 }
 0x596   : > { %5156 = vmatpush3.bf16.msra.mxu0 %v5699_v19  ;;  %v2226_v8 = vpop.permute.xlu0 %2225  ;;  %v4210_v19 = vld [vmem:[%s5665_s26 + $0xc8] sm:$0xff]  }
 0x597   : > { %v2224_v57 = vpop.permute.xlu1 %2223  ;;  %5158 = vmatprep.subr.bf16.mxu0 %v5704_v23  ;;  %v4106_v59 = vunpack.c.h.bf16 %v4210_v19 }
 0x598   : > { %4832 = vmatprep.mubr.msk.f32.mxu0 %vm590_vm0, %v2224_v57  ;;  %v4211_v57 = vld [vmem:[%s5665_s26 + $0xd0] sm:$0xff]  }
 0x599   : > { %4833 = vmatmul.mubr.msk.f32.gmra.mrb[52].mxu0 %vm590_vm0, %v2226_v8  ;;  %v4109_v10 = vunpack.c.l.bf16 %v4211_v57  ;;  %v2849_v25 = vmul.f32 %v4138_v28, %v4106_v59  ;;  %v4222_v59 = vld [vmem:[%s5672_s6 + $0xe8] sm:$0xff]   ;;  %v4118_v28 = vunpack.c.h.bf16 %v4213_v9 }
 0x59a   : > { %5160 = vmatpush3.bf16.msra.mxu0 %v5704_v23  ;;  %v2230_v16 = vpop.permute.xlu0 %2229  ;;  %v4105_v23 = vunpack.c.l.bf16 %v4210_v19 }
 0x59b   : > { %v2228_v52 = vpop.permute.xlu1 %2227  ;;  %5162 = vmatprep.subr.bf16.mxu0 %v5708_v26 }
 0x59c   : > { %4835 = vmatprep.mubr.msk.f32.mxu0 %vm590_vm0, %v2228_v52  ;;  %v4212_v52 = vld [vmem:[%s5665_s26 + $0xd8] sm:$0xff]  }
 0x59d   : > { %4836 = vmatmul.mubr.msk.f32.gmra.mrb[54].mxu0 %vm590_vm0, %v2230_v16  ;;  %v2847_v16 = vmul.f32 %v4134_v11, %v4102_v3  ;;  %v4113_v19 = vunpack.c.l.bf16 %v4212_v52  ;;  %v4221_v3 = vld [vmem:[%s5672_s6 + $0xe0] sm:$0xff]  }
 0x59e   : > { %5164 = vmatpush3.bf16.msra.mxu0 %v5708_v26  ;;  %v2234_v1 = vpop.permute.xlu0 %2233  ;;  %v2848_v26 = vmul.f32 %v4137_v53, %v4105_v23  ;;  %v4146_v23 = vunpack.c.h.bf16 %v4220_v4  ;;  %v4117_v53 = vunpack.c.l.bf16 %v4213_v9 }
 0x59f   : > { %v2232_v8 = vpop.permute.xlu1 %2231  ;;  %5166 = vmatprep.subr.bf16.mxu0 %v5712_v29 }
 0x5a0   : > { %4838 = vmatprep.mubr.msk.f32.mxu0 %vm590_vm0, %v2232_v8  ;;  %v4110_v8 = vunpack.c.h.bf16 %v4211_v57  ;;  %v4149_v57 = vunpack.c.l.bf16 %v4221_v3 }
 0x5a1   : > { %4839 = vmatmul.mubr.msk.f32.gmra.mrb[56].mxu0 %vm590_vm0, %v2234_v1  ;;  %v2850_v1 = vmul.f32 %v4141_v7, %v4109_v10  ;;  %v4215_v10 = vld [vmem:[%s5665_s26 + $0xf0] sm:$0xff]  }
 0x5a2   : > { %5168 = vmatpush3.bf16.msra.mxu0 %v5712_v29  ;;  %4905 = vmatprep.mubr.f32.mxu0 %v2846_v5  ;;  %v4145_v29 = vunpack.c.l.bf16 %v4220_v4  ;;  %v2851_v11 = vmul.f32 %v4142_v6, %v4110_v8  ;;  %v4114_v5 = vunpack.c.h.bf16 %v4212_v52  ;;  %v2854_v6 = vmul.f32 %v4149_v57, %v4117_v53  ;;  %v4223_v7 = vld [vmem:[%s5672_s6 + $0xf0] sm:$0xff]  }
 0x5a3   : > { %5178 = vmatprep.subr.bf16.mxu0 %v5871_v45  ;;  %v4153_v4 = vunpack.c.l.bf16 %v4222_v59 }
 0x5a4   : > { %v2852_v61 = vmul.f32 %v4145_v29, %v4113_v19  ;;  %v4125_v19 = vunpack.c.l.bf16 %v4215_v10  ;;  %v4157_v29 = vunpack.c.l.bf16 %v4223_v7 }
 0x5a5   : > { %4906 = vmatmul.mubr.f32.vlgmr.msra.gmra.mrb[58].mxu0 %v2847_v16  ;;  %v4214_v16 = vld [vmem:[%s5665_s26 + $0xe8] sm:$0xff]  }
 0x5a6   : > { %4908 = vmatprep.mubr.f32.mxu0 %v2848_v26  ;;  %5180 = vmatpush3.bf16.msra.mxu0 %v5871_v45  ;;  %v2853_v45 = vmul.f32 %v4146_v23, %v4114_v5  ;;  %v4150_v26 = vunpack.c.h.bf16 %v4221_v3  ;;  %v4122_v8 = vunpack.c.h.bf16 %v4214_v16  ;;  %v4224_v5 = vld [vmem:[%s5672_s6 + $0xf8] sm:$0xff]   ;;  %v4126_v3 = vunpack.c.h.bf16 %v4215_v10 }
 0x5a7   : > { %5182 = vmatprep.subr.bf16.mxu0 %v5878_v51  ;;  %v4158_v23 = vunpack.c.h.bf16 %v4223_v7  ;;  %v4161_v57 = vunpack.c.l.bf16 %v4224_v5 }
 0x5a8   : > { %v2855_v52 = vmul.f32 %v4150_v26, %v4118_v28  ;;  %v4162_v28 = vunpack.c.h.bf16 %v4224_v5 }
 0x5a9   : > { %4909 = vmatmul.mubr.f32.gmra.mrb[60].mxu0 %v2849_v25  ;;  %v4121_v25 = vunpack.c.l.bf16 %v4214_v16  ;;  %v2859_v0 = vmul.f32 %v4158_v23, %v4126_v3 }
 0x5aa   : > { %4911 = vmatprep.mubr.f32.mxu0 %v2850_v1  ;;  %5184 = vmatpush3.bf16.msra.mxu0 %v5878_v51  ;;  %v4154_v1 = vunpack.c.h.bf16 %v4222_v59 }
 0x5ab   : > { %v2856_v51 = vmul.f32 %v4153_v4, %v4121_v25 }
 0x5ac   : > { %v2857_v9 = vmul.f32 %v4154_v1, %v4122_v8  ;;  %v6300_v8 = vld [vmem:[#allocation7 + $0xc1] ss:$0 sm:$0xff] }
 0x5ad   : > { %4912 = vmatmul.mubr.f32.gmra.mrb[62].mxu0 %v2851_v11  ;;  %v4216_v11 = vld [vmem:[%s5665_s26 + $0xf8] sm:$0xff]   ;;  %s5451_s26 = smov [#allocation8]  }
 0x5ae   : > { %4914 = vmatprep.mubr.f32.mxu0 %v2852_v61  ;;  %v2858_v61 = vmul.f32 %v4157_v29, %v4125_v19  ;;  %v4129_v53 = vunpack.c.l.bf16 %v4216_v11  ;;  %s5367_s4 = sshll.u32 %s5451_s26, 4  ;;  %s5368_s4 = int_to_ptr.vmem [resolvable:$false] %s5367_s4 }
 0x5af   : > { %s5369_s20 = scalar_lea.vmem %s5368_s4, 4096  ;;  %p5370_p1 = scmp.lt.s32.totalorder %s6979_s9, %s5368_s4 }
 0x5b0   : > { %v2860_v16 = vmul.f32 %v4161_v57, %v4129_v53  ;;  %p5371_p5 = scmp.lt.s32.totalorder %s5369_s20, %s5363_s28 }
 0x5b1   : > { %4915 = vmatmul.mubr.f32.gmra.mrb[64].mxu0 %v2853_v45  ;;  %v4130_v45 = vunpack.c.h.bf16 %v4216_v11 }
 0x5b2   : > { %4917 = vmatprep.mubr.f32.mxu0 %v2854_v6  ;;  %p5372_p2 = por %p5371_p5, %p5370_p1 }
 0x5b3   : > { %v2861_v59 = vmul.f32 %v4162_v28, %v4130_v45 }
 0x5b4   : > { %p5373_p6 = pnand %p5372_p2, %p5366_p9 }
 0x5b5   : > { %4918 = vmatmul.mubr.f32.gmra.mrb[66].mxu0 %v2855_v52 }
 0x5b6   : > { %4920 = vmatprep.mubr.f32.mxu0 %v2856_v51 }
 0x5b9   : > { %4921 = vmatmul.mubr.f32.gmra.mrb[68].mxu0 %v2857_v9 }
 0x5ba   : > { %4923 = vmatprep.mubr.f32.mxu0 %v2858_v61 }
 0x5bd   : > { %4924 = vmatmul.mubr.f32.gmra.mrb[70].mxu0 %v2859_v0 }
 0x5be   : > { %4926 = vmatprep.mubr.f32.mxu0 %v2860_v16 }
 0x5c1   : > { %4927 = vmatmul.mubr.f32.gmra.mrb[72].mxu0 %v2861_v59 }
 0x5d9   : > { %v6288_v26 = vpop.f32.mrb[36].mxu0 }
 0x5da   : > { %v6290_v6 = vpop.f32.mrb[37].mxu0 }
 0x5dd   : > { %v6292_v25 = vpop.f32.mrb[38].mxu0 }
 0x5de   : > { %v6294_v4 = vpop.f32.mrb[39].mxu0 }
 0x5e1   : > { %v6296_v10 = vpop.f32.mrb[40].mxu0 }
 0x5e2   : > { %v6298_v7 = vpop.f32.mrb[41].mxu0 }
 0x658   : > { %v4819_v52 = vpop.f32.mrb[42].mxu0 }
 0x659   : > { %v2339_v0 = vadd.f32 %v6300_v8, %v4819_v52  ;;  %v2333_v1 = vpop.f32.mrb[43].mxu0 }
 0x65a   : > { %v2334_v51 = vadd.f32 %v6300_v8, %v2333_v1 }
 0x65b   : > { %v2413_v11 = vmax.f32 %v2339_v0, 0.0 }
 0x65c   : > { %v2412_v19 = vmax.f32 %v2334_v51, 0.0  ;;  %v4822_v29 = vpop.f32.mrb[44].mxu0 }
 0x65d   : > { %v2349_v5 = vadd.f32 %v6300_v8, %v4822_v29  ;;  %v2343_v9 = vpop.f32.mrb[45].mxu0 }
 0x65e   : > { %v2344_v3 = vadd.f32 %v6300_v8, %v2343_v9  ;;  %4849 = vmatprep.mubr.msk.f32.mxu1 %vm590_vm0, %v2412_v19 }
 0x65f   : > { %4850 = vmatmul.mubr.msk.f32.vlgmr.msra.gmra.mrb[70].mxu1 %vm590_vm0, %v2413_v11  ;;  %v2415_v53 = vmax.f32 %v2349_v5, 0.0 }
 0x660   : > { %v2414_v23 = vmax.f32 %v2344_v3, 0.0  ;;  %v4825_v61 = vpop.f32.mrb[46].mxu0  ;;  %5172 = vmatpush3.bf16.msra.mxu1 %v5757_v15 }
 0x661   : > { %v2359_v57 = vadd.f32 %v6300_v8, %v4825_v61  ;;  %v2353_v45 = vpop.f32.mrb[47].mxu0  ;;  %5174 = vmatprep.subr.bf16.mxu1 %v5759_v18 }
 0x662   : > { %v2354_v28 = vadd.f32 %v6300_v8, %v2353_v45  ;;  %4852 = vmatprep.mubr.msk.f32.mxu1 %vm590_vm0, %v2414_v23 }
 0x663   : > { %4853 = vmatmul.mubr.msk.f32.gmra.mrb[72].mxu1 %vm590_vm0, %v2415_v53  ;;  %v2417_v52 = vmax.f32 %v2359_v57, 0.0 }
 0x664   : > { %v2416_v16 = vmax.f32 %v2354_v28, 0.0  ;;  %v4828_v59 = vpop.f32.mrb[48].mxu0  ;;  %5176 = vmatpush3.bf16.msra.mxu1 %v5759_v18 }
 0x665   : > { %v2369_v0 = vadd.f32 %v6300_v8, %v4828_v59  ;;  %v2363_v15 = vpop.f32.mrb[49].mxu0 }
 0x666   : > { %v2364_v1 = vadd.f32 %v6300_v8, %v2363_v15  ;;  %4855 = vmatprep.mubr.msk.f32.mxu1 %vm590_vm0, %v2416_v16 }
 0x667   : > { %4856 = vmatmul.mubr.msk.f32.gmra.mrb[74].mxu1 %vm590_vm0, %v2417_v52  ;;  %v2419_v29 = vmax.f32 %v2369_v0, 0.0 }
 0x668   : > { %v2418_v51 = vmax.f32 %v2364_v1, 0.0  ;;  %v4831_v19 = vpop.f32.mrb[50].mxu0 }
 0x669   : > { %v2379_v11 = vadd.f32 %v6300_v8, %v4831_v19  ;;  %v2373_v5 = vpop.f32.mrb[51].mxu0 }
 0x66a   : > { %v2374_v9 = vadd.f32 %v6300_v8, %v2373_v5  ;;  %4858 = vmatprep.mubr.msk.f32.mxu1 %vm590_vm0, %v2418_v51 }
 0x66b   : > { %4859 = vmatmul.mubr.msk.f32.gmra.mrb[76].mxu1 %vm590_vm0, %v2419_v29  ;;  %v2421_v23 = vmax.f32 %v2379_v11, 0.0 }
 0x66c   : > { %v2420_v18 = vmax.f32 %v2374_v9, 0.0  ;;  %v4834_v3 = vpop.f32.mrb[52].mxu0 }
 0x66d   : > { %v2389_v61 = vadd.f32 %v6300_v8, %v4834_v3  ;;  %v2383_v53 = vpop.f32.mrb[53].mxu0 }
 0x66e   : > { %v2384_v57 = vadd.f32 %v6300_v8, %v2383_v53  ;;  %4861 = vmatprep.mubr.msk.f32.mxu1 %vm590_vm0, %v2420_v18 }
 0x66f   : > { %4862 = vmatmul.mubr.msk.f32.gmra.mrb[78].mxu1 %vm590_vm0, %v2421_v23  ;;  %v2423_v16 = vmax.f32 %v2389_v61, 0.0 }
 0x670   : > { %v2422_v45 = vmax.f32 %v2384_v57, 0.0  ;;  %v4837_v28 = vpop.f32.mrb[54].mxu0 }
 0x671   : > { %v2399_v59 = vadd.f32 %v6300_v8, %v4837_v28  ;;  %v2393_v52 = vpop.f32.mrb[55].mxu0 }
 0x672   : > { %v2394_v0 = vadd.f32 %v6300_v8, %v2393_v52  ;;  %4864 = vmatprep.mubr.msk.f32.mxu1 %vm590_vm0, %v2422_v45 }
 0x673   : > { %4865 = vmatmul.mubr.msk.f32.gmra.mrb[80].mxu1 %vm590_vm0, %v2423_v16  ;;  %v2425_v51 = vmax.f32 %v2399_v59, 0.0 }
 0x674   : > { %v2424_v15 = vmax.f32 %v2394_v0, 0.0  ;;  %v4840_v1 = vpop.f32.mrb[56].mxu0 }
 0x675   : > { %v2409_v19 = vadd.f32 %v6300_v8, %v4840_v1  ;;  %v2403_v29 = vpop.f32.mrb[57].mxu0 }
 0x676   : > { %v2404_v11 = vadd.f32 %v6300_v8, %v2403_v29  ;;  %4867 = vmatprep.mubr.msk.f32.mxu1 %vm590_vm0, %v2424_v15 }
 0x677   : > { %4868 = vmatmul.mubr.msk.f32.gmra.mrb[82].mxu1 %vm590_vm0, %v2425_v51  ;;  %v2427_v18 = vmax.f32 %v2409_v19, 0.0 }
 0x678   : > { %v2426_v5 = vmax.f32 %v2404_v11, 0.0  ;;  %v6335_v9 = vpop.f32.mrb[58].mxu0 }
 0x679   : > { %v3008_v3 = vadd.f32 %v6335_v9, %v5765_v20  ;;  %v6339_v23 = vpop.f32.mrb[59].mxu0 }
 0x67a   : > { %v3007_v61 = vadd.f32 %v6339_v23, %v5765_v20  ;;  %4870 = vmatprep.mubr.msk.f32.mxu1 %vm590_vm0, %v2426_v5 }
 0x67b   : > { %v3024_v53 = vmax.f32 %v3008_v3, 0.0  ;;  %4871 = vmatmul.mubr.msk.f32.gmra.mrb[84].mxu1 %vm590_vm0, %v2427_v18 }
 0x67c   : > { %v3023_v57 = vmax.f32 %v3007_v61, 0.0  ;;  %v6345_v45 = vpop.f32.mrb[60].mxu0 }
 0x67d   : > { %v3010_v28 = vadd.f32 %v6345_v45, %v5765_v20  ;;  %3057 = vrot.lane.b32.xlu0 %v3024_v53, %s5447_s7  ;;  %v6350_v16 = vpop.f32.mrb[61].mxu0 }
 0x67e   : > { %v3009_v59 = vadd.f32 %v6350_v16, %v5765_v20  ;;  %3055 = vrot.lane.b32.xlu1 %v3023_v57, %s5447_s7 }
 0x67f   : > { %v3026_v52 = vmax.f32 %v3010_v28, 0.0 }
 0x680   : > { %v3025_v0 = vmax.f32 %v3009_v59, 0.0  ;;  %v6355_v15 = vpop.f32.mrb[62].mxu0 }
 0x681   : > { %v3012_v1 = vadd.f32 %v6355_v15, %v5765_v20  ;;  %3061 = vrot.lane.b32.xlu0 %v3026_v52, %s5447_s7  ;;  %v6360_v51 = vpop.f32.mrb[63].mxu0 }
 0x682   : > { %v3011_v19 = vadd.f32 %v6360_v51, %v5765_v20  ;;  %3059 = vrot.lane.b32.xlu1 %v3025_v0, %s5447_s7 }
 0x683   : > { %v3028_v29 = vmax.f32 %v3012_v1, 0.0 }
 0x684   : > { %v3027_v11 = vmax.f32 %v3011_v19, 0.0  ;;  %v6365_v5 = vpop.f32.mrb[64].mxu0 }
 0x685   : > { %v3014_v18 = vadd.f32 %v6365_v5, %v5765_v20  ;;  %3065 = vrot.lane.b32.xlu0 %v3028_v29, %s5447_s7  ;;  %v6370_v3 = vpop.f32.mrb[65].mxu0 }
 0x686   : > { %v3013_v61 = vadd.f32 %v6370_v3, %v5765_v20  ;;  %3063 = vrot.lane.b32.xlu1 %v3027_v11, %s5447_s7 }
 0x687   : > { %v3030_v53 = vmax.f32 %v3014_v18, 0.0 }
 0x688   : > { %v3029_v57 = vmax.f32 %v3013_v61, 0.0  ;;  %v6375_v28 = vpop.f32.mrb[66].mxu0 }
 0x689   : > { %7126 = vst [vmem:[#allocation51_spill] sm:$0xff] %v6375_v28  ;;  %v3016_v59 = vadd.f32 %v6375_v28, %v5765_v20  ;;  %3069 = vrot.lane.b32.xlu0 %v3030_v53, %s5447_s7  ;;  %v6380_v52 = vpop.f32.mrb[67].mxu0 }
 0x68a   : > { %7127 = vst [vmem:[#allocation52_spill] sm:$0xff] %v6380_v52  ;;  %v3015_v0 = vadd.f32 %v6380_v52, %v5765_v20  ;;  %3067 = vrot.lane.b32.xlu1 %v3029_v57, %s5447_s7 }
 0x68b   : > { %v3032_v1 = vmax.f32 %v3016_v59, 0.0 }
 0x68c   : > { %v3031_v19 = vmax.f32 %v3015_v0, 0.0  ;;  %v6385_v29 = vpop.f32.mrb[68].mxu0 }
 0x68d   : > { %7128 = vst [vmem:[#allocation53_spill] sm:$0xff] %v6385_v29  ;;  %v3018_v11 = vadd.f32 %v6385_v29, %v5765_v20  ;;  %3073 = vrot.lane.b32.xlu0 %v3032_v1, %s5447_s7  ;;  %v6390_v18 = vpop.f32.mrb[69].mxu0 }
 0x68e   : > { %7129 = vst [vmem:[#allocation54_spill] sm:$0xff] %v6390_v18  ;;  %v3017_v61 = vadd.f32 %v6390_v18, %v5765_v20  ;;  %3071 = vrot.lane.b32.xlu1 %v3031_v19, %s5447_s7 }
 0x68f   : > { %v3034_v53 = vmax.f32 %v3018_v11, 0.0 }
 0x690   : > { %v3033_v52 = vmax.f32 %v3017_v61, 0.0  ;;  %v6395_v28 = vpop.f32.mrb[70].mxu0 }
 0x691   : > { %v3020_v57 = vadd.f32 %v6395_v28, %v5765_v20  ;;  %3077 = vrot.lane.b32.xlu0 %v3034_v53, %s5447_s7  ;;  %v6400_v59 = vpop.f32.mrb[71].mxu0 }
 0x692   : > { %7130 = vst [vmem:[#allocation55_spill] sm:$0xff] %v6400_v59  ;;  %v3019_v0 = vadd.f32 %v6400_v59, %v5765_v20  ;;  %3075 = vrot.lane.b32.xlu1 %v3033_v52, %s5447_s7  ;;  %v6415_v59 = vld [vmem:[#allocation7 + $0xc2] ss:$0 sm:$0xff] }
 0x693   : > { %v3036_v1 = vmax.f32 %v3020_v57, 0.0  ;;  %v908_v57 = vadd.f32 %v6013_v14, %v6415_v59  ;;  %v928_v14 = vadd.f32 %v6021_v31, %v6415_v59  ;;  %v948_v31 = vadd.f32 %v6029_v39, %v6415_v59 }
 0x694   : > { %v3035_v18 = vmax.f32 %v3019_v0, 0.0  ;;  %v6405_v29 = vpop.f32.mrb[72].mxu0  ;;  %v903_v0 = vadd.f32 %v6415_v59, %v6015_v17  ;;  %v923_v17 = vadd.f32 %v6415_v59, %v6023_v37  ;;  %v943_v37 = vadd.f32 %v6415_v59, %v6031_v40 }
 0x695   : > { %v3022_v19 = vadd.f32 %v6405_v29, %v5765_v20  ;;  %3081 = vrot.lane.b32.xlu0 %v3036_v1, %s5447_s7  ;;  %v6410_v11 = vpop.f32.mrb[73].mxu0  ;;  %v968_v39 = vadd.f32 %v6037_v47, %v6415_v59  ;;  %v963_v40 = vadd.f32 %v6415_v59, %v6039_v49  ;;  %v1696_v47 = vadd.f32 %v6125_v2, %v6415_v59 }
 0x696   : > { %v3021_v61 = vadd.f32 %v6410_v11, %v5765_v20  ;;  %3079 = vrot.lane.b32.xlu1 %v3035_v18, %s5447_s7  ;;  %v918_v20 = vadd.f32 %v6017_v22, %v6415_v59  ;;  %v913_v18 = vadd.f32 %v6415_v59, %v6019_v27  ;;  %v938_v22 = vadd.f32 %v6025_v33, %v6415_v59 }
 0x697   : > { %v3038_v53 = vmax.f32 %v3022_v19, 0.0  ;;  %v933_v27 = vadd.f32 %v6415_v59, %v6027_v34  ;;  %v958_v33 = vadd.f32 %v6033_v41, %v6415_v59  ;;  %v953_v34 = vadd.f32 %v6415_v59, %v6035_v46 }
 0x698   : > { %v3037_v52 = vmax.f32 %v3021_v61, 0.0  ;;  %v978_v41 = vadd.f32 %v6041_v55, %v6415_v59  ;;  %v973_v46 = vadd.f32 %v6415_v59, %v6043_v58  ;;  %v1691_v49 = vadd.f32 %v6415_v59, %v6127_v60 }
 0x699   : > { %3085 = vrot.lane.b32.xlu0 %v3038_v53, %s5447_s7  ;;  %v1706_v55 = vadd.f32 %v6129_v56, %v6415_v59  ;;  %v1701_v58 = vadd.f32 %v6415_v59, %v6131_v62  ;;  %v1716_v2 = vadd.f32 %v6133_v54, %v6415_v59  ;;  %v1711_v60 = vadd.f32 %v6415_v59, %v6135_v43 }
 0x69a   : > { %3083 = vrot.lane.b32.xlu1 %v3037_v52, %s5447_s7  ;;  %v1726_v56 = vadd.f32 %v6137_v63, %v6415_v59  ;;  %v1721_v62 = vadd.f32 %v6415_v59, %v6139_v12  ;;  %v1736_v54 = vadd.f32 %v6141_v50, %v6415_v59  ;;  %v1731_v43 = vadd.f32 %v6415_v59, %v6143_v35 }
 0x69b   : > { %v1746_v63 = vadd.f32 %v6288_v26, %v6415_v59  ;;  %v1741_v12 = vadd.f32 %v6415_v59, %v6290_v6  ;;  %v1756_v50 = vadd.f32 %v6292_v25, %v6415_v59  ;;  %v1751_v35 = vadd.f32 %v6415_v59, %v6294_v4 }
 0x69c   : > { %v1766_v26 = vadd.f32 %v6296_v10, %v6415_v59  ;;  %v1761_v6 = vadd.f32 %v6415_v59, %v6298_v7 }
 0x69d   : > { %999 = vrot.lane.b32.xlu0 %v908_v57, %s5446_s18 }
 0x69e   : > { %997 = vrot.lane.b32.xlu1 %v903_v0, %s5446_s18 }
 0x6a1   : > { %1003 = vrot.lane.b32.xlu0 %v918_v20, %s5446_s18 }
 0x6a2   : > { %1001 = vrot.lane.b32.xlu1 %v913_v18, %s5446_s18 }
 0x6a5   : > { %1007 = vrot.lane.b32.xlu0 %v928_v14, %s5446_s18 }
 0x6a6   : > { %1005 = vrot.lane.b32.xlu1 %v923_v17, %s5446_s18 }
 0x6a9   : > { %1011 = vrot.lane.b32.xlu0 %v938_v22, %s5446_s18 }
 0x6aa   : > { %1009 = vrot.lane.b32.xlu1 %v933_v27, %s5446_s18 }
 0x6ad   : > { %1015 = vrot.lane.b32.xlu0 %v948_v31, %s5446_s18 }
 0x6ae   : > { %1013 = vrot.lane.b32.xlu1 %v943_v37, %s5446_s18 }
 0x6b1   : > { %1019 = vrot.lane.b32.xlu0 %v958_v33, %s5446_s18 }
 0x6b2   : > { %1017 = vrot.lane.b32.xlu1 %v953_v34, %s5446_s18 }
 0x6b5   : > { %1023 = vrot.lane.b32.xlu0 %v968_v39, %s5446_s18 }
 0x6b6   : > { %1021 = vrot.lane.b32.xlu1 %v963_v40, %s5446_s18 }
 0x6b9   : > { %1027 = vrot.lane.b32.xlu0 %v978_v41, %s5446_s18 }
 0x6ba   : > { %1025 = vrot.lane.b32.xlu1 %v973_v46, %s5446_s18 }
 0x6bd   : > { %1787 = vrot.lane.b32.xlu0 %v1696_v47, %s5446_s18 }
 0x6be   : > { %1785 = vrot.lane.b32.xlu1 %v1691_v49, %s5446_s18 }
 0x6c1   : > { %1791 = vrot.lane.b32.xlu0 %v1706_v55, %s5446_s18 }
 0x6c2   : > { %1789 = vrot.lane.b32.xlu1 %v1701_v58, %s5446_s18 }
 0x6c5   : > { %1795 = vrot.lane.b32.xlu0 %v1716_v2, %s5446_s18  ;;  %v7131_v2 = vld [vmem:[#allocation13_spill] sm:$0xff] }
 0x6c6   : > { %1793 = vrot.lane.b32.xlu1 %v1711_v60, %s5446_s18 }
 0x6c9   : > { %1799 = vrot.lane.b32.xlu0 %v1726_v56, %s5446_s18  ;;  %v7132_v56 = vld [vmem:[#allocation14_spill] sm:$0xff] }
 0x6ca   : > { %1797 = vrot.lane.b32.xlu1 %v1721_v62, %s5446_s18 }
 0x6cd   : > { %1803 = vrot.lane.b32.xlu0 %v1736_v54, %s5446_s18  ;;  %v7133_v54 = vld [vmem:[#allocation15_spill] sm:$0xff] }
 0x6ce   : > { %1801 = vrot.lane.b32.xlu1 %v1731_v43, %s5446_s18 }
 0x6d1   : > { %1807 = vrot.lane.b32.xlu0 %v1746_v63, %s5446_s18  ;;  %v7134_v63 = vld [vmem:[#allocation16_spill] sm:$0xff] }
 0x6d2   : > { %1805 = vrot.lane.b32.xlu1 %v1741_v12, %s5446_s18 }
 0x6d5   : > { %1811 = vrot.lane.b32.xlu0 %v1756_v50, %s5446_s18 }
 0x6d6   : > { %1809 = vrot.lane.b32.xlu1 %v1751_v35, %s5446_s18  ;;  %v7135_v35 = vld [vmem:[#allocation17_spill] sm:$0xff] }
 0x6d9   : > { %1815 = vrot.lane.b32.xlu0 %v1766_v26, %s5446_s18 }
 0x6da   : > { %1813 = vrot.lane.b32.xlu1 %v1761_v6, %s5446_s18 }
 0x6ef   : > { %v3058_v1 = vpop.permute.xlu0 %3057 }
 0x6f0   : > { %v3056_v19 = vpop.permute.xlu1 %3055 }
 0x6f1   : > { %4937 = vmatprep.mubr.msk.f32.mxu1 %vm590_vm0, %v3056_v19 }
 0x6f2   : > { %4938 = vmatmul.mubr.msk.f32.vlgmr.msra.gmra.mrb[86].mxu1 %vm590_vm0, %v3058_v1  ;;  %v7136_v1 = vld [vmem:[#allocation18_spill] sm:$0xff] }
 0x6f3   : > { %v3062_v25 = vpop.permute.xlu0 %3061 }
 0x6f4   : > { %v3060_v4 = vpop.permute.xlu1 %3059 }
 0x6f5   : > { %4940 = vmatprep.mubr.msk.f32.mxu1 %vm590_vm0, %v3060_v4  ;;  %v7137_v4 = vld [vmem:[#allocation19_spill] sm:$0xff] }
 0x6f6   : > { %4941 = vmatmul.mubr.msk.f32.gmra.mrb[88].mxu1 %vm590_vm0, %v3062_v25 }
 0x6f7   : > { %v3066_v10 = vpop.permute.xlu0 %3065 }
 0x6f8   : > { %v3064_v61 = vpop.permute.xlu1 %3063 }
 0x6f9   : > { %4943 = vmatprep.mubr.msk.f32.mxu1 %vm590_vm0, %v3064_v61 }
 0x6fa   : > { %4944 = vmatmul.mubr.msk.f32.gmra.mrb[90].mxu1 %vm590_vm0, %v3066_v10 }
 0x6fb   : > { %v3070_v7 = vpop.permute.xlu0 %3069 }
 0x6fc   : > { %v3068_v53 = vpop.permute.xlu1 %3067 }
 0x6fd   : > { %4946 = vmatprep.mubr.msk.f32.mxu1 %vm590_vm0, %v3068_v53 }
 0x6fe   : > { %4947 = vmatmul.mubr.msk.f32.gmra.mrb[92].mxu1 %vm590_vm0, %v3070_v7  ;;  %v7138_v7 = vld [vmem:[#allocation20_spill] sm:$0xff] }
 0x6ff   : > { %v3074_v52 = vpop.permute.xlu0 %3073 }
 0x700   : > { %v3072_v57 = vpop.permute.xlu1 %3071 }
 0x701   : > { %4949 = vmatprep.mubr.msk.f32.mxu1 %vm590_vm0, %v3072_v57  ;;  %v7139_v57 = vld [vmem:[#allocation21_spill] sm:$0xff] }
 0x702   : > { %4950 = vmatmul.mubr.msk.f32.gmra.mrb[94].mxu1 %vm590_vm0, %v3074_v52 }
 0x703   : > { %v3078_v0 = vpop.permute.xlu0 %3077 }
 0x704   : > { %v3076_v20 = vpop.permute.xlu1 %3075 }
 0x705   : > { %4952 = vmatprep.mubr.msk.f32.mxu1 %vm590_vm0, %v3076_v20 }
 0x706   : > { %4953 = vmatmul.mubr.msk.f32.gmra.mrb[96].mxu1 %vm590_vm0, %v3078_v0 }
 0x707   : > { %v3082_v18 = vpop.permute.xlu0 %3081 }
 0x708   : > { %v3080_v14 = vpop.permute.xlu1 %3079 }
 0x709   : > { %4955 = vmatprep.mubr.msk.f32.mxu1 %vm590_vm0, %v3080_v14 }
 0x70a   : > { %4956 = vmatmul.mubr.msk.f32.gmra.mrb[98].mxu1 %vm590_vm0, %v3082_v18 }
 0x70b   : > { %v3086_v17 = vpop.permute.xlu0 %3085 }
 0x70c   : > { %v3084_v22 = vpop.permute.xlu1 %3083 }
 0x70d   : > { %4958 = vmatprep.mubr.msk.f32.mxu1 %vm590_vm0, %v3084_v22 }
 0x70e   : > { %4959 = vmatmul.mubr.msk.f32.gmra.mrb[100].mxu1 %vm590_vm0, %v3086_v17  ;;  %v7140_v17 = vld [vmem:[#allocation22_spill] sm:$0xff] }
 0x70f   : > { %v1000_v27 = vpop.permute.xlu0 %999 }
 0x710   : > { %v1047_v31 = vsel %vm1045_vm1, %v5767_v21, %v1000_v27  ;;  %v998_v37 = vpop.permute.xlu1 %997 }
 0x711   : > { %1063 = vst.msk [vmem:[%s6534_s27 + $0x8] sm:$0xff] %vm590_vm0, %v1047_v31  ;;  %v1046_v33 = vsel %vm1045_vm1, %v5771_v24, %v998_v37  ;;  %v7141_v31 = vld [vmem:[#allocation23_spill] sm:$0xff] }
 0x712   : > { %1062 = vst.msk [vmem:[%s6534_s27] sm:$0xff] %vm590_vm0, %v1046_v33 }
 0x713   : > { %v1004_v34 = vpop.permute.xlu0 %1003 }
 0x714   : > { %v1049_v21 = vsel %vm1045_vm1, %v5775_v30, %v1004_v34  ;;  %v1002_v39 = vpop.permute.xlu1 %1001 }
 0x715   : > { %1065 = vst.msk [vmem:[%s6534_s27 + $0x18] sm:$0xff] %vm590_vm0, %v1049_v21  ;;  %v1048_v40 = vsel %vm1045_vm1, %v5780_v32, %v1002_v39  ;;  %v7142_v39 = vld [vmem:[#allocation24_spill] sm:$0xff] }
 0x716   : > { %1064 = vst.msk [vmem:[%s6534_s27 + $0x10] sm:$0xff] %vm590_vm0, %v1048_v40 }
 0x717   : > { %v1008_v41 = vpop.permute.xlu0 %1007 }
 0x718   : > { %v1051_v24 = vsel %vm1045_vm1, %v5785_v36, %v1008_v41  ;;  %v1006_v46 = vpop.permute.xlu1 %1005 }
 0x719   : > { %1067 = vst.msk [vmem:[%s6534_s27 + $0x28] sm:$0xff] %vm590_vm0, %v1051_v24  ;;  %v1050_v30 = vsel %vm1045_vm1, %v5789_v38, %v1006_v46  ;;  %v7143_v24 = vld [vmem:[#allocation25_spill] sm:$0xff] }
 0x71a   : > { %1066 = vst.msk [vmem:[%s6534_s27 + $0x20] sm:$0xff] %vm590_vm0, %v1050_v30 }
 0x71b   : > { %v1012_v47 = vpop.permute.xlu0 %1011 }
 0x71c   : > { %v1053_v32 = vsel %vm1045_vm1, %v5795_v42, %v1012_v47  ;;  %v1010_v49 = vpop.permute.xlu1 %1009 }
 0x71d   : > { %1069 = vst.msk [vmem:[%s6534_s27 + $0x38] sm:$0xff] %vm590_vm0, %v1053_v32  ;;  %v1052_v36 = vsel %vm1045_vm1, %v5799_v44, %v1010_v49  ;;  %v7144_v49 = vld [vmem:[#allocation26_spill] sm:$0xff] }
 0x71e   : > { %1068 = vst.msk [vmem:[%s6534_s27 + $0x30] sm:$0xff] %vm590_vm0, %v1052_v36 }
 0x71f   : > { %v1016_v55 = vpop.permute.xlu0 %1015 }
 0x720   : > { %v1055_v38 = vsel %vm1045_vm1, %v5805_v48, %v1016_v55  ;;  %v1014_v58 = vpop.permute.xlu1 %1013 }
 0x721   : > { %1071 = vst.msk [vmem:[%s6534_s27 + $0x48] sm:$0xff] %vm590_vm0, %v1055_v38  ;;  %v1054_v42 = vsel %vm1045_vm1, %v7131_v2, %v1014_v58  ;;  %v7145_v38 = vld [vmem:[#allocation27_spill] sm:$0xff] }
 0x722   : > { %1070 = vst.msk [vmem:[%s6534_s27 + $0x40] sm:$0xff] %vm590_vm0, %v1054_v42 }
 0x723   : > { %v1020_v60 = vpop.permute.xlu0 %1019 }
 0x724   : > { %v1057_v44 = vsel %vm1045_vm1, %v7132_v56, %v1020_v60  ;;  %v1018_v62 = vpop.permute.xlu1 %1017  ;;  %v7146_v56 = vld [vmem:[#allocation28_spill] sm:$0xff] }
 0x725   : > { %1073 = vst.msk [vmem:[%s6534_s27 + $0x58] sm:$0xff] %vm590_vm0, %v1057_v44  ;;  %v1056_v48 = vsel %vm1045_vm1, %v7133_v54, %v1018_v62  ;;  %v7147_v54 = vld [vmem:[#allocation29_spill] sm:$0xff] }
 0x726   : > { %1072 = vst.msk [vmem:[%s6534_s27 + $0x50] sm:$0xff] %vm590_vm0, %v1056_v48 }
 0x727   : > { %v1024_v43 = vpop.permute.xlu0 %1023 }
 0x728   : > { %v1059_v12 = vsel %vm1045_vm1, %v7134_v63, %v1024_v43  ;;  %v1022_v50 = vpop.permute.xlu1 %1021 }
 0x729   : > { %1075 = vst.msk [vmem:[%s6534_s27 + $0x68] sm:$0xff] %vm590_vm0, %v1059_v12  ;;  %v1058_v26 = vsel %vm1045_vm1, %v7135_v35, %v1022_v50  ;;  %v7148_v50 = vld [vmem:[#allocation30_spill] sm:$0xff] }
 0x72a   : > { %1074 = vst.msk [vmem:[%s6534_s27 + $0x60] sm:$0xff] %vm590_vm0, %v1058_v26 }
 0x72b   : > { %v1028_v6 = vpop.permute.xlu0 %1027 }
 0x72c   : > { %v1061_v19 = vsel %vm1045_vm1, %v7136_v1, %v1028_v6  ;;  %v1026_v25 = vpop.permute.xlu1 %1025  ;;  %v7149_v6 = vld [vmem:[#allocation31_spill] sm:$0xff] }
 0x72d   : > { %1077 = vst.msk [vmem:[%s6534_s27 + $0x78] sm:$0xff] %vm590_vm0, %v1061_v19  ;;  %v1060_v10 = vsel %vm1045_vm1, %v7137_v4, %v1026_v25 }
 0x72e   : > { %1076 = vst.msk [vmem:[%s6534_s27 + $0x70] sm:$0xff] %vm590_vm0, %v1060_v10  ;;  %v7150_v10 = vld [vmem:[#allocation32_spill] sm:$0xff] }
 0x72f   : > { %v1788_v61 = vpop.permute.xlu0 %1787 }
 0x730   : > { %v1834_v53 = vsel %vm1045_vm1, %v7138_v7, %v1788_v61  ;;  %v1786_v52 = vpop.permute.xlu1 %1785 }
 0x731   : > { %1867 = vrot.lane.b32.xlu0 %v1834_v53, %s5448_s30  ;;  %v1833_v0 = vsel %vm1045_vm1, %v7139_v57, %v1786_v52  ;;  %v7151_v53 = vld [vmem:[#allocation33_spill] sm:$0xff] }
 0x732   : > { %v4851_v20 = vpop.f32.mrb[70].mxu1  ;;  %1865 = vrot.lane.b32.xlu1 %v1833_v0, %s5448_s30 }
 0x733   : > { %v1792_v18 = vpop.permute.xlu0 %1791  ;;  %v2542_v14 = vpop.f32.mrb[71].mxu1 }
 0x734   : > { %v1836_v22 = vsel %vm1045_vm1, %v7140_v17, %v1792_v18  ;;  %v1790_v27 = vpop.permute.xlu1 %1789  ;;  %v7152_v17 = vld [vmem:[#allocation34_spill] sm:$0xff] }
 0x735   : > { %v1835_v37 = vsel %vm1045_vm1, %v7141_v31, %v1790_v27  ;;  %1871 = vrot.lane.b32.xlu0 %v1836_v22, %s5448_s30  ;;  %v7153_v31 = vld [vmem:[#allocation35_spill] sm:$0xff] }
 0x736   : > { %v4854_v33 = vpop.f32.mrb[72].mxu1  ;;  %1869 = vrot.lane.b32.xlu1 %v1835_v37, %s5448_s30 }
 0x737   : > { %v1796_v34 = vpop.permute.xlu0 %1795  ;;  %v2552_v21 = vpop.f32.mrb[73].mxu1 }
 0x738   : > { %v1838_v40 = vsel %vm1045_vm1, %v7142_v39, %v1796_v34  ;;  %v1794_v41 = vpop.permute.xlu1 %1793  ;;  %v2548_v39 = vadd.f32 %v4851_v20, %v6415_v59 }
 0x739   : > { %v1837_v46 = vsel %vm1045_vm1, %v7143_v24, %v1794_v41  ;;  %1875 = vrot.lane.b32.xlu0 %v1838_v40, %s5448_s30  ;;  %v2543_v41 = vadd.f32 %v6415_v59, %v2542_v14  ;;  %v2558_v24 = vadd.f32 %v4854_v33, %v6415_v59 }
 0x73a   : > { %v4857_v30 = vpop.f32.mrb[74].mxu1  ;;  %1873 = vrot.lane.b32.xlu1 %v1837_v46, %s5448_s30  ;;  %v2553_v46 = vadd.f32 %v6415_v59, %v2552_v21 }
 0x73b   : > { %v1800_v47 = vpop.permute.xlu0 %1799  ;;  %v2562_v32 = vpop.f32.mrb[75].mxu1 }
 0x73c   : > { %v1840_v36 = vsel %vm1045_vm1, %v7144_v49, %v1800_v47  ;;  %v1798_v55 = vpop.permute.xlu1 %1797  ;;  %v2568_v47 = vadd.f32 %v4857_v30, %v6415_v59  ;;  %v2563_v49 = vadd.f32 %v6415_v59, %v2562_v32 }
 0x73d   : > { %v1839_v58 = vsel %vm1045_vm1, %v7145_v38, %v1798_v55  ;;  %1879 = vrot.lane.b32.xlu0 %v1840_v36, %s5448_s30 }
 0x73e   : > { %v4860_v2 = vpop.f32.mrb[76].mxu1  ;;  %1877 = vrot.lane.b32.xlu1 %v1839_v58, %s5448_s30 }
 0x73f   : > { %v1804_v42 = vpop.permute.xlu0 %1803  ;;  %v2572_v60 = vpop.f32.mrb[77].mxu1  ;;  %v2578_v20 = vadd.f32 %v4860_v2, %v6415_v59 }
 0x740   : > { %v1842_v44 = vsel %vm1045_vm1, %v7146_v56, %v1804_v42  ;;  %v1802_v62 = vpop.permute.xlu1 %1801  ;;  %v2573_v14 = vadd.f32 %v6415_v59, %v2572_v60 }
 0x741   : > { %v1841_v48 = vsel %vm1045_vm1, %v7147_v54, %v1802_v62  ;;  %1883 = vrot.lane.b32.xlu0 %v1842_v44, %s5448_s30 }
 0x742   : > { %v4863_v43 = vpop.f32.mrb[78].mxu1  ;;  %1881 = vrot.lane.b32.xlu1 %v1841_v48, %s5448_s30 }
 0x743   : > { %v1808_v63 = vpop.permute.xlu0 %1807  ;;  %v2582_v12 = vpop.f32.mrb[79].mxu1  ;;  %v2588_v33 = vadd.f32 %v4863_v43, %v6415_v59 }
 0x744   : > { %v1844_v35 = vsel %vm1045_vm1, %v7148_v50, %v1808_v63  ;;  %v1806_v26 = vpop.permute.xlu1 %1805  ;;  %v2583_v21 = vadd.f32 %v6415_v59, %v2582_v12 }
 0x745   : > { %v1843_v1 = vsel %vm1045_vm1, %v7149_v6, %v1806_v26  ;;  %1887 = vrot.lane.b32.xlu0 %v1844_v35, %s5448_s30 }
 0x746   : > { %v4866_v19 = vpop.f32.mrb[80].mxu1  ;;  %1885 = vrot.lane.b32.xlu1 %v1843_v1, %s5448_s30 }
 0x747   : > { %v1812_v25 = vpop.permute.xlu0 %1811  ;;  %v2592_v4 = vpop.f32.mrb[81].mxu1  ;;  %v2598_v30 = vadd.f32 %v4866_v19, %v6415_v59 }
 0x748   : > { %v1846_v61 = vsel %vm1045_vm1, %v7150_v10, %v1812_v25  ;;  %v1810_v7 = vpop.permute.xlu1 %1809  ;;  %v2593_v32 = vadd.f32 %v6415_v59, %v2592_v4  ;;  %v7154_v10 = vld [vmem:[#allocation36_spill] sm:$0xff] }
 0x749   : > { %v1845_v52 = vsel %vm1045_vm1, %v7151_v53, %v1810_v7  ;;  %1891 = vrot.lane.b32.xlu0 %v1846_v61, %s5448_s30 }
 0x74a   : > { %v4869_v57 = vpop.f32.mrb[82].mxu1  ;;  %1889 = vrot.lane.b32.xlu1 %v1845_v52, %s5448_s30 }
 0x74b   : > { %v1816_v0 = vpop.permute.xlu0 %1815  ;;  %v2602_v18 = vpop.f32.mrb[83].mxu1  ;;  %v2608_v36 = vadd.f32 %v4869_v57, %v6415_v59 }
 0x74c   : > { %v1848_v22 = vsel %vm1045_vm1, %v7152_v17, %v1816_v0  ;;  %v1814_v27 = vpop.permute.xlu1 %1813  ;;  %v2603_v55 = vadd.f32 %v6415_v59, %v2602_v18  ;;  %v7155_v18 = vld [vmem:[#allocation37_spill] sm:$0xff] }
 0x74d   : > { %v1847_v37 = vsel %vm1045_vm1, %v7153_v31, %v1814_v27  ;;  %1895 = vrot.lane.b32.xlu0 %v1848_v22, %s5448_s30  ;;  %v7156_v27 = vld [vmem:[#allocation38_spill] sm:$0xff] }
 0x74e   : > { %v4872_v34 = vpop.f32.mrb[84].mxu1  ;;  %1893 = vrot.lane.b32.xlu1 %v1847_v37, %s5448_s30 }
 0x74f   : > { %v2612_v40 = vpop.f32.mrb[85].mxu1  ;;  %v2618_v38 = vadd.f32 %v4872_v34, %v6415_v59 }
 0x750   : > { %v2613_v58 = vadd.f32 %v6415_v59, %v2612_v40 }
 0x751   : > { %2639 = vrot.lane.b32.xlu0 %v2548_v39, %s5446_s18 }
 0x752   : > { %2637 = vrot.lane.b32.xlu1 %v2543_v41, %s5446_s18 }
 0x755   : > { %2643 = vrot.lane.b32.xlu0 %v2558_v24, %s5446_s18 }
 0x756   : > { %2641 = vrot.lane.b32.xlu1 %v2553_v46, %s5446_s18  ;;  %v7157_v46 = vld [vmem:[#allocation39_spill] sm:$0xff] }
 0x759   : > { %2647 = vrot.lane.b32.xlu0 %v2568_v47, %s5446_s18 }
 0x75a   : > { %2645 = vrot.lane.b32.xlu1 %v2563_v49, %s5446_s18 }
 0x75d   : > { %2651 = vrot.lane.b32.xlu0 %v2578_v20, %s5446_s18 }
 0x75e   : > { %2649 = vrot.lane.b32.xlu1 %v2573_v14, %s5446_s18  ;;  %v7158_v14 = vld [vmem:[#allocation40_spill] sm:$0xff] }
 0x761   : > { %2655 = vrot.lane.b32.xlu0 %v2588_v33, %s5446_s18 }
 0x762   : > { %2653 = vrot.lane.b32.xlu1 %v2583_v21, %s5446_s18 }
 0x765   : > { %2659 = vrot.lane.b32.xlu0 %v2598_v30, %s5446_s18 }
 0x766   : > { %2657 = vrot.lane.b32.xlu1 %v2593_v32, %s5446_s18 }
 0x769   : > { %2663 = vrot.lane.b32.xlu0 %v2608_v36, %s5446_s18 }
 0x76a   : > { %2661 = vrot.lane.b32.xlu1 %v2603_v55, %s5446_s18 }
 0x76d   : > { %2667 = vrot.lane.b32.xlu0 %v2618_v38, %s5446_s18 }
 0x76e   : > { %2665 = vrot.lane.b32.xlu1 %v2613_v58, %s5446_s18  ;;  %v7159_v58 = vld [vmem:[#allocation41_spill] sm:$0xff] }
 0x7a3   : > { %v1868_v2 = vpop.permute.xlu0 %1867 }
 0x7a4   : > { %1915 = vst.msk [vmem:[%s6534_s27 + $0x8] sm:$0xff] %vm1913_vm2, %v1868_v2  ;;  %v1866_v42 = vpop.permute.xlu1 %1865 }
 0x7a5   : > { %1914 = vst.msk [vmem:[%s6534_s27] sm:$0xff] %vm1913_vm2, %v1866_v42 }
 0x7a7   : > { %v1872_v60 = vpop.permute.xlu0 %1871 }
 0x7a8   : > { %1917 = vst.msk [vmem:[%s6534_s27 + $0x18] sm:$0xff] %vm1913_vm2, %v1872_v60  ;;  %v1870_v56 = vpop.permute.xlu1 %1869 }
 0x7a9   : > { %1916 = vst.msk [vmem:[%s6534_s27 + $0x10] sm:$0xff] %vm1913_vm2, %v1870_v56  ;;  %v7160_v56 = vld [vmem:[#allocation42_spill] sm:$0xff] }
 0x7ab   : > { %v1876_v44 = vpop.permute.xlu0 %1875 }
 0x7ac   : > { %1919 = vst.msk [vmem:[%s6534_s27 + $0x28] sm:$0xff] %vm1913_vm2, %v1876_v44  ;;  %v1874_v62 = vpop.permute.xlu1 %1873 }
 0x7ad   : > { %1918 = vst.msk [vmem:[%s6534_s27 + $0x20] sm:$0xff] %vm1913_vm2, %v1874_v62 }
 0x7af   : > { %v1880_v54 = vpop.permute.xlu0 %1879 }
 0x7b0   : > { %1921 = vst.msk [vmem:[%s6534_s27 + $0x38] sm:$0xff] %vm1913_vm2, %v1880_v54  ;;  %v1878_v48 = vpop.permute.xlu1 %1877 }
 0x7b1   : > { %1920 = vst.msk [vmem:[%s6534_s27 + $0x30] sm:$0xff] %vm1913_vm2, %v1878_v48 }
 0x7b3   : > { %v1884_v43 = vpop.permute.xlu0 %1883 }
 0x7b4   : > { %1923 = vst.msk [vmem:[%s6534_s27 + $0x48] sm:$0xff] %vm1913_vm2, %v1884_v43  ;;  %v1882_v63 = vpop.permute.xlu1 %1881 }
 0x7b5   : > { %1922 = vst.msk [vmem:[%s6534_s27 + $0x40] sm:$0xff] %vm1913_vm2, %v1882_v63 }
 0x7b7   : > { %v1888_v12 = vpop.permute.xlu0 %1887 }
 0x7b8   : > { %1925 = vst.msk [vmem:[%s6534_s27 + $0x58] sm:$0xff] %vm1913_vm2, %v1888_v12  ;;  %v1886_v50 = vpop.permute.xlu1 %1885 }
 0x7b9   : > { %1924 = vst.msk [vmem:[%s6534_s27 + $0x50] sm:$0xff] %vm1913_vm2, %v1886_v50  ;;  %v7161_v50 = vld [vmem:[#allocation43_spill] sm:$0xff] }
 0x7bb   : > { %v1892_v35 = vpop.permute.xlu0 %1891 }
 0x7bc   : > { %1927 = vst.msk [vmem:[%s6534_s27 + $0x68] sm:$0xff] %vm1913_vm2, %v1892_v35  ;;  %v1890_v26 = vpop.permute.xlu1 %1889 }
 0x7bd   : > { %1926 = vst.msk [vmem:[%s6534_s27 + $0x60] sm:$0xff] %vm1913_vm2, %v1890_v26 }
 0x7bf   : > { %v1896_v6 = vpop.permute.xlu0 %1895 }
 0x7c0   : > { %1929 = vst.msk [vmem:[%s6534_s27 + $0x78] sm:$0xff] %vm1913_vm2, %v1896_v6  ;;  %v1894_v1 = vpop.permute.xlu1 %1893 }
 0x7c1   : > { %1928 = vst.msk [vmem:[%s6534_s27 + $0x70] sm:$0xff] %vm1913_vm2, %v1894_v1  ;;  %v7162_v1 = vld [vmem:[#allocation44_spill] sm:$0xff] }
 0x7c3   : > { %v2640_v19 = vpop.permute.xlu0 %2639 }
 0x7c4   : > { %v2686_v25 = vsel %vm1045_vm1, %v6155_v13, %v2640_v19  ;;  %v2638_v4 = vpop.permute.xlu1 %2637 }
 0x7c5   : > { %v2685_v61 = vsel %vm1045_vm1, %v7154_v10, %v2638_v4  ;;  %2719 = vrot.lane.b32.xlu0 %v2686_v25, %s5449_s5  ;;  %v4939_v7 = vpop.f32.mrb[86].mxu1 }
 0x7c6   : > { %v3191_v53 = vadd.f32 %v6300_v8, %v4939_v7  ;;  %v3185_v52 = vpop.f32.mrb[87].mxu1  ;;  %2717 = vrot.lane.b32.xlu1 %v2685_v61, %s5449_s5 }
 0x7c7   : > { %v3186_v57 = vadd.f32 %v6300_v8, %v3185_v52  ;;  %v2644_v0 = vpop.permute.xlu0 %2643  ;;  %v7163_v52 = vld [vmem:[#allocation45_spill] sm:$0xff] }
 0x7c8   : > { %v6720_v17 = vsel %vm1045_vm1, %v7155_v18, %v2644_v0  ;;  %v2642_v13 = vpop.permute.xlu1 %2641  ;;  %v3265_v34 = vmax.f32 %v3191_v53, 0.0 }
 0x7c9   : > { %v3264_v22 = vmax.f32 %v3186_v57, 0.0  ;;  %v6724_v31 = vsel %vm1045_vm1, %v7156_v27, %v2642_v13  ;;  %v4942_v37 = vpop.f32.mrb[88].mxu1  ;;  %v7164_v13 = vld [vmem:[#allocation46_spill] sm:$0xff] }
 0x7ca   : > { %v3201_v39 = vadd.f32 %v6300_v8, %v4942_v37  ;;  %v3195_v40 = vpop.f32.mrb[89].mxu1 }
 0x7cb   : > { %v3196_v41 = vadd.f32 %v6300_v8, %v3195_v40  ;;  %v2648_v24 = vpop.permute.xlu0 %2647  ;;  %4969 = vmatprep.mubr.msk.f32.mxu0 %vm590_vm0, %v3264_v22 }
 0x7cc   : > { %v6731_v47 = vsel %vm1045_vm1, %v7157_v46, %v2648_v24  ;;  %4970 = vmatmul.mubr.msk.f32.vlgmr.msra.gmra.mrb[74].mxu0 %vm590_vm0, %v3265_v34  ;;  %v2646_v49 = vpop.permute.xlu1 %2645  ;;  %v3267_v30 = vmax.f32 %v3201_v39, 0.0  ;;  %v7165_v24 = vld [vmem:[#allocation47_spill] sm:$0xff] }
 0x7cd   : > { %v3266_v20 = vmax.f32 %v3196_v41, 0.0  ;;  %v6736_v33 = vsel %vm1045_vm1, %v7158_v14, %v2646_v49  ;;  %v4945_v21 = vpop.f32.mrb[90].mxu1  ;;  %v7166_v14 = vld [vmem:[#allocation48_spill] sm:$0xff] }
 0x7ce   : > { %v3211_v32 = vadd.f32 %v6300_v8, %v4945_v21  ;;  %v3205_v36 = vpop.f32.mrb[91].mxu1 }
 0x7cf   : > { %v3206_v55 = vadd.f32 %v6300_v8, %v3205_v36  ;;  %v2652_v38 = vpop.permute.xlu0 %2651  ;;  %4972 = vmatprep.mubr.msk.f32.mxu0 %vm590_vm0, %v3266_v20 }
 0x7d0   : > { %v6743_v2 = vsel %vm1045_vm1, %v7159_v58, %v2652_v38  ;;  %4973 = vmatmul.mubr.msk.f32.gmra.mrb[76].mxu0 %vm590_vm0, %v3267_v30  ;;  %v2650_v42 = vpop.permute.xlu1 %2649  ;;  %v3269_v54 = vmax.f32 %v3211_v32, 0.0 }
 0x7d1   : > { %v3268_v60 = vmax.f32 %v3206_v55, 0.0  ;;  %v6748_v44 = vsel %vm1045_vm1, %v7160_v56, %v2650_v42  ;;  %v4948_v62 = vpop.f32.mrb[92].mxu1 }
 0x7d2   : > { %v3221_v48 = vadd.f32 %v6300_v8, %v4948_v62  ;;  %v3215_v43 = vpop.f32.mrb[93].mxu1 }
 0x7d3   : > { %v3216_v63 = vadd.f32 %v6300_v8, %v3215_v43  ;;  %v2656_v12 = vpop.permute.xlu0 %2655  ;;  %4975 = vmatprep.mubr.msk.f32.mxu0 %vm590_vm0, %v3268_v60 }
 0x7d4   : > { %v6755_v35 = vsel %vm1045_vm1, %v7161_v50, %v2656_v12  ;;  %4976 = vmatmul.mubr.msk.f32.gmra.mrb[78].mxu0 %vm590_vm0, %v3269_v54  ;;  %v2654_v26 = vpop.permute.xlu1 %2653  ;;  %v3271_v4 = vmax.f32 %v3221_v48, 0.0 }
 0x7d5   : > { %v3270_v6 = vmax.f32 %v3216_v63, 0.0  ;;  %v6760_v19 = vsel %vm1045_vm1, %v7162_v1, %v2654_v26  ;;  %v4951_v25 = vpop.f32.mrb[94].mxu1 }
 0x7d6   : > { %v3231_v10 = vadd.f32 %v6300_v8, %v4951_v25  ;;  %v3225_v61 = vpop.f32.mrb[95].mxu1 }
 0x7d7   : > { %v3226_v7 = vadd.f32 %v6300_v8, %v3225_v61  ;;  %v2660_v53 = vpop.permute.xlu0 %2659  ;;  %4978 = vmatprep.mubr.msk.f32.mxu0 %vm590_vm0, %v3270_v6 }
 0x7d8   : > { %v6767_v57 = vsel %vm1045_vm1, %v7163_v52, %v2660_v53  ;;  %4979 = vmatmul.mubr.msk.f32.gmra.mrb[80].mxu0 %vm590_vm0, %v3271_v4  ;;  %v2658_v0 = vpop.permute.xlu1 %2657  ;;  %v3273_v37 = vmax.f32 %v3231_v10, 0.0 }
 0x7d9   : > { %v3272_v18 = vmax.f32 %v3226_v7, 0.0  ;;  %v6772_v22 = vsel %vm1045_vm1, %v7164_v13, %v2658_v0  ;;  %v4954_v27 = vpop.f32.mrb[96].mxu1 }
 0x7da   : > { %v3241_v34 = vadd.f32 %v6300_v8, %v4954_v27  ;;  %v3235_v39 = vpop.f32.mrb[97].mxu1 }
 0x7db   : > { %v3236_v40 = vadd.f32 %v6300_v8, %v3235_v39  ;;  %v2664_v41 = vpop.permute.xlu0 %2663  ;;  %4981 = vmatprep.mubr.msk.f32.mxu0 %vm590_vm0, %v3272_v18 }
 0x7dc   : > { %v6779_v46 = vsel %vm1045_vm1, %v7165_v24, %v2664_v41  ;;  %4982 = vmatmul.mubr.msk.f32.gmra.mrb[82].mxu0 %vm590_vm0, %v3273_v37  ;;  %v2662_v49 = vpop.permute.xlu1 %2661  ;;  %v3275_v32 = vmax.f32 %v3241_v34, 0.0 }
 0x7dd   : > { %v3274_v20 = vmax.f32 %v3236_v40, 0.0  ;;  %v6784_v21 = vsel %vm1045_vm1, %v7166_v14, %v2662_v49  ;;  %v4957_v30 = vpop.f32.mrb[98].mxu1 }
 0x7de   : > { %v3251_v36 = vadd.f32 %v6300_v8, %v4957_v30  ;;  %v3245_v55 = vpop.f32.mrb[99].mxu1 }
 0x7df   : > { %v3246_v38 = vadd.f32 %v6300_v8, %v3245_v55  ;;  %4984 = vmatprep.mubr.msk.f32.mxu0 %vm590_vm0, %v3274_v20  ;;  %v6796_v63 = vpop.permute.xlu0 %2667 }
 0x7e0   : > { %4985 = vmatmul.mubr.msk.f32.gmra.mrb[84].mxu0 %vm590_vm0, %v3275_v32  ;;  %v3277_v60 = vmax.f32 %v3251_v36, 0.0  ;;  %v6798_v12 = vpop.permute.xlu1 %2665 }
 0x7e1   : > { %v3276_v58 = vmax.f32 %v3246_v38, 0.0  ;;  %v4960_v42 = vpop.f32.mrb[100].mxu1 }
 0x7e2   : > { %v3261_v56 = vadd.f32 %v6300_v8, %v4960_v42  ;;  %v3255_v62 = vpop.f32.mrb[101].mxu1 }
 0x7e3   : > { %v3256_v54 = vadd.f32 %v6300_v8, %v3255_v62  ;;  %4987 = vmatprep.mubr.msk.f32.mxu0 %vm590_vm0, %v3276_v58 }
 0x7e4   : > { %4988 = vmatmul.mubr.msk.f32.gmra.mrb[86].mxu0 %vm590_vm0, %v3277_v60  ;;  %v3279_v43 = vmax.f32 %v3261_v56, 0.0 }
 0x7e5   : > { %v3278_v48 = vmax.f32 %v3256_v54, 0.0 }
 0x7e7   : > { %4990 = vmatprep.mubr.msk.f32.mxu0 %vm590_vm0, %v3278_v48 }
 0x7e8   : > { %4991 = vmatmul.mubr.msk.f32.gmra.mrb[88].mxu0 %vm590_vm0, %v3279_v43  ;;  %v7169_v43 = vld [vmem:[#allocation51_spill] sm:$0xff] }
 0x837   : > { %v2720_v50 = vpop.permute.xlu0 %2719 }
 0x838   : > { %2767 = vst.msk [vmem:[%s6534_s27 + $0x8] sm:$0xff] %vm2765_vm3, %v2720_v50  ;;  %v2718_v26 = vpop.permute.xlu1 %2717 }
 0x839   : > { %2766 = vst.msk [vmem:[%s6534_s27] sm:$0xff] %vm2765_vm3, %v2718_v26  ;;  %v7171_v26 = vld [vmem:[#allocation53_spill] sm:$0xff] }
 0x89f   : > { %v4971_v8 = vpop.f32.mrb[74].mxu0 }
 0x8a0   : > { %v3400_v6 = vadd.f32 %v4971_v8, %v6415_v59  ;;  %v3394_v1 = vpop.f32.mrb[75].mxu0 }
 0x8a1   : > { %v3395_v25 = vadd.f32 %v6415_v59, %v3394_v1 }
 0x8a2   : > { %3491 = vrot.lane.b32.xlu0 %v3400_v6, %s5446_s18  ;;  %v7172_v6 = vld [vmem:[#allocation54_spill] sm:$0xff] }
 0x8a3   : > { %v4974_v4 = vpop.f32.mrb[76].mxu0  ;;  %3489 = vrot.lane.b32.xlu1 %v3395_v25, %s5446_s18 }
 0x8a4   : > { %v3410_v10 = vadd.f32 %v4974_v4, %v6415_v59  ;;  %v3404_v61 = vpop.f32.mrb[77].mxu0 }
 0x8a5   : > { %v3405_v7 = vadd.f32 %v6415_v59, %v3404_v61  ;;  %v7173_v61 = vld [vmem:[#allocation55_spill] sm:$0xff] }
 0x8a6   : > { %3495 = vrot.lane.b32.xlu0 %v3410_v10, %s5446_s18 }
 0x8a7   : > { %v4977_v53 = vpop.f32.mrb[78].mxu0  ;;  %3493 = vrot.lane.b32.xlu1 %v3405_v7, %s5446_s18 }
 0x8a8   : > { %v3420_v52 = vadd.f32 %v4977_v53, %v6415_v59  ;;  %v3414_v0 = vpop.f32.mrb[79].mxu0 }
 0x8a9   : > { %v3415_v18 = vadd.f32 %v6415_v59, %v3414_v0 }
 0x8aa   : > { %3499 = vrot.lane.b32.xlu0 %v3420_v52, %s5446_s18 }
 0x8ab   : > { %v4980_v13 = vpop.f32.mrb[80].mxu0  ;;  %3497 = vrot.lane.b32.xlu1 %v3415_v18, %s5446_s18 }
 0x8ac   : > { %v3430_v27 = vadd.f32 %v4980_v13, %v6415_v59  ;;  %v3424_v37 = vpop.f32.mrb[81].mxu0 }
 0x8ad   : > { %v3425_v34 = vadd.f32 %v6415_v59, %v3424_v37 }
 0x8ae   : > { %3503 = vrot.lane.b32.xlu0 %v3430_v27, %s5446_s18 }
 0x8af   : > { %v4983_v39 = vpop.f32.mrb[82].mxu0  ;;  %3501 = vrot.lane.b32.xlu1 %v3425_v34, %s5446_s18 }
 0x8b0   : > { %v3440_v40 = vadd.f32 %v4983_v39, %v6415_v59  ;;  %v3434_v41 = vpop.f32.mrb[83].mxu0 }
 0x8b1   : > { %v3435_v24 = vadd.f32 %v6415_v59, %v3434_v41 }
 0x8b2   : > { %3507 = vrot.lane.b32.xlu0 %v3440_v40, %s5446_s18 }
 0x8b3   : > { %v4986_v49 = vpop.f32.mrb[84].mxu0  ;;  %3505 = vrot.lane.b32.xlu1 %v3435_v24, %s5446_s18 }
 0x8b4   : > { %v3450_v20 = vadd.f32 %v4986_v49, %v6415_v59  ;;  %v3444_v14 = vpop.f32.mrb[85].mxu0 }
 0x8b5   : > { %v3445_v30 = vadd.f32 %v6415_v59, %v3444_v14 }
 0x8b6   : > { %3511 = vrot.lane.b32.xlu0 %v3450_v20, %s5446_s18 }
 0x8b7   : > { %v4989_v32 = vpop.f32.mrb[86].mxu0  ;;  %3509 = vrot.lane.b32.xlu1 %v3445_v30, %s5446_s18 }
 0x8b8   : > { %v3460_v36 = vadd.f32 %v4989_v32, %v6415_v59  ;;  %v3454_v55 = vpop.f32.mrb[87].mxu0 }
 0x8b9   : > { %v3455_v38 = vadd.f32 %v6415_v59, %v3454_v55 }
 0x8ba   : > { %3515 = vrot.lane.b32.xlu0 %v3460_v36, %s5446_s18 }
 0x8bb   : > { %v4992_v58 = vpop.f32.mrb[88].mxu0  ;;  %3513 = vrot.lane.b32.xlu1 %v3455_v38, %s5446_s18 }
 0x8bc   : > { %v3470_v42 = vadd.f32 %v4992_v58, %v6415_v59  ;;  %v3464_v60 = vpop.f32.mrb[89].mxu0 }
 0x8bd   : > { %v3465_v56 = vadd.f32 %v6415_v59, %v3464_v60  ;;  %v7167_v59 = vld [vmem:[#allocation49_spill] sm:$0xff] }
 0x8be   : > { %3519 = vrot.lane.b32.xlu0 %v3470_v42, %s5446_s18 }
 0x8bf   : > { %3517 = vrot.lane.b32.xlu1 %v3465_v56, %s5446_s18 }
 0x8c2   : > { %2723 = vrot.lane.b32.xlu0 %v6720_v17, %s5449_s5  ;;  %v2700_v17 = vsel %vm1045_vm1, %v7167_v59, %v6796_v63 }
 0x8c3   : > { %2721 = vrot.lane.b32.xlu1 %v6724_v31, %s5449_s5  ;;  %v7168_v31 = vld [vmem:[#allocation50_spill] sm:$0xff] }
 0x8c6   : > { %2727 = vrot.lane.b32.xlu0 %v6731_v47, %s5449_s5  ;;  %v2699_v47 = vsel %vm1045_vm1, %v7168_v31, %v6798_v12  ;;  %v7170_v12 = vld [vmem:[#allocation52_spill] sm:$0xff] }
 0x8c7   : > { %2725 = vrot.lane.b32.xlu1 %v6736_v33, %s5449_s5 }
 0x8ca   : > { %2731 = vrot.lane.b32.xlu0 %v6743_v2, %s5449_s5 }
 0x8cb   : > { %2729 = vrot.lane.b32.xlu1 %v6748_v44, %s5449_s5 }
 0x8ce   : > { %2735 = vrot.lane.b32.xlu0 %v6755_v35, %s5449_s5 }
 0x8cf   : > { %2733 = vrot.lane.b32.xlu1 %v6760_v19, %s5449_s5 }
 0x8d2   : > { %2739 = vrot.lane.b32.xlu0 %v6767_v57, %s5449_s5 }
 0x8d3   : > { %2737 = vrot.lane.b32.xlu1 %v6772_v22, %s5449_s5 }
 0x8d6   : > { %2743 = vrot.lane.b32.xlu0 %v6779_v46, %s5449_s5 }
 0x8d7   : > { %2741 = vrot.lane.b32.xlu1 %v6784_v21, %s5449_s5 }
 0x8da   : > { %2747 = vrot.lane.b32.xlu0 %v2700_v17, %s5449_s5 }
 0x8db   : > { %2745 = vrot.lane.b32.xlu1 %v2699_v47, %s5449_s5 }
 0x914   : > { %v3492_v33 = vpop.permute.xlu0 %3491 }
 0x915   : > { %v3538_v2 = vsel %vm1045_vm1, %v6335_v9, %v3492_v33  ;;  %v3490_v44 = vpop.permute.xlu1 %3489 }
 0x916   : > { %v3537_v35 = vsel %vm1045_vm1, %v6339_v23, %v3490_v44  ;;  %3571 = vrot.lane.b32.xlu0 %v3538_v2, %s5450_s8 }
 0x917   : > { %3569 = vrot.lane.b32.xlu1 %v3537_v35, %s5450_s8 }
 0x918   : > { %v3496_v19 = vpop.permute.xlu0 %3495 }
 0x919   : > { %v3540_v57 = vsel %vm1045_vm1, %v6345_v45, %v3496_v19  ;;  %v3494_v22 = vpop.permute.xlu1 %3493 }
 0x91a   : > { %v3539_v46 = vsel %vm1045_vm1, %v6350_v16, %v3494_v22  ;;  %3575 = vrot.lane.b32.xlu0 %v3540_v57, %s5450_s8 }
 0x91b   : > { %3573 = vrot.lane.b32.xlu1 %v3539_v46, %s5450_s8 }
 0x91c   : > { %v3500_v9 = vpop.permute.xlu0 %3499 }
 0x91d   : > { %v3542_v23 = vsel %vm1045_vm1, %v6355_v15, %v3500_v9  ;;  %v3498_v21 = vpop.permute.xlu1 %3497 }
 0x91e   : > { %v3541_v62 = vsel %vm1045_vm1, %v6360_v51, %v3498_v21  ;;  %3579 = vrot.lane.b32.xlu0 %v3542_v23, %s5450_s8 }
 0x91f   : > { %3577 = vrot.lane.b32.xlu1 %v3541_v62, %s5450_s8 }
 0x920   : > { %v3504_v45 = vpop.permute.xlu0 %3503 }
 0x921   : > { %v3544_v16 = vsel %vm1045_vm1, %v6365_v5, %v3504_v45  ;;  %v3502_v54 = vpop.permute.xlu1 %3501 }
 0x922   : > { %v3543_v48 = vsel %vm1045_vm1, %v6370_v3, %v3502_v54  ;;  %3583 = vrot.lane.b32.xlu0 %v3544_v16, %s5450_s8 }
 0x923   : > { %3581 = vrot.lane.b32.xlu1 %v3543_v48, %s5450_s8 }
 0x924   : > { %v3508_v15 = vpop.permute.xlu0 %3507 }
 0x925   : > { %v3546_v51 = vsel %vm1045_vm1, %v7169_v43, %v3508_v15  ;;  %v3506_v63 = vpop.permute.xlu1 %3505 }
 0x926   : > { %v3545_v50 = vsel %vm1045_vm1, %v7170_v12, %v3506_v63  ;;  %3587 = vrot.lane.b32.xlu0 %v3546_v51, %s5450_s8 }
 0x927   : > { %3585 = vrot.lane.b32.xlu1 %v3545_v50, %s5450_s8 }
 0x928   : > { %v3512_v5 = vpop.permute.xlu0 %3511 }
 0x929   : > { %v3548_v3 = vsel %vm1045_vm1, %v7171_v26, %v3512_v5  ;;  %v3510_v8 = vpop.permute.xlu1 %3509 }
 0x92a   : > { %v3547_v1 = vsel %vm1045_vm1, %v7172_v6, %v3510_v8  ;;  %3591 = vrot.lane.b32.xlu0 %v3548_v3, %s5450_s8 }
 0x92b   : > { %3589 = vrot.lane.b32.xlu1 %v3547_v1, %s5450_s8 }
 0x92c   : > { %v3516_v25 = vpop.permute.xlu0 %3515 }
 0x92d   : > { %v3550_v4 = vsel %vm1045_vm1, %v6395_v28, %v3516_v25  ;;  %v3514_v10 = vpop.permute.xlu1 %3513 }
 0x92e   : > { %v3549_v7 = vsel %vm1045_vm1, %v7173_v61, %v3514_v10  ;;  %3595 = vrot.lane.b32.xlu0 %v3550_v4, %s5450_s8 }
 0x92f   : > { %3593 = vrot.lane.b32.xlu1 %v3549_v7, %s5450_s8 }
 0x930   : > { %v3520_v53 = vpop.permute.xlu0 %3519 }
 0x931   : > { %v3552_v52 = vsel %vm1045_vm1, %v6405_v29, %v3520_v53  ;;  %v3518_v0 = vpop.permute.xlu1 %3517 }
 0x932   : > { %v3551_v28 = vsel %vm1045_vm1, %v6410_v11, %v3518_v0  ;;  %3599 = vrot.lane.b32.xlu0 %v3552_v52, %s5450_s8 }
 0x933   : > { %3597 = vrot.lane.b32.xlu1 %v3551_v28, %s5450_s8 }
 0x934   : > { %v2724_v18 = vpop.permute.xlu0 %2723 }
 0x935   : > { %2769 = vst.msk [vmem:[%s6534_s27 + $0x18] sm:$0xff] %vm2765_vm3, %v2724_v18  ;;  %v2722_v13 = vpop.permute.xlu1 %2721 }
 0x936   : > { %2768 = vst.msk [vmem:[%s6534_s27 + $0x10] sm:$0xff] %vm2765_vm3, %v2722_v13 }
 0x938   : > { %v2728_v29 = vpop.permute.xlu0 %2727 }
 0x939   : > { %2771 = vst.msk [vmem:[%s6534_s27 + $0x28] sm:$0xff] %vm2765_vm3, %v2728_v29  ;;  %v2726_v27 = vpop.permute.xlu1 %2725 }
 0x93a   : > { %2770 = vst.msk [vmem:[%s6534_s27 + $0x20] sm:$0xff] %vm2765_vm3, %v2726_v27 }
 0x93c   : > { %v2732_v11 = vpop.permute.xlu0 %2731 }
 0x93d   : > { %2773 = vst.msk [vmem:[%s6534_s27 + $0x38] sm:$0xff] %vm2765_vm3, %v2732_v11  ;;  %v2730_v37 = vpop.permute.xlu1 %2729 }
 0x93e   : > { %2772 = vst.msk [vmem:[%s6534_s27 + $0x30] sm:$0xff] %vm2765_vm3, %v2730_v37 }
 0x940   : > { %v2736_v34 = vpop.permute.xlu0 %2735 }
 0x941   : > { %2775 = vst.msk [vmem:[%s6534_s27 + $0x48] sm:$0xff] %vm2765_vm3, %v2736_v34  ;;  %v2734_v39 = vpop.permute.xlu1 %2733 }
 0x942   : > { %2774 = vst.msk [vmem:[%s6534_s27 + $0x40] sm:$0xff] %vm2765_vm3, %v2734_v39 }
 0x944   : > { %v2740_v40 = vpop.permute.xlu0 %2739 }
 0x945   : > { %2777 = vst.msk [vmem:[%s6534_s27 + $0x58] sm:$0xff] %vm2765_vm3, %v2740_v40  ;;  %v2738_v41 = vpop.permute.xlu1 %2737 }
 0x946   : > { %2776 = vst.msk [vmem:[%s6534_s27 + $0x50] sm:$0xff] %vm2765_vm3, %v2738_v41 }
 0x948   : > { %v2744_v24 = vpop.permute.xlu0 %2743 }
 0x949   : > { %2779 = vst.msk [vmem:[%s6534_s27 + $0x68] sm:$0xff] %vm2765_vm3, %v2744_v24  ;;  %v2742_v49 = vpop.permute.xlu1 %2741 }
 0x94a   : > { %2778 = vst.msk [vmem:[%s6534_s27 + $0x60] sm:$0xff] %vm2765_vm3, %v2742_v49 }
 0x94c   : > { %v2748_v20 = vpop.permute.xlu0 %2747 }
 0x94d   : > { %2781 = vst.msk [vmem:[%s6534_s27 + $0x78] sm:$0xff] %vm2765_vm3, %v2748_v20  ;;  %v2746_v14 = vpop.permute.xlu1 %2745 }
 0x94e   : > { %2780 = vst.msk [vmem:[%s6534_s27 + $0x70] sm:$0xff] %vm2765_vm3, %v2746_v14 }
 0x988   : > { %v3572_v30 = vpop.permute.xlu0 %3571 }
 0x989   : > { %3619 = vst.msk [vmem:[%s6534_s27 + $0x8] sm:$0xff] %vm3617_vm4, %v3572_v30  ;;  %v3570_v32 = vpop.permute.xlu1 %3569 }
 0x98a   : > { %3618 = vst.msk [vmem:[%s6534_s27] sm:$0xff] %vm3617_vm4, %v3570_v32 }
 0x98c   : > { %v3576_v36 = vpop.permute.xlu0 %3575 }
 0x98d   : > { %3621 = vst.msk [vmem:[%s6534_s27 + $0x18] sm:$0xff] %vm3617_vm4, %v3576_v36  ;;  %v3574_v55 = vpop.permute.xlu1 %3573 }
 0x98e   : > { %3620 = vst.msk [vmem:[%s6534_s27 + $0x10] sm:$0xff] %vm3617_vm4, %v3574_v55 }
 0x990   : > { %v3580_v38 = vpop.permute.xlu0 %3579 }
 0x991   : > { %3623 = vst.msk [vmem:[%s6534_s27 + $0x28] sm:$0xff] %vm3617_vm4, %v3580_v38  ;;  %v3578_v58 = vpop.permute.xlu1 %3577 }
 0x992   : > { %3622 = vst.msk [vmem:[%s6534_s27 + $0x20] sm:$0xff] %vm3617_vm4, %v3578_v58 }
 0x994   : > { %v3584_v42 = vpop.permute.xlu0 %3583 }
 0x995   : > { %3625 = vst.msk [vmem:[%s6534_s27 + $0x38] sm:$0xff] %vm3617_vm4, %v3584_v42  ;;  %v3582_v60 = vpop.permute.xlu1 %3581 }
 0x996   : > { %3624 = vst.msk [vmem:[%s6534_s27 + $0x30] sm:$0xff] %vm3617_vm4, %v3582_v60 }
 0x998   : > { %v3588_v56 = vpop.permute.xlu0 %3587 }
 0x999   : > { %3627 = vst.msk [vmem:[%s6534_s27 + $0x48] sm:$0xff] %vm3617_vm4, %v3588_v56  ;;  %v3586_v59 = vpop.permute.xlu1 %3585 }
 0x99a   : > { %3626 = vst.msk [vmem:[%s6534_s27 + $0x40] sm:$0xff] %vm3617_vm4, %v3586_v59 }
 0x99c   : > { %v3592_v17 = vpop.permute.xlu0 %3591 }
 0x99d   : > { %3629 = vst.msk [vmem:[%s6534_s27 + $0x58] sm:$0xff] %vm3617_vm4, %v3592_v17  ;;  %v3590_v31 = vpop.permute.xlu1 %3589 }
 0x99e   : > { %3628 = vst.msk [vmem:[%s6534_s27 + $0x50] sm:$0xff] %vm3617_vm4, %v3590_v31 }
 0x9a0   : > { %v3596_v47 = vpop.permute.xlu0 %3595 }
 0x9a1   : > { %3631 = vst.msk [vmem:[%s6534_s27 + $0x68] sm:$0xff] %vm3617_vm4, %v3596_v47  ;;  %v3594_v33 = vpop.permute.xlu1 %3593 }
 0x9a2   : > { %3630 = vst.msk [vmem:[%s6534_s27 + $0x60] sm:$0xff] %vm3617_vm4, %v3594_v33 }
 0x9a4   : > { %v3600_v2 = vpop.permute.xlu0 %3599 }
 0x9a5   : > { %3633 = vst.msk [vmem:[%s6534_s27 + $0x78] sm:$0xff] %vm3617_vm4, %v3600_v2  ;;  %v3598_v44 = vpop.permute.xlu1 %3597 }
 0x9a6   : > { %3632 = vst.msk [vmem:[%s6534_s27 + $0x70] sm:$0xff] %vm3617_vm4, %v3598_v44 }
 0x9a7   : > { %5376 = shalt.err (!%p5373_p6)
}
 0x9a8   : > { %s5377_s6 = scalar_lea.hbm %s6977_s22, 2048  ;;  %s5381_s10 = scalar_lea.hbm %s7030_s3, 4096 }
 0x9a9   : > { %p5378_p8 = scmp.ne.s32.totalorder %s6977_s22, %s5377_s6  ;;  %p5382_p4 = scmp.lt.u32.totalorder %s6977_s22, %s7030_s3 }
 0x9aa   : > { %p5383_p11 = scmp.lt.u32.totalorder %s5381_s10, %s5377_s6  ;;  %p5385_p3 = scmp.lt.u32.totalorder %s5377_s6, %s6977_s22 }
 0x9ab   : > { %p5379_p10 = pnand %p5378_p8, %p5565_p12 }
 0x9ac   : > { %p5384_p13 = por %p5383_p11, %p5382_p4 }
 0x9ad   : > { %p5380_p0 = pneg %p5379_p10 }
 0x9ae   : > { %p5386_p7 = por %p5385_p3, %p5384_p13 }
 0x9b0   : > { %p5387_p9 = pnand %p5386_p7, %p5380_p0 }
 0x9b2   : > { %5390 = shalt.err (!%p5387_p9)
}
 0x9b3   : > { %s5452_s5 = smov 128   ;;  %s5453_s8 = smov 8  }
 0x9b4   : > { %5209 = dma.vmem_to_hbm [thread:$0]  (%p5565_p12), %s6979_s9, 2048, %s6977_s22, %s3635_s16, %s5452_s5, %s5452_s5, %s5453_s8  }
 0x9b5 PF: > { %s3663_s29 = sand.u32 1, %s5425_s12   ;;  %p7174_p1 = scmp.ne.s32.totalorder %s7078_s19, 0 }
 0x9b6   : > { %p7175_p5 = scmp.ge.s32.totalorder %s5437_s15, 2  ;;  %s3664_s11 = scalar_lea.sflag [#allocation4], %s3663_s29 }
 0x9b8   : > { %p5223_p2 = pnand %p7175_p5, %p7174_p1 }
 0x9ba   : > { %5420 = dma.done.wait (!%p5223_p2), %s3664_s11, 2048  }
 0x9bb   : > { %5422 = vsyncadd (!%p5223_p2), %s3664_s11, 4294965248  ;;  %p19_p6 = scmp.ge.s32.totalorder %s5530_s24, 4   ;;  %s7176_s12 = smov %s5429_s13 }
 0x9bc   : > { %s7177_s13 = smov %s5433_s14  ;;  %s7178_s14 = smov %s5561_s17 }
 0x9bd   : > { %s7179_s15 = smov %s5530_s24  ;;  %21 = sbr.rel (!%p19_p6) target bundleno = 7 (0x7), region = 94 }
 0x9c4   :  { %3669 = vsyncpa [#allocation3], 1 }
 0x9c5   :  { %3671 = vsyncpa [#allocation3 + $0x1], 1 }
 0x9c6   :  { %3672 = vsyncpa [#allocation6], 1 }
 0x9c7   :  { %3674 = vsyncpa [#allocation6 + $0x1], 1 }
 0x9c8   :  { %3675 = vsyncpa [#allocation4], 1 }
 0x9c9   :  { %3677 = vsyncpa [#allocation4 + $0x1], 1 }

</bundles_post_ra>
